<compile_context>
chip_gen: v5e
topology: v5e:2x2
jax: 0.10.0
libtpu: 0.0.40
codegen_flags: <defaults>
</compile_context>

<pallas_src>
import functools
import math

import jax
import jax.numpy as jnp
from jax import lax
from jax.experimental import pallas as pl
from jax.experimental.pallas import tpu as pltpu


# ---------------------------------------------------------------------------
# Kernel
# ---------------------------------------------------------------------------
def _sdpa_kernel(*refs, scale, has_mask, return_score):
    it = iter(refs)
    q_ref = next(it)                       # (th, tq, dt)
    k_ref = next(it)                       # (th, Lk, dt)
    v_ref = next(it)                       # (th, Lk, dt)
    mask_ref = next(it) if has_mask else None   # (tq, Lk) int8
    o_ref = next(it)                       # (th, tq, dt)
    s_ref = next(it) if return_score else None  # (th, tq, Lk)

    # Fold 1/sqrt(d_tensor) into q: th*tq*dt multiplies instead of th*tq*Lk on
    # the score.  Scale in f32, then return to the native (possibly bf16) dtype
    # so the MXU still sees narrow operands.
    q = (q_ref[...].astype(jnp.float32) * scale).astype(q_ref.dtype)
    k = k_ref[...]
    v = v_ref[...]

    # score[h, i, j] = sum_d q[h, i, d] * k[h, j, d]  (contract last dims,
    # batched over heads; no explicit XLU transpose of K).
    score = lax.dot_general(
        q, k,
        dimension_numbers=(((2,), (2,)), ((0,), (0,))),
        preferred_element_type=jnp.float32,
    )                                       # (th, tq, Lk), f32

    if has_mask:
        keep = mask_ref[...] != 0           # int8 -> bool, (tq, Lk)
        score = jnp.where(keep[None, :, :], score, -10000.0)

    # Numerically-stable softmax along Lk; statistics in f32 (VPU/EUP).
    score = score - jnp.max(score, axis=-1, keepdims=True)
    p = jnp.exp(score)
    denom = jnp.sum(p, axis=-1, keepdims=True)
    inv = pl.reciprocal(denom, approx=True)     # EUP slot, co-issues with VPU
    inv = inv * (2.0 - denom * inv)             # one Newton step -> ~f32 exact
    p = p * inv

    if return_score:
        s_ref[...] = p.astype(s_ref.dtype)

    # out[h, i, d] = sum_j p[h, i, j] * v[h, j, d]
    o = lax.dot_general(
        p.astype(v.dtype), v,               # feed MXU in v's (possibly bf16) dtype
        dimension_numbers=(((2,), (1,)), ((0,), (0,))),
        preferred_element_type=jnp.float32,
    )
    # Note: for dt < 128 the o store is not lane-dense; the score tensor (Lk
    # last dim) dominates HBM traffic, so we keep the natural layout here.
    o_ref[...] = o.astype(o_ref.dtype)


# ---------------------------------------------------------------------------
# Tile planning (VMEM aware)
# ---------------------------------------------------------------------------
def _round_up(x, m):
    return ((x + m - 1) // m) * m


def _vmem_capacity_bytes():
    try:
        info = pltpu.get_tpu_info()
        cap = getattr(info, "vmem_capacity_bytes", None)
        if cap:
            return int(cap)
    except Exception:
        pass
    return 64 * 1024 * 1024   # conservative: v7x per-TensorCore VMEM


def _plan_tiles(H, Lq, Lk, dt, in_bytes, s_bytes, has_mask, return_score, budget):
    """Pick (head tile th, query tile tq) so the per-step working set fits."""
    def est(th, tq):
        b = 0
        b += 2 * th * tq * dt * in_bytes            # q block (double-buffered)
        b += 2 * 1 * th * Lk * dt * in_bytes        # k + v blocks (single-buffered)
        b += 2 * th * tq * dt * in_bytes            # o block
        if return_score:
            b += 2 * th * tq * Lk * s_bytes         # score block
        if has_mask:
            b += 2 * tq * Lk * 1                    # int8 mask block
        b += 2 * th * tq * Lk * 4                   # f32 score/p temporaries
        return b

    th_cands = [d for d in range(H, 0, -1) if H % d == 0]
    tq_cands = []
    t = min(512, _round_up(Lq, 8))
    while True:
        tq_cands.append(t)
        if t <= 8:
            break
        t = max(8, _round_up(t // 2, 8))

    for tq in tq_cands:            # prefer the biggest query tile (fills MXU M dim)
        for th in th_cands:        # then as many heads as fit
            if est(th, tq) <= budget:
                return th, tq
    return 1, 8


# ---------------------------------------------------------------------------
# Wrapper
# ---------------------------------------------------------------------------
def scale_dot_product_attention(q, k, v, mask=None, *, score_dtype=None,
                                return_score=True):
    """q, k, v: [B, H, L, d_tensor].  mask (optional): broadcastable to
    [B, 1, Lq, Lk] (or [B/1, Lq, Lk] / [Lq, Lk]); nonzero = keep, 0 = mask with
    -10000 (torch masked_fill semantics — fully-masked rows become uniform).

    Returns (out, score) like the torch module.  `score_dtype=jnp.bfloat16`
    halves the dominant HBM write of the probability tensor; `return_score=False`
    skips it entirely and returns only `out`.
    """
    B, H, Lq, dt = q.shape
    Lk = k.shape[2]
    scale = 1.0 / math.sqrt(dt)
    s_dtype = jnp.dtype(q.dtype if score_dtype is None else score_dtype)

    has_mask = mask is not None
    mask_i8 = None
    mB = 1
    if has_mask:
        m = mask
        if m.ndim == 4:
            # TODO(synk): per-head (non-broadcast) 4-D masks not supported; all heads share the mask.
            assert m.shape[1] == 1, "per-head masks not supported"
            m = m[:, 0]
        if m.ndim == 2:
            m = m[None]
        mB = m.shape[0]
        assert mB in (1, B), "mask batch dim must be 1 or B"
        # int8 keep/drop mask: 4x less DMA than f32, no B-fold HBM duplication.
        mask_i8 = (jnp.broadcast_to(m, (mB, Lq, Lk)) != 0).astype(jnp.int8)

    cap = _vmem_capacity_bytes()
    vmem_limit = int(cap * 0.9)
    budget = int(vmem_limit * 0.7)
    th, tq = _plan_tiles(H, Lq, Lk, dt, q.dtype.itemsize, s_dtype.itemsize,
                         has_mask, return_score, budget)
    grid = (B, H // th, pl.cdiv(Lq, tq))

    def build_and_call(single_buffer_kv):
        kv_kwargs = {"pipeline_mode": pl.Buffered(1)} if single_buffer_kv else {}
        in_specs = [
            pl.BlockSpec((None, th, tq, dt), lambda b, h, i: (b, h, i, 0)),
            # K / V are reused across every Lq tile; single-buffer them.
            pl.BlockSpec((None, th, Lk, dt), lambda b, h, i: (b, h, 0, 0), **kv_kwargs),
            pl.BlockSpec((None, th, Lk, dt), lambda b, h, i: (b, h, 0, 0), **kv_kwargs),
        ]
        operands = [q, k, v]
        if has_mask:
            mask_map = (lambda b, h, i: (b, i, 0)) if mB == B else (lambda b, h, i: (0, i, 0))
            in_specs.append(pl.BlockSpec((None, tq, Lk), mask_map))
            operands.append(mask_i8)

        out_specs = [pl.BlockSpec((None, th, tq, dt), lambda b, h, i: (b, h, i, 0))]
        out_shape = [jax.ShapeDtypeStruct((B, H, Lq, dt), q.dtype)]
        if return_score:
            out_specs.append(pl.BlockSpec((None, th, tq, Lk), lambda b, h, i: (b, h, i, 0)))
            out_shape.append(jax.ShapeDtypeStruct((B, H, Lq, Lk), s_dtype))

        return pl.pallas_call(
            functools.partial(_sdpa_kernel, scale=scale, has_mask=has_mask,
                              return_score=return_score),
            out_shape=tuple(out_shape),
            grid=grid,
            in_specs=in_specs,
            out_specs=tuple(out_specs),
            compiler_params=pltpu.CompilerParams(
                dimension_semantics=("parallel", "parallel", "parallel"),
                vmem_limit_bytes=vmem_limit,
            ),
        )(*operands)

    try:
        res = build_and_call(single_buffer_kv=True)
    except Exception:
        # Older jax without BlockSpec pipeline_mode support: default buffering.
        res = build_and_call(single_buffer_kv=False)

    if return_score:
        return res[0], res[1]
    return res[0]


# ---------------------------------------------------------------------------
# Pure-JAX reference (mirrors the PyTorch math)
# ---------------------------------------------------------------------------
def _reference(q, k, v, mask=None):
    dt = q.shape[-1]
    score = jnp.einsum("bhqd,bhkd->bhqk", q, k) / math.sqrt(dt)
    if mask is not None:
        score = jnp.where(mask == 0, -10000.0, score)
    p = jax.nn.softmax(score, axis=-1)
    out = jnp.einsum("bhqk,bhkd->bhqd", p, v)
    return out, p


# ---------------------------------------------------------------------------
if __name__ == "__main__":
    B, H, L, DT = 2, 4, 128, 64

    key = jax.random.PRNGKey(0)
    kq, kk, kv = jax.random.split(key, 3)
    q = jax.random.normal(kq, (B, H, L, DT), jnp.float32)
    k = jax.random.normal(kk, (B, H, L, DT), jnp.float32)
    v = jax.random.normal(kv, (B, H, L, DT), jnp.float32)

    ref_out, ref_score = _reference(q, k, v)

    # --- unmasked path ------------------------------------------------------
    out, score = scale_dot_product_attention(q, k, v)
    out, score = jax.block_until_ready((out, score))
    assert out.shape == (B, H, L, DT) and score.shape == (B, H, L, L)
    assert jnp.allclose(out, ref_out, atol=1e-3, rtol=1e-3), \
        float(jnp.max(jnp.abs(out - ref_out)))
    assert jnp.allclose(score, ref_score, atol=1e-3, rtol=1e-3), \
        float(jnp.max(jnp.abs(score - ref_score)))

    # --- causal-mask path ---------------------------------------------------
    causal = jnp.tril(jnp.ones((L, L), jnp.float32))          # 1 = keep, 0 = mask
    mask4d = jnp.broadcast_to(causal, (B, 1, L, L))
    ref_out_m, ref_score_m = _reference(q, k, v, mask4d)
    out_m, score_m = scale_dot_product_attention(q, k, v, mask4d)
    out_m, score_m = jax.block_until_ready((out_m, score_m))
    assert jnp.allclose(out_m, ref_out_m, atol=1e-3, rtol=1e-3), \
        float(jnp.max(jnp.abs(out_m - ref_out_m)))
    assert jnp.allclose(score_m, ref_score_m, atol=1e-3, rtol=1e-3), \
        float(jnp.max(jnp.abs(score_m - ref_score_m)))

    # --- bf16 score write-back (halves dominant HBM traffic) -----------------
    out_b, score_b = scale_dot_product_attention(q, k, v, score_dtype=jnp.bfloat16)
    out_b, score_b = jax.block_until_ready((out_b, score_b))
    assert score_b.dtype == jnp.bfloat16
    assert jnp.allclose(out_b, ref_out, atol=1e-3, rtol=1e-3)
    assert jnp.allclose(score_b.astype(jnp.float32), ref_score, atol=2e-2, rtol=2e-2)

    # --- score-free (flash-style, output only) path -------------------------
    out_o = scale_dot_product_attention(q, k, v, mask4d, return_score=False)
    out_o = jax.block_until_ready(out_o)
    assert jnp.allclose(out_o, ref_out_m, atol=1e-3, rtol=1e-3)

    print("KERNEL_OK")
</pallas_src>

<mosaic_0001>
module attributes {stable_mosaic.version = 11 : i64} {
  func.func @_sdpa_kernel(%arg0: i32, %arg1: i32, %arg2: i32, %arg3: memref<1x4x128x64xf32, #tpu.memory_space<vmem>>, %arg4: memref<1x4x128x64xf32, #tpu.memory_space<vmem>>, %arg5: memref<1x4x128x64xf32, #tpu.memory_space<vmem>>, %arg6: memref<1x4x128x64xf32, #tpu.memory_space<vmem>>, %arg7: memref<1x4x128x128xf32, #tpu.memory_space<vmem>>) attributes {dimension_semantics = [#tpu.dimension_semantics<parallel>, #tpu.dimension_semantics<parallel>, #tpu.dimension_semantics<parallel>], iteration_bounds = array<i64: 2, 1, 1>, scalar_prefetch = 0 : i64, scratch_operands = 0 : i64, tpu.core_type = #tpu.core_type<tc>, window_params = [{transform_indices = @transform_0, window_bounds = array<i64: 1, 4, 128, 64>}, {pipeline_mode = #tpu.pipeline_mode<synchronous>, transform_indices = @transform_1, window_bounds = array<i64: 1, 4, 128, 64>}, {pipeline_mode = #tpu.pipeline_mode<synchronous>, transform_indices = @transform_2, window_bounds = array<i64: 1, 4, 128, 64>}, {transform_indices = @transform_3, window_bounds = array<i64: 1, 4, 128, 64>}, {transform_indices = @transform_4, window_bounds = array<i64: 1, 4, 128, 128>}]} {
    %c0 = arith.constant 0 : index
    %c0_0 = arith.constant 0 : index
    %c0_1 = arith.constant 0 : index
    %c0_2 = arith.constant 0 : index
    %0 = vector.load %arg3[%c0, %c0_0, %c0_1, %c0_2] : memref<1x4x128x64xf32, #tpu.memory_space<vmem>>, vector<1x4x128x64xf32>
    %1 = vector.shape_cast %0 : vector<1x4x128x64xf32> to vector<4x128x64xf32>
    %cst = arith.constant 1.250000e-01 : f32
    %2 = vector.broadcast %cst : f32 to vector<4x128x64xf32>
    %3 = arith.mulf %1, %2 : vector<4x128x64xf32>
    %c0_3 = arith.constant 0 : index
    %c0_4 = arith.constant 0 : index
    %c0_5 = arith.constant 0 : index
    %c0_6 = arith.constant 0 : index
    %4 = vector.load %arg4[%c0_3, %c0_4, %c0_5, %c0_6] : memref<1x4x128x64xf32, #tpu.memory_space<vmem>>, vector<1x4x128x64xf32>
    %5 = vector.shape_cast %4 : vector<1x4x128x64xf32> to vector<4x128x64xf32>
    %c0_7 = arith.constant 0 : index
    %c0_8 = arith.constant 0 : index
    %c0_9 = arith.constant 0 : index
    %c0_10 = arith.constant 0 : index
    %6 = vector.load %arg5[%c0_7, %c0_8, %c0_9, %c0_10] : memref<1x4x128x64xf32, #tpu.memory_space<vmem>>, vector<1x4x128x64xf32>
    %7 = vector.shape_cast %6 : vector<1x4x128x64xf32> to vector<4x128x64xf32>
    %cst_11 = arith.constant dense<0.000000e+00> : vector<4x128x128xf32>
    %8 = tpu.matmul %3, %5, %cst_11 {dimension_numbers = #tpu.dot_dimension_numbers<[2], [2], [1], [1], [0, 0, 0, 1, 1, 1], [0], [0]>} : vector<4x128x64xf32>, vector<4x128x64xf32>, vector<4x128x128xf32> -> vector<4x128x128xf32>
    %cst_12 = arith.constant dense<0xFF800000> : vector<4x128xf32>
    %9 = vector.multi_reduction <maximumf>, %8, %cst_12 [2] : vector<4x128x128xf32> to vector<4x128xf32>
    %10 = vector.shape_cast %9 : vector<4x128xf32> to vector<4x128x1xf32>
    %11 = vector.broadcast %10 : vector<4x128x1xf32> to vector<4x128x128xf32>
    %12 = arith.subf %8, %11 : vector<4x128x128xf32>
    %13 = math.exp %12 : vector<4x128x128xf32>
    %cst_13 = arith.constant dense<0.000000e+00> : vector<4x128xf32>
    %14 = vector.multi_reduction <add>, %13, %cst_13 [2] : vector<4x128x128xf32> to vector<4x128xf32>
    %15 = vector.shape_cast %14 : vector<4x128xf32> to vector<4x128x1xf32>
    %16 = tpu.reciprocal %15 {approx = true} : vector<4x128x1xf32> -> vector<4x128x1xf32>
    %17 = arith.mulf %15, %16 : vector<4x128x1xf32>
    %cst_14 = arith.constant 2.000000e+00 : f32
    %18 = vector.broadcast %cst_14 : f32 to vector<4x128x1xf32>
    %19 = arith.subf %18, %17 : vector<4x128x1xf32>
    %20 = arith.mulf %16, %19 : vector<4x128x1xf32>
    %21 = vector.broadcast %20 : vector<4x128x1xf32> to vector<4x128x128xf32>
    %22 = arith.mulf %13, %21 : vector<4x128x128xf32>
    %c0_15 = arith.constant 0 : index
    %c0_16 = arith.constant 0 : index
    %c0_17 = arith.constant 0 : index
    %c0_18 = arith.constant 0 : index
    %23 = vector.load %arg7[%c0_15, %c0_16, %c0_17, %c0_18] : memref<1x4x128x128xf32, #tpu.memory_space<vmem>>, vector<1x4x128x128xf32>
    %24 = vector.shape_cast %23 : vector<1x4x128x128xf32> to vector<4x128x128xf32>
    %25 = vector.shape_cast %22 : vector<4x128x128xf32> to vector<1x4x128x128xf32>
    tpu.vector_store %arg7[%c0_15, %c0_16, %c0_17, %c0_18], %25 {strides = array<i32>} : memref<1x4x128x128xf32, #tpu.memory_space<vmem>>, vector<1x4x128x128xf32>,
    %cst_19 = arith.constant dense<0.000000e+00> : vector<4x128x64xf32>
    %26 = tpu.matmul %22, %7, %cst_19 {dimension_numbers = #tpu.dot_dimension_numbers<[2], [1], [1], [2], [0, 0, 0, 1, 1, 2], [0], [0]>} : vector<4x128x128xf32>, vector<4x128x64xf32>, vector<4x128x64xf32> -> vector<4x128x64xf32>
    %c0_20 = arith.constant 0 : index
    %c0_21 = arith.constant 0 : index
    %c0_22 = arith.constant 0 : index
    %c0_23 = arith.constant 0 : index
    %27 = vector.load %arg6[%c0_20, %c0_21, %c0_22, %c0_23] : memref<1x4x128x64xf32, #tpu.memory_space<vmem>>, vector<1x4x128x64xf32>
    %28 = vector.shape_cast %27 : vector<1x4x128x64xf32> to vector<4x128x64xf32>
    %29 = vector.shape_cast %26 : vector<4x128x64xf32> to vector<1x4x128x64xf32>
    tpu.vector_store %arg6[%c0_20, %c0_21, %c0_22, %c0_23], %29 {strides = array<i32>} : memref<1x4x128x64xf32, #tpu.memory_space<vmem>>, vector<1x4x128x64xf32>,
    return
  }
  func.func @transform_0(%arg0: i32, %arg1: i32, %arg2: i32) -> (i32, i32, i32, i32) {
    %c0_i32 = arith.constant 0 : i32
    %c0_i32_0 = arith.constant 0 : i32
    return %arg0, %arg1, %arg2, %c0_i32 : i32, i32, i32, i32
  }
  func.func @transform_1(%arg0: i32, %arg1: i32, %arg2: i32) -> (i32, i32, i32, i32) {
    %c0_i32 = arith.constant 0 : i32
    %c0_i32_0 = arith.constant 0 : i32
    %c0_i32_1 = arith.constant 0 : i32
    return %arg0, %arg1, %c0_i32, %c0_i32_0 : i32, i32, i32, i32
  }
  func.func @transform_2(%arg0: i32, %arg1: i32, %arg2: i32) -> (i32, i32, i32, i32) {
    %c0_i32 = arith.constant 0 : i32
    %c0_i32_0 = arith.constant 0 : i32
    %c0_i32_1 = arith.constant 0 : i32
    return %arg0, %arg1, %c0_i32, %c0_i32_0 : i32, i32, i32, i32
  }
  func.func @transform_3(%arg0: i32, %arg1: i32, %arg2: i32) -> (i32, i32, i32, i32) {
    %c0_i32 = arith.constant 0 : i32
    %c0_i32_0 = arith.constant 0 : i32
    return %arg0, %arg1, %arg2, %c0_i32 : i32, i32, i32, i32
  }
  func.func @transform_4(%arg0: i32, %arg1: i32, %arg2: i32) -> (i32, i32, i32, i32) {
    %c0_i32 = arith.constant 0 : i32
    %c0_i32_0 = arith.constant 0 : i32
    return %arg0, %arg1, %arg2, %c0_i32 : i32, i32, i32, i32
  }
}

module attributes {stable_mosaic.version = 11 : i64} {
  func.func @_sdpa_kernel(%arg0: i32, %arg1: i32, %arg2: i32, %arg3: memref<1x4x128x64xf32, #tpu.memory_space<vmem>>, %arg4: memref<1x4x128x64xf32, #tpu.memory_space<vmem>>, %arg5: memref<1x4x128x64xf32, #tpu.memory_space<vmem>>, %arg6: memref<1x4x128x64xf32, #tpu.memory_space<vmem>>, %arg7: memref<1x4x128x128xf32, #tpu.memory_space<vmem>>) attributes {dimension_semantics = [#tpu.dimension_semantics<parallel>, #tpu.dimension_semantics<parallel>, #tpu.dimension_semantics<parallel>], iteration_bounds = array<i64: 2, 1, 1>, scalar_prefetch = 0 : i64, scratch_operands = 0 : i64, tpu.core_type = #tpu.core_type<tc>, window_params = [{transform_indices = @transform_0, window_bounds = array<i64: 1, 4, 128, 64>}, {transform_indices = @transform_1, window_bounds = array<i64: 1, 4, 128, 64>}, {transform_indices = @transform_2, window_bounds = array<i64: 1, 4, 128, 64>}, {transform_indices = @transform_3, window_bounds = array<i64: 1, 4, 128, 64>}, {transform_indices = @transform_4, window_bounds = array<i64: 1, 4, 128, 128>}]} {
    %c0 = arith.constant 0 : index
    %c0_0 = arith.constant 0 : index
    %c0_1 = arith.constant 0 : index
    %c0_2 = arith.constant 0 : index
    %0 = vector.load %arg3[%c0, %c0_0, %c0_1, %c0_2] : memref<1x4x128x64xf32, #tpu.memory_space<vmem>>, vector<1x4x128x64xf32>
    %1 = vector.shape_cast %0 : vector<1x4x128x64xf32> to vector<4x128x64xf32>
    %cst = arith.constant 1.250000e-01 : f32
    %2 = vector.broadcast %cst : f32 to vector<4x128x64xf32>
    %3 = arith.mulf %1, %2 : vector<4x128x64xf32>
    %c0_3 = arith.constant 0 : index
    %c0_4 = arith.constant 0 : index
    %c0_5 = arith.constant 0 : index
    %c0_6 = arith.constant 0 : index
    %4 = vector.load %arg4[%c0_3, %c0_4, %c0_5, %c0_6] : memref<1x4x128x64xf32, #tpu.memory_space<vmem>>, vector<1x4x128x64xf32>
    %5 = vector.shape_cast %4 : vector<1x4x128x64xf32> to vector<4x128x64xf32>
    %c0_7 = arith.constant 0 : index
    %c0_8 = arith.constant 0 : index
    %c0_9 = arith.constant 0 : index
    %c0_10 = arith.constant 0 : index
    %6 = vector.load %arg5[%c0_7, %c0_8, %c0_9, %c0_10] : memref<1x4x128x64xf32, #tpu.memory_space<vmem>>, vector<1x4x128x64xf32>
    %7 = vector.shape_cast %6 : vector<1x4x128x64xf32> to vector<4x128x64xf32>
    %cst_11 = arith.constant dense<0.000000e+00> : vector<4x128x128xf32>
    %8 = tpu.matmul %3, %5, %cst_11 {dimension_numbers = #tpu.dot_dimension_numbers<[2], [2], [1], [1], [0, 0, 0, 1, 1, 1], [0], [0]>} : vector<4x128x64xf32>, vector<4x128x64xf32>, vector<4x128x128xf32> -> vector<4x128x128xf32>
    %cst_12 = arith.constant dense<0xFF800000> : vector<4x128xf32>
    %9 = vector.multi_reduction <maximumf>, %8, %cst_12 [2] : vector<4x128x128xf32> to vector<4x128xf32>
    %10 = vector.shape_cast %9 : vector<4x128xf32> to vector<4x128x1xf32>
    %11 = vector.broadcast %10 : vector<4x128x1xf32> to vector<4x128x128xf32>
    %12 = arith.subf %8, %11 : vector<4x128x128xf32>
    %13 = math.exp %12 : vector<4x128x128xf32>
    %cst_13 = arith.constant dense<0.000000e+00> : vector<4x128xf32>
    %14 = vector.multi_reduction <add>, %13, %cst_13 [2] : vector<4x128x128xf32> to vector<4x128xf32>
    %15 = vector.shape_cast %14 : vector<4x128xf32> to vector<4x128x1xf32>
    %16 = tpu.reciprocal %15 {approx = true} : vector<4x128x1xf32> -> vector<4x128x1xf32>
    %17 = arith.mulf %15, %16 : vector<4x128x1xf32>
    %cst_14 = arith.constant 2.000000e+00 : f32
    %18 = vector.broadcast %cst_14 : f32 to vector<4x128x1xf32>
    %19 = arith.subf %18, %17 : vector<4x128x1xf32>
    %20 = arith.mulf %16, %19 : vector<4x128x1xf32>
    %21 = vector.broadcast %20 : vector<4x128x1xf32> to vector<4x128x128xf32>
    %22 = arith.mulf %13, %21 : vector<4x128x128xf32>
    %c0_15 = arith.constant 0 : index
    %c0_16 = arith.constant 0 : index
    %c0_17 = arith.constant 0 : index
    %c0_18 = arith.constant 0 : index
    %23 = vector.load %arg7[%c0_15, %c0_16, %c0_17, %c0_18] : memref<1x4x128x128xf32, #tpu.memory_space<vmem>>, vector<1x4x128x128xf32>
    %24 = vector.shape_cast %23 : vector<1x4x128x128xf32> to vector<4x128x128xf32>
    %25 = vector.shape_cast %22 : vector<4x128x128xf32> to vector<1x4x128x128xf32>
    tpu.vector_store %arg7[%c0_15, %c0_16, %c0_17, %c0_18], %25 {strides = array<i32>} : memref<1x4x128x128xf32, #tpu.memory_space<vmem>>, vector<1x4x128x128xf32>,
    %cst_19 = arith.constant dense<0.000000e+00> : vector<4x128x64xf32>
    %26 = tpu.matmul %22, %7, %cst_19 {dimension_numbers = #tpu.dot_dimension_numbers<[2], [1], [1], [2], [0, 0, 0, 1, 1, 2], [0], [0]>} : vector<4x128x128xf32>, vector<4x128x64xf32>, vector<4x128x64xf32> -> vector<4x128x64xf32>
    %c0_20 = arith.constant 0 : index
    %c0_21 = arith.constant 0 : index
    %c0_22 = arith.constant 0 : index
    %c0_23 = arith.constant 0 : index
    %27 = vector.load %arg6[%c0_20, %c0_21, %c0_22, %c0_23] : memref<1x4x128x64xf32, #tpu.memory_space<vmem>>, vector<1x4x128x64xf32>
    %28 = vector.shape_cast %27 : vector<1x4x128x64xf32> to vector<4x128x64xf32>
    %29 = vector.shape_cast %26 : vector<4x128x64xf32> to vector<1x4x128x64xf32>
    tpu.vector_store %arg6[%c0_20, %c0_21, %c0_22, %c0_23], %29 {strides = array<i32>} : memref<1x4x128x64xf32, #tpu.memory_space<vmem>>, vector<1x4x128x64xf32>,
    return
  }
  func.func @transform_0(%arg0: i32, %arg1: i32, %arg2: i32) -> (i32, i32, i32, i32) {
    %c0_i32 = arith.constant 0 : i32
    %c0_i32_0 = arith.constant 0 : i32
    return %arg0, %arg1, %arg2, %c0_i32 : i32, i32, i32, i32
  }
  func.func @transform_1(%arg0: i32, %arg1: i32, %arg2: i32) -> (i32, i32, i32, i32) {
    %c0_i32 = arith.constant 0 : i32
    %c0_i32_0 = arith.constant 0 : i32
    %c0_i32_1 = arith.constant 0 : i32
    return %arg0, %arg1, %c0_i32, %c0_i32_0 : i32, i32, i32, i32
  }
  func.func @transform_2(%arg0: i32, %arg1: i32, %arg2: i32) -> (i32, i32, i32, i32) {
    %c0_i32 = arith.constant 0 : i32
    %c0_i32_0 = arith.constant 0 : i32
    %c0_i32_1 = arith.constant 0 : i32
    return %arg0, %arg1, %c0_i32, %c0_i32_0 : i32, i32, i32, i32
  }
  func.func @transform_3(%arg0: i32, %arg1: i32, %arg2: i32) -> (i32, i32, i32, i32) {
    %c0_i32 = arith.constant 0 : i32
    %c0_i32_0 = arith.constant 0 : i32
    return %arg0, %arg1, %arg2, %c0_i32 : i32, i32, i32, i32
  }
  func.func @transform_4(%arg0: i32, %arg1: i32, %arg2: i32) -> (i32, i32, i32, i32) {
    %c0_i32 = arith.constant 0 : i32
    %c0_i32_0 = arith.constant 0 : i32
    return %arg0, %arg1, %arg2, %c0_i32 : i32, i32, i32, i32
  }
}

</mosaic_0001>

<bundles_post_ra>
// kernel: tpu_custom_call.1
= control target key start
LH: loop header
LB: loop body
LE: loop exit
PB: predicated region body
PF: predicated region fallthrough
CT: control target
= control target key end

     0   :  { %10 = vsyncpa [#allocation3], 0  ;;  %s4553_s0 = inlined_call_operand.vmem [shape: f32[2,4,128,64], index: 0, kind: input, shape index: {}]   ;;  %s4554_s1 = inlined_call_operand.vmem [shape: f32[2,4,128,64], index: 1, kind: input, shape index: {}]   ;;  %s4555_s2 = inlined_call_operand.vmem [shape: f32[2,4,128,64], index: 2, kind: input, shape index: {}]   ;;  %s4556_s3 = inlined_call_operand.vmem [shape: f32[2,4,128,64], index: 3, kind: output, shape index: {0}]   ;;  %s4557_s4 = inlined_call_operand.hbm [shape: f32[2,4,128,128], index: 4, kind: output, shape index: {1}]  }
   0x1   :  { %12 = vsyncpa [#allocation3 + $0x1], 0  ;;  %s3228_s15 = smov 0   ;;  %s3230_s16 = smov 0  }
   0x2   :  { %s3232_s17 = smov 0   ;;  %s3234_s18 = smov 0  }
   0x3   :  { %s3236_s19 = smov 0   ;;  %s3238_s20 = smov 0  }
   0x4 LB: > { %s2656_s21 = sadd.s32 4294967295, %s3199_s20   ;;  %s2657_s22 = sadd.s32 4294967294, %s3199_s20   ;;  %s3199_s20 = sphi %s3238_s20, %s18_s20   ;;  %s3195_s19 = sphi %s3236_s19, %s4690_s19   ;;  %s3191_s18 = sphi %s3234_s18, %s4689_s18   ;;  %s3187_s17 = sphi %s3232_s17, %s4688_s17   ;;  %s3183_s16 = sphi %s3230_s16, %s4687_s16   ;;  %s3179_s15 = sphi %s3228_s15, %s4686_s15  }
   0x5   : > { %s37_s23 = sadd.s32 1, %s3195_s19  ;;  %s164_s24 = sadd.s32 1, %s3187_s17 }
   0x6   : > { %p39_p0 = scmp.ge.s32.totalorder %s37_s23, 2  ;;  %p174_p1 = scmp.ne.s32.totalorder %s3187_s17, %s3183_s16 }
   0x7   : > { %p175_p2 = scmp.eq.s32.totalorder %s2656_s21, 1  ;;  %p180_p3 = scmp.ne.s32.totalorder %s3183_s16, %s3179_s15 }
   0x8   : > { %s4692_s23 = smov (%p39_p0, %s37_s23), 0  ;;  %p181_p5 = scmp.eq.s32.totalorder %s2657_s22, 1 }
   0x9   : > { %p3268_p4 = por %p175_p2, %p174_p1  ;;  %s157_s26 = ssub.s32 %s3195_s19, %s4692_s23 }
   0xa   : > { %p2660_p6 = scmp.ge.s32.totalorder %s3199_s20, 1  ;;  %p162_p7 = scmp.eq.s32.totalorder %s157_s26, 0 }
   0xb   : > { %p3275_p8 = por %p181_p5, %p180_p3  ;;  %p246_p9 = scmp.lt.s32.totalorder %s3199_s20, 3 }
   0xc   : > { %s3281_s28 = scalar_select %p162_p7, %s3187_s17, %s164_s24  }
   0xd   : > { %p247_p10 = pnand %p2660_p6, %p246_p9 }
   0xf   : > { %250 = sbr.rel (%p247_p10) target bundleno = 818 (0x332), region = 32 }
  0x14   : > { %p317_p11 = scmp.lt.s32.totalorder %s3191_s18, 1  ;;  %vm627_vm0 = vcmask 523264   ;;  %s312_s14 = sand.u32 1, %s3183_s16  }
  0x15   : > { %s2661_s21 = sshll.u32 %s312_s14, 9 }
  0x16   : > { %s318_s29 = scalar_select %p317_p11, %s3191_s18, 1 }
  0x17   : > { %s4189_s22 = scalar_lea.vmem [#allocation2], %s2661_s21  ;;  %s3141_s21 = scalar_lea.hbm %s4557_s4, 1024 }
  0x18   : > { %s3285_s30 = sshll.u32 %s318_s29, 9  ;;  %s2465_s8 = sshll.u32 %s4189_s22, 4  ;;  %s2466_s8 = int_to_ptr.vmem [resolvable:$true] %s2465_s8 }
  0x19   : > { %s3291_s7 = scalar_lea.vmem %s4554_s1, %s3285_s30  ;;  %s3411_s10 = scalar_lea.vmem %s4553_s0, %s3285_s30 }
  0x1a   : > { %v514_v0 = vld [vmem:[%s3291_s7 + $0x78] sm:$0xff]  ;;  %v513_v4 = vld [vmem:[%s3291_s7 + $0x70] sm:$0xff]  ;;  %v512_v8 = vld [vmem:[%s3291_s7 + $0x68] sm:$0xff]  ;;  %s3838_s13 = scalar_lea.vmem %s4555_s2, %s3285_s30  ;;  %s4348_s29 = scalar_lea.vmem %s4556_s3, %s3285_s30 }
  0x1b   : > { %v530_v1 = vld [vmem:[%s3291_s7 + $0xf8] sm:$0xff]  ;;  %2670 = vmatpush.xpose.msk.msra.mxu0 %vm627_vm0, %v514_v0  ;;  %v529_v5 = vld [vmem:[%s3291_s7 + $0xf0] sm:$0xff]  ;;  %v528_v9 = vld [vmem:[%s3291_s7 + $0xe8] sm:$0xff]  ;;  %s2807_s30 = sshll.u32 %s3191_s18, 9  ;;  %s2443_s18 = scalar_lea.sflag [#allocation3], %s312_s14 }
  0x1c   : > { %v562_v2 = vld [vmem:[%s3291_s7 + $0x1f8] sm:$0xff]  ;;  %2702 = vmatpush.xpose.msk.msra.mxu1 %vm627_vm0, %v530_v1  ;;  %v561_v6 = vld [vmem:[%s3291_s7 + $0x1f0] sm:$0xff]  ;;  %v560_v10 = vld [vmem:[%s3291_s7 + $0x1e8] sm:$0xff] }
  0x1d   : > { %v546_v3 = vld [vmem:[%s3291_s7 + $0x178] sm:$0xff]  ;;  %2766 = vmatpush.xpose.msk.msra.mxu3 %vm627_vm0, %v562_v2  ;;  %v545_v7 = vld [vmem:[%s3291_s7 + $0x170] sm:$0xff]  ;;  %v544_v11 = vld [vmem:[%s3291_s7 + $0x168] sm:$0xff] }
  0x1e   : > { %2734 = vmatpush.xpose.msk.msra.mxu2 %vm627_vm0, %v546_v3  ;;  %v511_v12 = vld [vmem:[%s3291_s7 + $0x60] sm:$0xff]  ;;  %v510_v16 = vld [vmem:[%s3291_s7 + $0x58] sm:$0xff]  ;;  %v509_v20 = vld [vmem:[%s3291_s7 + $0x50] sm:$0xff] }
  0x1f   : > { %2671 = vmatpush.xpose.msk.msra.mxu0 %vm627_vm0, %v513_v4  ;;  %v527_v13 = vld [vmem:[%s3291_s7 + $0xe0] sm:$0xff]  ;;  %v526_v17 = vld [vmem:[%s3291_s7 + $0xd8] sm:$0xff]  ;;  %v525_v21 = vld [vmem:[%s3291_s7 + $0xd0] sm:$0xff] }
  0x20   : > { %2703 = vmatpush.xpose.msk.msra.mxu1 %vm627_vm0, %v529_v5  ;;  %v559_v14 = vld [vmem:[%s3291_s7 + $0x1e0] sm:$0xff]  ;;  %v558_v18 = vld [vmem:[%s3291_s7 + $0x1d8] sm:$0xff]  ;;  %v557_v22 = vld [vmem:[%s3291_s7 + $0x1d0] sm:$0xff] }
  0x21   : > { %2767 = vmatpush.xpose.msk.msra.mxu3 %vm627_vm0, %v561_v6  ;;  %v543_v15 = vld [vmem:[%s3291_s7 + $0x160] sm:$0xff]  ;;  %v542_v19 = vld [vmem:[%s3291_s7 + $0x158] sm:$0xff]  ;;  %v541_v23 = vld [vmem:[%s3291_s7 + $0x150] sm:$0xff] }
  0x22   : > { %2735 = vmatpush.xpose.msk.msra.mxu2 %vm627_vm0, %v545_v7  ;;  %v508_v24 = vld [vmem:[%s3291_s7 + $0x48] sm:$0xff]  ;;  %v507_v28 = vld [vmem:[%s3291_s7 + $0x40] sm:$0xff]  ;;  %v506_v32 = vld [vmem:[%s3291_s7 + $0x38] sm:$0xff] }
  0x23   : > { %2672 = vmatpush.xpose.msk.msra.mxu0 %vm627_vm0, %v512_v8  ;;  %v524_v25 = vld [vmem:[%s3291_s7 + $0xc8] sm:$0xff]  ;;  %v523_v29 = vld [vmem:[%s3291_s7 + $0xc0] sm:$0xff]  ;;  %v522_v33 = vld [vmem:[%s3291_s7 + $0xb8] sm:$0xff] }
  0x24   : > { %2704 = vmatpush.xpose.msk.msra.mxu1 %vm627_vm0, %v528_v9  ;;  %v556_v26 = vld [vmem:[%s3291_s7 + $0x1c8] sm:$0xff]  ;;  %v555_v30 = vld [vmem:[%s3291_s7 + $0x1c0] sm:$0xff]  ;;  %v554_v34 = vld [vmem:[%s3291_s7 + $0x1b8] sm:$0xff] }
  0x25   : > { %2768 = vmatpush.xpose.msk.msra.mxu3 %vm627_vm0, %v560_v10  ;;  %v540_v27 = vld [vmem:[%s3291_s7 + $0x148] sm:$0xff]  ;;  %v539_v31 = vld [vmem:[%s3291_s7 + $0x140] sm:$0xff]  ;;  %v538_v35 = vld [vmem:[%s3291_s7 + $0x138] sm:$0xff] }
  0x26   : > { %2736 = vmatpush.xpose.msk.msra.mxu2 %vm627_vm0, %v544_v11  ;;  %v505_v36 = vld [vmem:[%s3291_s7 + $0x30] sm:$0xff]  ;;  %v504_v40 = vld [vmem:[%s3291_s7 + $0x28] sm:$0xff]  ;;  %v503_v44 = vld [vmem:[%s3291_s7 + $0x20] sm:$0xff] }
  0x27   : > { %2673 = vmatpush.xpose.msk.msra.mxu0 %vm627_vm0, %v511_v12  ;;  %v521_v37 = vld [vmem:[%s3291_s7 + $0xb0] sm:$0xff]  ;;  %v520_v41 = vld [vmem:[%s3291_s7 + $0xa8] sm:$0xff]  ;;  %v519_v45 = vld [vmem:[%s3291_s7 + $0xa0] sm:$0xff] }
  0x28   : > { %2705 = vmatpush.xpose.msk.msra.mxu1 %vm627_vm0, %v527_v13  ;;  %v553_v38 = vld [vmem:[%s3291_s7 + $0x1b0] sm:$0xff]  ;;  %v552_v42 = vld [vmem:[%s3291_s7 + $0x1a8] sm:$0xff]  ;;  %v551_v46 = vld [vmem:[%s3291_s7 + $0x1a0] sm:$0xff] }
  0x29   : > { %2769 = vmatpush.xpose.msk.msra.mxu3 %vm627_vm0, %v559_v14  ;;  %v537_v39 = vld [vmem:[%s3291_s7 + $0x130] sm:$0xff]  ;;  %v536_v43 = vld [vmem:[%s3291_s7 + $0x128] sm:$0xff]  ;;  %v535_v47 = vld [vmem:[%s3291_s7 + $0x120] sm:$0xff] }
  0x2a   : > { %2737 = vmatpush.xpose.msk.msra.mxu2 %vm627_vm0, %v543_v15  ;;  %v502_v48 = vld [vmem:[%s3291_s7 + $0x18] sm:$0xff]  ;;  %v501_v52 = vld [vmem:[%s3291_s7 + $0x10] sm:$0xff]  ;;  %v500_v56 = vld [vmem:[%s3291_s7 + $0x8] sm:$0xff] }
  0x2b   : > { %2674 = vmatpush.xpose.msk.msra.mxu0 %vm627_vm0, %v510_v16  ;;  %v518_v49 = vld [vmem:[%s3291_s7 + $0x98] sm:$0xff]  ;;  %v517_v53 = vld [vmem:[%s3291_s7 + $0x90] sm:$0xff]  ;;  %v516_v57 = vld [vmem:[%s3291_s7 + $0x88] sm:$0xff] }
  0x2c   : > { %2706 = vmatpush.xpose.msk.msra.mxu1 %vm627_vm0, %v526_v17  ;;  %v550_v50 = vld [vmem:[%s3291_s7 + $0x198] sm:$0xff]  ;;  %v549_v54 = vld [vmem:[%s3291_s7 + $0x190] sm:$0xff]  ;;  %v548_v58 = vld [vmem:[%s3291_s7 + $0x188] sm:$0xff] }
  0x2d   : > { %2770 = vmatpush.xpose.msk.msra.mxu3 %vm627_vm0, %v558_v18  ;;  %v534_v51 = vld [vmem:[%s3291_s7 + $0x118] sm:$0xff]  ;;  %v533_v55 = vld [vmem:[%s3291_s7 + $0x110] sm:$0xff]  ;;  %v532_v59 = vld [vmem:[%s3291_s7 + $0x108] sm:$0xff] }
  0x2e   : > { %2738 = vmatpush.xpose.msk.msra.mxu2 %vm627_vm0, %v542_v19  ;;  %v499_v60 = vld [vmem:[%s3291_s7] sm:$0xff]  ;;  %v372_v8 = vld [vmem:[%s3411_s10 + $0x8] sm:$0xff]  ;;  %v373_v16 = vld [vmem:[%s3411_s10 + $0x10] sm:$0xff] }
  0x2f   : > { %2675 = vmatpush.xpose.msk.msra.mxu0 %vm627_vm0, %v509_v20  ;;  %v371_v61 = vld [vmem:[%s3411_s10] sm:$0xff]  ;;  %v388_v9 = vld [vmem:[%s3411_s10 + $0x88] sm:$0xff]  ;;  %v436_v12 = vmul.f32 0.125, %v372_v8  ;;  %v389_v17 = vld [vmem:[%s3411_s10 + $0x90] sm:$0xff]  ;;  %v437_v20 = vmul.f32 0.125, %v373_v16 }
  0x30   : > { %2707 = vmatpush.xpose.msk.msra.mxu1 %vm627_vm0, %v525_v21  ;;  %v387_v62 = vld [vmem:[%s3411_s10 + $0x80] sm:$0xff]  ;;  %v435_v4 = vmul.f32 0.125, %v371_v61  ;;  %v420_v10 = vld [vmem:[%s3411_s10 + $0x188] sm:$0xff]  ;;  %v452_v13 = vmul.f32 0.125, %v388_v9  ;;  %v421_v18 = vld [vmem:[%s3411_s10 + $0x190] sm:$0xff]  ;;  %v453_v21 = vmul.f32 0.125, %v389_v17 }
  0x31   : > { %2771 = vmatpush.xpose.msk.msra.mxu3 %vm627_vm0, %v557_v22  ;;  %v515_v63 = vld [vmem:[%s3291_s7 + $0x80] sm:$0xff]  ;;  %v451_v5 = vmul.f32 0.125, %v387_v62  ;;  %v404_v11 = vld [vmem:[%s3411_s10 + $0x108] sm:$0xff]  ;;  %v484_v14 = vmul.f32 0.125, %v420_v10  ;;  %v405_v19 = vld [vmem:[%s3411_s10 + $0x110] sm:$0xff]  ;;  %v485_v22 = vmul.f32 0.125, %v421_v18 }
  0x32   : > { %2739 = vmatpush.xpose.msk.msra.mxu2 %vm627_vm0, %v541_v23  ;;  %v419_v0 = vld [vmem:[%s3411_s10 + $0x180] sm:$0xff]  ;;  %v468_v15 = vmul.f32 0.125, %v404_v11  ;;  %v469_v23 = vmul.f32 0.125, %v405_v19  ;;  %v380_v8 = vld [vmem:[%s3411_s10 + $0x48] sm:$0xff]  ;;  %v381_v16 = vld [vmem:[%s3411_s10 + $0x50] sm:$0xff] }
  0x33   : > { %2676 = vmatpush.xpose.msk.msra.mxu0 %vm627_vm0, %v508_v24  ;;  %v403_v1 = vld [vmem:[%s3411_s10 + $0x100] sm:$0xff]  ;;  %v483_v6 = vmul.f32 0.125, %v419_v0  ;;  %v374_v24 = vld [vmem:[%s3411_s10 + $0x18] sm:$0xff]  ;;  %v396_v9 = vld [vmem:[%s3411_s10 + $0xc8] sm:$0xff] }
  0x34   : > { %2708 = vmatpush.xpose.msk.msra.mxu1 %vm627_vm0, %v524_v25  ;;  %v547_v2 = vld [vmem:[%s3291_s7 + $0x180] sm:$0xff]  ;;  %v467_v7 = vmul.f32 0.125, %v403_v1  ;;  %v390_v25 = vld [vmem:[%s3411_s10 + $0x98] sm:$0xff]  ;;  %v412_v10 = vld [vmem:[%s3411_s10 + $0x148] sm:$0xff] }
  0x35   : > { %2772 = vmatpush.xpose.msk.msra.mxu3 %vm627_vm0, %v556_v26  ;;  %v531_v3 = vld [vmem:[%s3291_s7 + $0x100] sm:$0xff]  ;;  %v406_v26 = vld [vmem:[%s3411_s10 + $0x118] sm:$0xff]  ;;  %v428_v11 = vld [vmem:[%s3411_s10 + $0x1c8] sm:$0xff]  ;;  %s2464_s7 = scalar_lea.hbm %s4557_s4, %s2807_s30 }
  0x36   : > { %2740 = vmatpush.xpose.msk.msra.mxu2 %vm627_vm0, %v540_v27  ;;  %v422_v27 = vld [vmem:[%s3411_s10 + $0x198] sm:$0xff]  ;;  %v379_v0 = vld [vmem:[%s3411_s10 + $0x40] sm:$0xff]  ;;  %v397_v17 = vld [vmem:[%s3411_s10 + $0xd0] sm:$0xff]  ;;  %s2467_s9 = sshll.u32 %s2464_s7, 4  ;;  %s2468_s9 = int_to_ptr.hbm [resolvable:$true] %s2467_s9 }
  0x37   : > { %2677 = vmatpush.xpose.msk.msra.mxu0 %vm627_vm0, %v507_v28  ;;  %v438_v28 = vmul.f32 0.125, %v374_v24  ;;  %v395_v1 = vld [vmem:[%s3411_s10 + $0xc0] sm:$0xff]  ;;  %v413_v18 = vld [vmem:[%s3411_s10 + $0x150] sm:$0xff]  ;;  %v382_v24 = vld [vmem:[%s3411_s10 + $0x58] sm:$0xff] }
  0x38   : > { %2709 = vmatpush.xpose.msk.msra.mxu1 %vm627_vm0, %v523_v29  ;;  %v454_v29 = vmul.f32 0.125, %v390_v25  ;;  %v429_v19 = vld [vmem:[%s3411_s10 + $0x1d0] sm:$0xff]  ;;  %v398_v25 = vld [vmem:[%s3411_s10 + $0xd8] sm:$0xff] }
  0x39   : > { %2773 = vmatpush.xpose.msk.msra.mxu3 %vm627_vm0, %v555_v30  ;;  %v470_v30 = vmul.f32 0.125, %v406_v26  ;;  %v414_v26 = vld [vmem:[%s3411_s10 + $0x158] sm:$0xff] }
  0x3a   : > { %2741 = vmatpush.xpose.msk.msra.mxu2 %vm627_vm0, %v539_v31  ;;  %v486_v31 = vmul.f32 0.125, %v422_v27  ;;  %v430_v27 = vld [vmem:[%s3411_s10 + $0x1d8] sm:$0xff] }
  0x3b   : > { %2678 = vmatpush.xpose.msk.msra.mxu0 %vm627_vm0, %v506_v32  ;;  %v375_v32 = vld [vmem:[%s3411_s10 + $0x20] sm:$0xff] }
  0x3c   : > { %2710 = vmatpush.xpose.msk.msra.mxu1 %vm627_vm0, %v522_v33  ;;  %v391_v33 = vld [vmem:[%s3411_s10 + $0xa0] sm:$0xff] }
  0x3d   : > { %2774 = vmatpush.xpose.msk.msra.mxu3 %vm627_vm0, %v554_v34  ;;  %v407_v34 = vld [vmem:[%s3411_s10 + $0x120] sm:$0xff] }
  0x3e   : > { %2742 = vmatpush.xpose.msk.msra.mxu2 %vm627_vm0, %v538_v35  ;;  %v423_v35 = vld [vmem:[%s3411_s10 + $0x1a0] sm:$0xff] }
  0x3f   : > { %2679 = vmatpush.xpose.msk.msra.mxu0 %vm627_vm0, %v505_v36  ;;  %v439_v36 = vmul.f32 0.125, %v375_v32  ;;  %v383_v32 = vld [vmem:[%s3411_s10 + $0x60] sm:$0xff] }
  0x40   : > { %2711 = vmatpush.xpose.msk.msra.mxu1 %vm627_vm0, %v521_v37  ;;  %v455_v37 = vmul.f32 0.125, %v391_v33  ;;  %v399_v33 = vld [vmem:[%s3411_s10 + $0xe0] sm:$0xff] }
  0x41   : > { %2775 = vmatpush.xpose.msk.msra.mxu3 %vm627_vm0, %v553_v38  ;;  %v471_v38 = vmul.f32 0.125, %v407_v34  ;;  %v415_v34 = vld [vmem:[%s3411_s10 + $0x160] sm:$0xff] }
  0x42   : > { %2743 = vmatpush.xpose.msk.msra.mxu2 %vm627_vm0, %v537_v39  ;;  %v487_v39 = vmul.f32 0.125, %v423_v35  ;;  %v431_v35 = vld [vmem:[%s3411_s10 + $0x1e0] sm:$0xff] }
  0x43   : > { %2680 = vmatpush.xpose.msk.msra.mxu0 %vm627_vm0, %v504_v40  ;;  %v376_v40 = vld [vmem:[%s3411_s10 + $0x28] sm:$0xff] }
  0x44   : > { %2712 = vmatpush.xpose.msk.msra.mxu1 %vm627_vm0, %v520_v41  ;;  %v392_v41 = vld [vmem:[%s3411_s10 + $0xa8] sm:$0xff] }
  0x45   : > { %2776 = vmatpush.xpose.msk.msra.mxu3 %vm627_vm0, %v552_v42  ;;  %v408_v42 = vld [vmem:[%s3411_s10 + $0x128] sm:$0xff] }
  0x46   : > { %2744 = vmatpush.xpose.msk.msra.mxu2 %vm627_vm0, %v536_v43  ;;  %v424_v43 = vld [vmem:[%s3411_s10 + $0x1a8] sm:$0xff] }
  0x47   : > { %2681 = vmatpush.xpose.msk.msra.mxu0 %vm627_vm0, %v503_v44  ;;  %v440_v44 = vmul.f32 0.125, %v376_v40  ;;  %v384_v40 = vld [vmem:[%s3411_s10 + $0x68] sm:$0xff] }
  0x48   : > { %2713 = vmatpush.xpose.msk.msra.mxu1 %vm627_vm0, %v519_v45  ;;  %v456_v45 = vmul.f32 0.125, %v392_v41  ;;  %v416_v41 = vld [vmem:[%s3411_s10 + $0x168] sm:$0xff] }
  0x49   : > { %2777 = vmatpush.xpose.msk.msra.mxu3 %vm627_vm0, %v551_v46  ;;  %v472_v46 = vmul.f32 0.125, %v408_v42  ;;  %v448_v42 = vmul.f32 0.125, %v384_v40 }
  0x4a   : > { %2745 = vmatpush.xpose.msk.msra.mxu2 %vm627_vm0, %v535_v47  ;;  %v488_v47 = vmul.f32 0.125, %v424_v43  ;;  %v480_v43 = vmul.f32 0.125, %v416_v41 }
  0x4b   : > { %2682 = vmatpush.xpose.msk.msra.mxu0 %vm627_vm0, %v502_v48  ;;  %v393_v48 = vld [vmem:[%s3411_s10 + $0xb0] sm:$0xff] }
  0x4c   : > { %2714 = vmatpush.xpose.msk.msra.mxu1 %vm627_vm0, %v518_v49  ;;  %v377_v49 = vld [vmem:[%s3411_s10 + $0x30] sm:$0xff] }
  0x4d   : > { %2778 = vmatpush.xpose.msk.msra.mxu3 %vm627_vm0, %v550_v50  ;;  %v409_v50 = vld [vmem:[%s3411_s10 + $0x130] sm:$0xff] }
  0x4e   : > { %2746 = vmatpush.xpose.msk.msra.mxu2 %vm627_vm0, %v534_v51  ;;  %v425_v51 = vld [vmem:[%s3411_s10 + $0x1b0] sm:$0xff] }
  0x4f   : > { %2683 = vmatpush.xpose.msk.msra.mxu0 %vm627_vm0, %v501_v52  ;;  %v457_v52 = vmul.f32 0.125, %v393_v48  ;;  %v385_v48 = vld [vmem:[%s3411_s10 + $0x70] sm:$0xff] }
  0x50   : > { %2715 = vmatpush.xpose.msk.msra.mxu1 %vm627_vm0, %v517_v53  ;;  %v441_v53 = vmul.f32 0.125, %v377_v49  ;;  %v417_v49 = vld [vmem:[%s3411_s10 + $0x170] sm:$0xff] }
  0x51   : > { %2779 = vmatpush.xpose.msk.msra.mxu3 %vm627_vm0, %v549_v54  ;;  %v473_v54 = vmul.f32 0.125, %v409_v50  ;;  %v449_v50 = vmul.f32 0.125, %v385_v48 }
  0x52   : > { %2747 = vmatpush.xpose.msk.msra.mxu2 %vm627_vm0, %v533_v55  ;;  %v489_v55 = vmul.f32 0.125, %v425_v51  ;;  %v481_v51 = vmul.f32 0.125, %v417_v49 }
  0x53   : > { %2684 = vmatpush.xpose.msk.msra.mxu0 %vm627_vm0, %v500_v56  ;;  %v394_v56 = vld [vmem:[%s3411_s10 + $0xb8] sm:$0xff] }
  0x54   : > { %2716 = vmatpush.xpose.msk.msra.mxu1 %vm627_vm0, %v516_v57  ;;  %v378_v57 = vld [vmem:[%s3411_s10 + $0x38] sm:$0xff] }
  0x55   : > { %2780 = vmatpush.xpose.msk.msra.mxu3 %vm627_vm0, %v548_v58  ;;  %v410_v58 = vld [vmem:[%s3411_s10 + $0x138] sm:$0xff]  ;;  %v442_v61 = vmul.f32 0.125, %v378_v57 }
  0x56   : > { %2748 = vmatpush.xpose.msk.msra.mxu2 %vm627_vm0, %v532_v59  ;;  %v426_v59 = vld [vmem:[%s3411_s10 + $0x1b8] sm:$0xff]  ;;  %v474_v62 = vmul.f32 0.125, %v410_v58 }
  0x57   : > { %2685 = vmatpush.xpose.msk.msra.mxu0 %vm627_vm0, %v499_v60  ;;  %v458_v60 = vmul.f32 0.125, %v394_v56  ;;  %v402_v56 = vld [vmem:[%s3411_s10 + $0xf8] sm:$0xff] }
  0x58   : > { %2717 = vmatpush.xpose.msk.msra.mxu1 %vm627_vm0, %v515_v63  ;;  %v490_v63 = vmul.f32 0.125, %v426_v59  ;;  %v434_v57 = vld [vmem:[%s3411_s10 + $0x1f8] sm:$0xff]  ;;  %v466_v58 = vmul.f32 0.125, %v402_v56 }
  0x59   : > { %2781 = vmatpush.xpose.msk.msra.mxu3 %vm627_vm0, %v547_v2  ;;  %v411_v2 = vld [vmem:[%s3411_s10 + $0x140] sm:$0xff]  ;;  %v498_v59 = vmul.f32 0.125, %v434_v57 }
  0x5a   : > { %2749 = vmatpush.xpose.msk.msra.mxu2 %vm627_vm0, %v531_v3  ;;  %2686 = vmatmul.msk.f32.vlgmr.msra.gmra.mxu0 %vm627_vm0, %v435_v4  ;;  %v427_v3 = vld [vmem:[%s3411_s10 + $0x1c0] sm:$0xff]  ;;  %v443_v4 = vmul.f32 0.125, %v379_v0  ;;  %v386_v0 = vld [vmem:[%s3411_s10 + $0x78] sm:$0xff] }
  0x5b   : > { %2718 = vmatmul.msk.f32.vlgmr.msra.gmra.mxu1 %vm627_vm0, %v451_v5  ;;  %v459_v5 = vmul.f32 0.125, %v395_v1 }
  0x5c   : > { %2782 = vmatmul.msk.f32.vlgmr.msra.gmra.mxu3 %vm627_vm0, %v483_v6  ;;  %v475_v6 = vmul.f32 0.125, %v411_v2 }
  0x5d   : > { %2750 = vmatmul.msk.f32.vlgmr.msra.gmra.mxu2 %vm627_vm0, %v467_v7  ;;  %v491_v7 = vmul.f32 0.125, %v427_v3  ;;  %v450_v3 = vmul.f32 0.125, %v386_v0 }
  0x62   : > { %2687 = vmatmul.msk.f32.gmra.mxu0 %vm627_vm0, %v436_v12  ;;  %v444_v12 = vmul.f32 0.125, %v380_v8 }
  0x63   : > { %2719 = vmatmul.msk.f32.gmra.mxu1 %vm627_vm0, %v452_v13  ;;  %v460_v13 = vmul.f32 0.125, %v396_v9 }
  0x64   : > { %2783 = vmatmul.msk.f32.gmra.mxu3 %vm627_vm0, %v484_v14  ;;  %v476_v14 = vmul.f32 0.125, %v412_v10 }
  0x65   : > { %2751 = vmatmul.msk.f32.gmra.mxu2 %vm627_vm0, %v468_v15  ;;  %v492_v15 = vmul.f32 0.125, %v428_v11 }
  0x6a   : > { %2688 = vmatmul.msk.f32.gmra.mxu0 %vm627_vm0, %v437_v20  ;;  %v445_v20 = vmul.f32 0.125, %v381_v16 }
  0x6b   : > { %2720 = vmatmul.msk.f32.gmra.mxu1 %vm627_vm0, %v453_v21  ;;  %v461_v21 = vmul.f32 0.125, %v397_v17 }
  0x6c   : > { %2784 = vmatmul.msk.f32.gmra.mxu3 %vm627_vm0, %v485_v22  ;;  %v477_v22 = vmul.f32 0.125, %v413_v18 }
  0x6d   : > { %2752 = vmatmul.msk.f32.gmra.mxu2 %vm627_vm0, %v469_v23  ;;  %v493_v23 = vmul.f32 0.125, %v429_v19 }
  0x72   : > { %2689 = vmatmul.msk.f32.gmra.mxu0 %vm627_vm0, %v438_v28  ;;  %v446_v28 = vmul.f32 0.125, %v382_v24 }
  0x73   : > { %2721 = vmatmul.msk.f32.gmra.mxu1 %vm627_vm0, %v454_v29  ;;  %v462_v29 = vmul.f32 0.125, %v398_v25 }
  0x74   : > { %2785 = vmatmul.msk.f32.gmra.mxu3 %vm627_vm0, %v486_v31  ;;  %v494_v31 = vmul.f32 0.125, %v430_v27 }
  0x75   : > { %2753 = vmatmul.msk.f32.gmra.mxu2 %vm627_vm0, %v470_v30  ;;  %v478_v30 = vmul.f32 0.125, %v414_v26 }
  0x7a   : > { %2690 = vmatmul.msk.f32.gmra.mxu0 %vm627_vm0, %v439_v36  ;;  %v447_v36 = vmul.f32 0.125, %v383_v32 }
  0x7b   : > { %2722 = vmatmul.msk.f32.gmra.mxu1 %vm627_vm0, %v455_v37  ;;  %v463_v37 = vmul.f32 0.125, %v399_v33 }
  0x7c   : > { %2786 = vmatmul.msk.f32.gmra.mxu3 %vm627_vm0, %v487_v39  ;;  %v495_v39 = vmul.f32 0.125, %v431_v35 }
  0x7d   : > { %2754 = vmatmul.msk.f32.gmra.mxu2 %vm627_vm0, %v471_v38  ;;  %v479_v38 = vmul.f32 0.125, %v415_v34 }
  0x82   : > { %2691 = vmatmul.msk.f32.gmra.mxu0 %vm627_vm0, %v440_v44  ;;  %v400_v44 = vld [vmem:[%s3411_s10 + $0xe8] sm:$0xff] }
  0x83   : > { %2723 = vmatmul.msk.f32.gmra.mxu1 %vm627_vm0, %v456_v45  ;;  %v464_v45 = vmul.f32 0.125, %v400_v44 }
  0x84   : > { %2787 = vmatmul.msk.f32.gmra.mxu3 %vm627_vm0, %v488_v47 }
  0x85   : > { %2755 = vmatmul.msk.f32.gmra.mxu2 %vm627_vm0, %v472_v46  ;;  %v432_v46 = vld [vmem:[%s3411_s10 + $0x1e8] sm:$0xff] }
  0x86   : > { %v496_v47 = vmul.f32 0.125, %v432_v46 }
  0x8a   : > { %2692 = vmatmul.msk.f32.gmra.mxu0 %vm627_vm0, %v441_v53  ;;  %v433_v53 = vld [vmem:[%s3411_s10 + $0x1f0] sm:$0xff] }
  0x8b   : > { %2724 = vmatmul.msk.f32.gmra.mxu1 %vm627_vm0, %v457_v52  ;;  %v401_v52 = vld [vmem:[%s3411_s10 + $0xf0] sm:$0xff] }
  0x8c   : > { %2788 = vmatmul.msk.f32.gmra.mxu3 %vm627_vm0, %v489_v55  ;;  %v497_v55 = vmul.f32 0.125, %v433_v53 }
  0x8d   : > { %2756 = vmatmul.msk.f32.gmra.mxu2 %vm627_vm0, %v473_v54  ;;  %v465_v54 = vmul.f32 0.125, %v401_v52 }
  0x92   : > { %2693 = vmatmul.msk.f32.gmra.mxu0 %vm627_vm0, %v442_v61 }
  0x93   : > { %2725 = vmatmul.msk.f32.gmra.mxu1 %vm627_vm0, %v458_v60 }
  0x94   : > { %2789 = vmatmul.msk.f32.gmra.mxu3 %vm627_vm0, %v490_v63 }
  0x95   : > { %2757 = vmatmul.msk.f32.gmra.mxu2 %vm627_vm0, %v474_v62 }
  0x9a   : > { %2694 = vmatmul.msk.f32.gmra.mxu0 %vm627_vm0, %v443_v4  ;;  %v418_v4 = vld [vmem:[%s3411_s10 + $0x178] sm:$0xff]  ;;  %s3135_s10 = sshra.s32 %s2468_s9, 4  ;;  %s3136_s10 = int_to_ptr.hbm [resolvable:$true] %s3135_s10 }
  0x9b   : > { %2726 = vmatmul.msk.f32.gmra.mxu1 %vm627_vm0, %v459_v5  ;;  %v482_v5 = vmul.f32 0.125, %v418_v4  ;;  %s3137_s11 = scalar_lea.hbm %s3136_s10, 512  ;;  %p3142_p1 = scmp.lt.s32.totalorder %s3136_s10, %s4557_s4 }
  0x9c   : > { %2790 = vmatmul.msk.f32.gmra.mxu3 %vm627_vm0, %v491_v7  ;;  %p3138_p12 = scmp.ne.s32.totalorder %s3136_s10, %s3137_s11  ;;  %p3143_p2 = scmp.lt.s32.totalorder %s3141_s21, %s3137_s11 }
  0x9d   : > { %2758 = vmatmul.msk.f32.gmra.mxu2 %vm627_vm0, %v475_v6 }
  0x9e   : > { %p3139_p13 = pnand %p3138_p12, %p3268_p4  ;;  %p3144_p3 = por %p3143_p2, %p3142_p1 }
  0xa0   : > { %p3140_p0 = pneg %p3139_p13 }
  0xa2   : > { %2695 = vmatmul.msk.f32.gmra.mxu0 %vm627_vm0, %v444_v12  ;;  %p3145_p5 = pnand %p3144_p3, %p3140_p0 }
  0xa3   : > { %2727 = vmatmul.msk.f32.gmra.mxu1 %vm627_vm0, %v460_v13 }
  0xa4   : > { %2791 = vmatmul.msk.f32.gmra.mxu3 %vm627_vm0, %v492_v15 }
  0xa5   : > { %2759 = vmatmul.msk.f32.gmra.mxu2 %vm627_vm0, %v476_v14 }
  0xaa   : > { %2696 = vmatmul.msk.f32.gmra.mxu0 %vm627_vm0, %v445_v20 }
  0xab   : > { %2728 = vmatmul.msk.f32.gmra.mxu1 %vm627_vm0, %v461_v21 }
  0xac   : > { %2792 = vmatmul.msk.f32.gmra.mxu3 %vm627_vm0, %v493_v23 }
  0xad   : > { %2760 = vmatmul.msk.f32.gmra.mxu2 %vm627_vm0, %v477_v22 }
  0xb2   : > { %2697 = vmatmul.msk.f32.gmra.mxu0 %vm627_vm0, %v446_v28 }
  0xb3   : > { %2729 = vmatmul.msk.f32.gmra.mxu1 %vm627_vm0, %v462_v29 }
  0xb4   : > { %2793 = vmatmul.msk.f32.gmra.mxu3 %vm627_vm0, %v494_v31 }
  0xb5   : > { %2761 = vmatmul.msk.f32.gmra.mxu2 %vm627_vm0, %v478_v30 }
  0xba   : > { %2698 = vmatmul.msk.f32.gmra.mxu0 %vm627_vm0, %v447_v36 }
  0xbb   : > { %2730 = vmatmul.msk.f32.gmra.mxu1 %vm627_vm0, %v463_v37 }
  0xbc   : > { %2794 = vmatmul.msk.f32.gmra.mxu3 %vm627_vm0, %v495_v39 }
  0xbd   : > { %2762 = vmatmul.msk.f32.gmra.mxu2 %vm627_vm0, %v479_v38 }
  0xc2   : > { %2699 = vmatmul.msk.f32.gmra.mxu0 %vm627_vm0, %v448_v42 }
  0xc3   : > { %2731 = vmatmul.msk.f32.gmra.mxu1 %vm627_vm0, %v464_v45 }
  0xc4   : > { %2795 = vmatmul.msk.f32.gmra.mxu3 %vm627_vm0, %v496_v47 }
  0xc5   : > { %2763 = vmatmul.msk.f32.gmra.mxu2 %vm627_vm0, %v480_v43 }
  0xca   : > { %2700 = vmatmul.msk.f32.gmra.mxu0 %vm627_vm0, %v449_v50 }
  0xcb   : > { %2732 = vmatmul.msk.f32.gmra.mxu1 %vm627_vm0, %v465_v54 }
  0xcc   : > { %2796 = vmatmul.msk.f32.gmra.mxu3 %vm627_vm0, %v497_v55 }
  0xcd   : > { %2764 = vmatmul.msk.f32.gmra.mxu2 %vm627_vm0, %v481_v51 }
  0xd2   : > { %2701 = vmatmul.msk.f32.gmra.mxu0 %vm627_vm0, %v450_v3 }
  0xd3   : > { %2733 = vmatmul.msk.f32.gmra.mxu1 %vm627_vm0, %v466_v58 }
  0xd4   : > { %2797 = vmatmul.msk.f32.gmra.mxu3 %vm627_vm0, %v498_v59 }
  0xd5   : > { %2765 = vmatmul.msk.f32.gmra.mxu2 %vm627_vm0, %v482_v5 }
  0xd7   : > { %v3551_v60 = vpop.f32.mrf.mxu0 }
  0xd8   : > { %v3553_v61 = vpop.f32.mrf.mxu1  ;;  %1272 = vmax.xlane.f32.xlu0 %v3551_v60 }
  0xd9   : > { %1304 = vmax.xlane.f32.xlu2 %v3553_v61 }
  0xdf   : > { %v3557_v62 = vpop.f32.mrf.mxu3  ;;  %v3563_v1 = vpop.f32.mrf.mxu0 }
  0xe0   : > { %v3559_v63 = vpop.f32.mrf.mxu2  ;;  %1368 = vmax.xlane.f32.xlu1 %v3557_v62  ;;  %v3565_v2 = vpop.f32.mrf.mxu1 }
  0xe1   : > { %1306 = vmax.xlane.f32.xlu2 %v3565_v2  ;;  %1336 = vmax.xlane.f32.xlu0 %v3559_v63 }
  0xe7   : > { %v3572_v6 = vpop.f32.mrf.mxu3  ;;  %v3577_v8 = vpop.f32.mrf.mxu0 }
  0xe8   : > { %v3574_v7 = vpop.f32.mrf.mxu2  ;;  %1370 = vmax.xlane.f32.xlu1 %v3572_v6  ;;  %v3579_v9 = vpop.f32.mrf.mxu1 }
  0xe9   : > { %1308 = vmax.xlane.f32.xlu2 %v3579_v9  ;;  %1274 = vmax.xlane.f32.xlu0 %v3563_v1 }
  0xef   : > { %v3586_v11 = vpop.f32.mrf.mxu0  ;;  %v3592_v13 = vpop.f32.mrf.mxu3 }
  0xf0   : > { %v3583_v10 = vpop.f32.mrf.mxu2  ;;  %1276 = vmax.xlane.f32.xlu1 %v3577_v8  ;;  %v3588_v12 = vpop.f32.mrf.mxu1 }
  0xf1   : > { %1310 = vmax.xlane.f32.xlu2 %v3588_v12  ;;  %1338 = vmax.xlane.f32.xlu0 %v3574_v7 }
  0xf7   : > { %v3597_v15 = vpop.f32.mrf.mxu0  ;;  %v3603_v17 = vpop.f32.mrf.mxu3 }
  0xf8   : > { %v3594_v14 = vpop.f32.mrf.mxu2  ;;  %1372 = vmax.xlane.f32.xlu1 %v3592_v13  ;;  %v3599_v16 = vpop.f32.mrf.mxu1 }
  0xf9   : > { %1340 = vmax.xlane.f32.xlu0 %v3583_v10  ;;  %1280 = vmax.xlane.f32.xlu2 %v3597_v15 }
  0xff   : > { %v3612_v20 = vpop.f32.mrf.mxu0  ;;  %v3614_v21 = vpop.f32.mrf.mxu3 }
 0x100   : > { %1278 = vmax.xlane.f32.xlu1 %v3586_v11  ;;  %v3606_v18 = vpop.f32.mrf.mxu2  ;;  %v3610_v19 = vpop.f32.mrf.mxu1 }
 0x101   : > { %1342 = vmax.xlane.f32.xlu0 %v3594_v14  ;;  %1312 = vmax.xlane.f32.xlu2 %v3599_v16 }
 0x107   : > { %v3623_v24 = vpop.f32.mrf.mxu0  ;;  %v3626_v25 = vpop.f32.mrf.mxu3 }
 0x108   : > { %1374 = vmax.xlane.f32.xlu1 %v3603_v17  ;;  %v3619_v22 = vpop.f32.mrf.mxu2  ;;  %v3621_v23 = vpop.f32.mrf.mxu1 }
 0x109   : > { %1344 = vmax.xlane.f32.xlu0 %v3606_v18  ;;  %1282 = vmax.xlane.f32.xlu2 %v3612_v20 }
 0x10f   : > { %v3634_v28 = vpop.f32.mrf.mxu0  ;;  %v3637_v29 = vpop.f32.mrf.mxu3 }
 0x110   : > { %1376 = vmax.xlane.f32.xlu1 %v3614_v21  ;;  %v3630_v26 = vpop.f32.mrf.mxu2  ;;  %v3632_v27 = vpop.f32.mrf.mxu1 }
 0x111   : > { %1346 = vmax.xlane.f32.xlu0 %v3619_v22  ;;  %1314 = vmax.xlane.f32.xlu2 %v3610_v19 }
 0x117   : > { %v3644_v31 = vpop.f32.mrf.mxu0  ;;  %v3648_v32 = vpop.f32.mrf.mxu3 }
 0x118   : > { %1378 = vmax.xlane.f32.xlu1 %v3626_v25  ;;  %v3641_v30 = vpop.f32.mrf.mxu2  ;;  %v3650_v33 = vpop.f32.mrf.mxu1 }
 0x119   : > { %1318 = vmax.xlane.f32.xlu2 %v3632_v27  ;;  %1284 = vmax.xlane.f32.xlu0 %v3623_v24 }
 0x11f   : > { %v3657_v35 = vpop.f32.mrf.mxu0  ;;  %v3659_v36 = vpop.f32.mrf.mxu3 }
 0x120   : > { %1316 = vmax.xlane.f32.xlu1 %v3621_v23  ;;  %v3653_v34 = vpop.f32.mrf.mxu2  ;;  %4602 = vst [vmem:[#allocation5_spill] sm:$0xff] %v3659_v36  ;;  %v3661_v37 = vpop.f32.mrf.mxu1 }
 0x121   : > { %1350 = vmax.xlane.f32.xlu2 %v3641_v30  ;;  %1348 = vmax.xlane.f32.xlu0 %v3630_v26  ;;  %4603 = vst [vmem:[#allocation6_spill] sm:$0xff] %v3661_v37 }
 0x127   : > { %v3668_v39 = vpop.f32.mrf.mxu0  ;;  %v3670_v40 = vpop.f32.mrf.mxu3 }
 0x128   : > { %1380 = vmax.xlane.f32.xlu1 %v3637_v29  ;;  %v3666_v38 = vpop.f32.mrf.mxu2  ;;  %4604 = vst [vmem:[#allocation7_spill] sm:$0xff] %v3668_v39  ;;  %v3675_v41 = vpop.f32.mrf.mxu1 }
 0x129   : > { %1382 = vmax.xlane.f32.xlu0 %v3648_v32  ;;  %1288 = vmax.xlane.f32.xlu2 %v3644_v31  ;;  %4605 = vst [vmem:[#allocation8_spill] sm:$0xff] %v3670_v40 }
 0x12a   : > { %4606 = vst [vmem:[#allocation9_spill] sm:$0xff] %v3675_v41 }
 0x12f   : > { %v3679_v43 = vpop.f32.mrf.mxu0  ;;  %v3684_v44 = vpop.f32.mrf.mxu3 }
 0x130   : > { %1286 = vmax.xlane.f32.xlu1 %v3634_v28  ;;  %v3677_v42 = vpop.f32.mrf.mxu2  ;;  %4608 = vst [vmem:[#allocation11_spill] sm:$0xff] %v3679_v43  ;;  %v3686_v45 = vpop.f32.mrf.mxu1 }
 0x131   : > { %1320 = vmax.xlane.f32.xlu0 %v3650_v33  ;;  %1322 = vmax.xlane.f32.xlu2 %v3661_v37  ;;  %4607 = vst [vmem:[#allocation10_spill] sm:$0xff] %v3677_v42 }
 0x132   : > { %4609 = vst [vmem:[#allocation12_spill] sm:$0xff] %v3684_v44 }
 0x133   : > { %4610 = vst [vmem:[#allocation13_spill] sm:$0xff] %v3686_v45 }
 0x137   : > { %v3693_v47 = vpop.f32.mrf.mxu0  ;;  %v3695_v48 = vpop.f32.mrf.mxu3 }
 0x138   : > { %1384 = vmax.xlane.f32.xlu1 %v3659_v36  ;;  %v3688_v46 = vpop.f32.mrf.mxu2  ;;  %4612 = vst [vmem:[#allocation15_spill] sm:$0xff] %v3693_v47  ;;  %v3699_v51 = vpop.f32.mrf.mxu1 }
 0x139   : > { %1352 = vmax.xlane.f32.xlu0 %v3653_v34  ;;  %1386 = vmax.xlane.f32.xlu2 %v3670_v40  ;;  %4611 = vst [vmem:[#allocation14_spill] sm:$0xff] %v3688_v46 }
 0x13a   : > { %4613 = vst [vmem:[#allocation16_spill] sm:$0xff] %v3695_v48 }
 0x13b   : > { %4614 = vst [vmem:[#allocation17_spill] sm:$0xff] %v3699_v51 }
 0x13f   : > { %v3706_v54 = vpop.f32.mrf.mxu0  ;;  %v3708_v57 = vpop.f32.mrf.mxu3 }
 0x140   : > { %1290 = vmax.xlane.f32.xlu1 %v3657_v35  ;;  %v3704_v52 = vpop.f32.mrf.mxu2  ;;  %4616 = vst [vmem:[#allocation19_spill] sm:$0xff] %v3706_v54  ;;  %v3713_v58 = vpop.f32.mrf.mxu1 }
 0x141   : > { %1292 = vmax.xlane.f32.xlu0 %v3668_v39  ;;  %1294 = vmax.xlane.f32.xlu2 %v3679_v43  ;;  %4615 = vst [vmem:[#allocation18_spill] sm:$0xff] %v3704_v52 }
 0x142   : > { %4617 = vst [vmem:[#allocation20_spill] sm:$0xff] %v3708_v57 }
 0x147   : > { %v3721_v5 = vpop.f32.mrf.mxu0 }
 0x148   : > { %1354 = vmax.xlane.f32.xlu1 %v3666_v38  ;;  %v3717_v0 = vpop.f32.mrf.mxu2  ;;  %4619 = vst [vmem:[#allocation22_spill] sm:$0xff] %v3721_v5 }
 0x149   : > { %1356 = vmax.xlane.f32.xlu0 %v3677_v42  ;;  %1358 = vmax.xlane.f32.xlu2 %v3688_v46  ;;  %4618 = vst [vmem:[#allocation21_spill] sm:$0xff] %v3717_v0 }
 0x14b   : > { %v3697_v50 = vpop.xlane.xlu0 %1272 }
 0x14c   : > { %v1305_v49 = vpop.xlane.xlu2 %1304 }
 0x14d   : > { %v1416_v42 = vsub.f32 %v3553_v61, %v1305_v49 }
 0x150   : > { %1324 = vmax.xlane.f32.xlu1 %v3675_v41  ;;  %v3734_v43 = vpop.f32.mrf.mxu2  ;;  %v1496_v41 = vmul.f32 1.442695, %v1416_v42 }
 0x151   : > { %1326 = vmax.xlane.f32.xlu0 %v3686_v45  ;;  %1328 = vmax.xlane.f32.xlu2 %v3699_v51  ;;  %v3726_v51 = vpop.f32.mrf.mxu3  ;;  %4621 = vst [vmem:[#allocation24_spill] sm:$0xff] %v3734_v43 }
 0x152   : > { %2865 = vpow2.f32 %v1496_v41 }
 0x153   : > { %v1369_v53 = vpop.xlane.xlu1 %1368 }
 0x154   : > { %v1307_v55 = vpop.xlane.xlu2 %1306  ;;  %v1337_v56 = vpop.xlane.xlu0 %1336 }
 0x155   : > { %v1417_v61 = vsub.f32 %v3565_v2, %v1307_v55  ;;  %v1400_v55 = vsub.f32 %v3551_v60, %v3697_v50 }
 0x158   : > { %1388 = vmax.xlane.f32.xlu1 %v3684_v44  ;;  %v3775_v41 = vpop.eup %2865  ;;  %v3792_v50 = vpop.f32.mrf.mxu2 }
 0x159   : > { %1390 = vmax.xlane.f32.xlu0 %v3695_v48  ;;  %1392 = vmax.xlane.f32.xlu2 %v3708_v57  ;;  %v3730_v48 = vpop.f32.mrf.mxu1 }
 0x15a   : > { %4620 = vst [vmem:[#allocation23_spill] sm:$0xff] %v3730_v48 }
 0x15b   : > { %v3715_v59 = vpop.xlane.xlu1 %1370 }
 0x15c   : > { %v3719_v3 = vpop.xlane.xlu2 %1308  ;;  %v1275_v4 = vpop.xlane.xlu0 %1274 }
 0x160   : > { %1296 = vmax.xlane.f32.xlu1 %v3693_v47 }
 0x161   : > { %1298 = vmax.xlane.f32.xlu0 %v3706_v54  ;;  %1300 = vmax.xlane.f32.xlu2 %v3721_v5  ;;  %v3741_v5 = vpop.f32.mrf.mxu3  ;;  %v3747_v44 = vpop.f32.mrf.mxu1 }
 0x162   : > { %4622 = vst [vmem:[#allocation25_spill] sm:$0xff] %v3747_v44 }
 0x163   : > { %v3728_v57 = vpop.xlane.xlu1 %1276 }
 0x164   : > { %v3732_v46 = vpop.xlane.xlu2 %1310  ;;  %v1339_v45 = vpop.xlane.xlu0 %1338 }
 0x168   : > { %1360 = vmax.xlane.f32.xlu1 %v3704_v52 }
 0x169   : > { %1362 = vmax.xlane.f32.xlu0 %v3717_v0  ;;  %1364 = vmax.xlane.f32.xlu2 %v3734_v43  ;;  %v1448_v43 = vsub.f32 %v3557_v62, %v1369_v53  ;;  %v3760_v36 = vpop.f32.mrf.mxu3  ;;  %v1432_v62 = vsub.f32 %v3559_v63, %v1337_v56  ;;  %v1401_v63 = vsub.f32 %v3563_v1, %v1275_v4 }
 0x16a   : > { %4623 = vst [vmem:[#allocation26_spill] sm:$0xff] %v3760_v36 }
 0x16b   : > { %v3739_v54 = vpop.xlane.xlu1 %1372  ;;  %v1560_v40 = vmul.f32 1.442695, %v1448_v43  ;;  %v1498_v43 = vmul.f32 1.442695, %v1417_v61  ;;  %v1464_v61 = vmul.f32 1.442695, %v1400_v55 }
 0x16c   : > { %v3743_v47 = vpop.xlane.xlu0 %1340  ;;  %v3745_v39 = vpop.xlane.xlu2 %1280  ;;  %v1466_v60 = vmul.f32 1.442695, %v1401_v63 }
 0x16d   : > { %2867 = vpow2.f32 %v1560_v40  ;;  %v1433_v40 = vsub.f32 %v3574_v7, %v1339_v45  ;;  %v1402_v7 = vsub.f32 %v3577_v8, %v3728_v57  ;;  %v1450_v45 = vsub.f32 %v3592_v13, %v3739_v54 }
 0x16e   : > { %2869 = vpow2.f32 %v1498_v43  ;;  %v1418_v13 = vsub.f32 %v3579_v9, %v3719_v3  ;;  %v1419_v54 = vsub.f32 %v3588_v12, %v3732_v46 }
 0x16f   : > { %v1530_v43 = vmul.f32 1.442695, %v1433_v40 }
 0x170   : > { %1330 = vmax.xlane.f32.xlu1 %v3713_v58  ;;  %v1502_v3 = vmul.f32 1.442695, %v1419_v54  ;;  %v578_v54 = vld [vmem:[%s3838_s13 + $0x78] sm:$0xff] }
 0x171   : > { %1332 = vmax.xlane.f32.xlu0 %v3730_v48  ;;  %1334 = vmax.xlane.f32.xlu2 %v3747_v44  ;;  %v3773_v44 = vpop.f32.mrf.mxu0  ;;  %v1528_v48 = vmul.f32 1.442695, %v1432_v62 }
 0x172   : > { %4624 = vst [vmem:[#allocation27_spill] sm:$0xff] %v3773_v44  ;;  %2104 = vmatpush.msrb.mxu0 %v578_v54  ;;  %v577_v54 = vld [vmem:[%s3838_s13 + $0x70] sm:$0xff] }
 0x173   : > { %v3754_v0 = vpop.xlane.xlu1 %1278  ;;  %v3777_v2 = vpop.eup %2867  ;;  %2871 = vpow2.f32 %v1528_v48  ;;  %v1449_v48 = vsub.f32 %v3572_v6, %v3715_v59  ;;  %v1468_v59 = vmul.f32 1.442695, %v1402_v7 }
 0x174   : > { %v3756_v52 = vpop.xlane.xlu0 %1342  ;;  %v3758_v37 = vpop.xlane.xlu2 %1312  ;;  %2873 = vpow2.f32 %v1464_v61  ;;  %v1564_v61 = vmul.f32 1.442695, %v1450_v45  ;;  %v1434_v45 = vsub.f32 %v3583_v10, %v3743_v47  ;;  %v594_v10 = vld [vmem:[%s3838_s13 + $0xf8] sm:$0xff]  ;;  %2105 = vmatpush.msrb.mxu0 %v577_v54  ;;  %v576_v54 = vld [vmem:[%s3838_s13 + $0x68] sm:$0xff] }
 0x175   : > { %2875 = vpow2.f32 %v1466_v60  ;;  %v1562_v55 = vmul.f32 1.442695, %v1449_v48  ;;  %v1403_v60 = vsub.f32 %v3586_v11, %v3754_v0  ;;  %v1500_v48 = vmul.f32 1.442695, %v1418_v13  ;;  %2169 = vmatpush.msrb.mxu1 %v594_v10 }
 0x176   : > { %2877 = vpow2.f32 %v1530_v43  ;;  %2106 = vmatpush.msrb.mxu0 %v576_v54  ;;  %v575_v54 = vld [vmem:[%s3838_s13 + $0x60] sm:$0xff] }
 0x177   : > { %2879 = vpow2.f32 %v1562_v55  ;;  %v1470_v46 = vmul.f32 1.442695, %v1403_v60  ;;  %v610_v55 = vld [vmem:[%s3838_s13 + $0x178] sm:$0xff]  ;;  %v1532_v60 = vmul.f32 1.442695, %v1434_v45  ;;  %v609_v45 = vld [vmem:[%s3838_s13 + $0x170] sm:$0xff] }
 0x178   : > { %1394 = vmax.xlane.f32.xlu1 %v3726_v51  ;;  %2881 = vpow2.f32 %v1468_v59  ;;  %v626_v59 = vld [vmem:[%s3838_s13 + $0x1f8] sm:$0xff]  ;;  %2234 = vmatpush.msrb.mxu2 %v610_v55  ;;  %v1404_v55 = vsub.f32 %v3597_v15, %v3745_v39  ;;  %v593_v15 = vld [vmem:[%s3838_s13 + $0xf0] sm:$0xff] }
 0x179   : > { %1396 = vmax.xlane.f32.xlu0 %v3741_v5  ;;  %1398 = vmax.xlane.f32.xlu2 %v3760_v36  ;;  %2883 = vpow2.f32 %v1564_v61  ;;  %v1435_v61 = vsub.f32 %v3594_v14, %v3756_v52 }
 0x17a   : > { %2885 = vpow2.f32 %v1500_v48  ;;  %2299 = vmatpush.msrb.mxu3 %v626_v59  ;;  %v625_v59 = vld [vmem:[%s3838_s13 + $0x1f0] sm:$0xff]  ;;  %2235 = vmatpush.msrb.mxu2 %v609_v45  ;;  %v1472_v10 = vmul.f32 1.442695, %v1404_v55  ;;  %v608_v55 = vld [vmem:[%s3838_s13 + $0x168] sm:$0xff] }
 0x17b   : > { %v3767_v49 = vpop.xlane.xlu1 %1374  ;;  %2887 = vpow2.f32 %v1502_v3  ;;  %v1534_v48 = vmul.f32 1.442695, %v1435_v61  ;;  %v1420_v61 = vsub.f32 %v3599_v16, %v3758_v37  ;;  %2170 = vmatpush.msrb.mxu1 %v593_v15  ;;  %2107 = vmatpush.msrb.mxu0 %v575_v54  ;;  %v574_v54 = vld [vmem:[%s3838_s13 + $0x58] sm:$0xff] }
 0x17c   : > { %v3769_v53 = vpop.xlane.xlu0 %1344  ;;  %v3771_v42 = vpop.xlane.xlu2 %1282  ;;  %2889 = vpow2.f32 %v1470_v46  ;;  %v1451_v13 = vsub.f32 %v3603_v17, %v3767_v49  ;;  %2300 = vmatpush.msrb.mxu3 %v625_v59  ;;  %v624_v59 = vld [vmem:[%s3838_s13 + $0x1e8] sm:$0xff]  ;;  %2236 = vmatpush.msrb.mxu2 %v608_v55 }
 0x17d   : > { %2891 = vpow2.f32 %v1532_v60  ;;  %v1504_v60 = vmul.f32 1.442695, %v1420_v61  ;;  %v1436_v45 = vsub.f32 %v3606_v18, %v3769_v53  ;;  %v592_v18 = vld [vmem:[%s3838_s13 + $0xe8] sm:$0xff]  ;;  %2108 = vmatpush.msrb.mxu0 %v574_v54  ;;  %v573_v54 = vld [vmem:[%s3838_s13 + $0x50] sm:$0xff] }
 0x17e   : > { %v1566_v46 = vmul.f32 1.442695, %v1451_v13  ;;  %2893 = vpow2.f32 %v1534_v48  ;;  %v1405_v13 = vsub.f32 %v3612_v20, %v3771_v42  ;;  %2301 = vmatpush.msrb.mxu3 %v624_v59  ;;  %2171 = vmatpush.msrb.mxu1 %v592_v18  ;;  %v623_v59 = vld [vmem:[%s3838_s13 + $0x1e0] sm:$0xff] }
 0x17f   : > { %v1536_v15 = vmul.f32 1.442695, %v1436_v45  ;;  %v607_v45 = vld [vmem:[%s3838_s13 + $0x160] sm:$0xff]  ;;  %2109 = vmatpush.msrb.mxu0 %v573_v54  ;;  %v572_v54 = vld [vmem:[%s3838_s13 + $0x48] sm:$0xff] }
 0x180   : > { %1302 = vmax.xlane.f32.xlu1 %v3773_v44  ;;  %v3794_v44 = vpop.eup %2869  ;;  %2895 = vpow2.f32 %v1566_v46  ;;  %v1474_v46 = vmul.f32 1.442695, %v1405_v13  ;;  %2237 = vmatpush.msrb.mxu2 %v607_v45 }
 0x181   : > { %1688 = vadd.xlane.f32.xlu0 %v3777_v2  ;;  %1624 = vadd.xlane.f32.xlu2 %v3775_v41  ;;  %v3796_v1 = vpop.eup %2871  ;;  %2897 = vpow2.f32 %v1472_v10 }
 0x182   : > { %v3813_v40 = vpop.eup %2873  ;;  %2899 = vpow2.f32 %v1504_v60  ;;  %2302 = vmatpush.msrb.mxu3 %v623_v59  ;;  %v622_v59 = vld [vmem:[%s3838_s13 + $0x1d8] sm:$0xff]  ;;  %2110 = vmatpush.msrb.mxu0 %v572_v54 }
 0x183   : > { %v3786_v56 = vpop.xlane.xlu1 %1376  ;;  %v3815_v8 = vpop.eup %2875  ;;  %2901 = vpow2.f32 %v1474_v46 }
 0x184   : > { %v3788_v62 = vpop.xlane.xlu0 %1346  ;;  %v3790_v36 = vpop.xlane.xlu2 %1314  ;;  %v1452_v61 = vsub.f32 %v3614_v21, %v3786_v56  ;;  %2903 = vpow2.f32 %v1536_v15  ;;  %2303 = vmatpush.msrb.mxu3 %v622_v59  ;;  %v621_v59 = vld [vmem:[%s3838_s13 + $0x1d0] sm:$0xff] }
 0x185   : > { %v3817_v57 = vpop.eup %2877  ;;  %v1437_v13 = vsub.f32 %v3619_v22, %v3788_v62  ;;  %v1421_v55 = vsub.f32 %v3610_v19, %v3790_v36  ;;  %v591_v19 = vld [vmem:[%s3838_s13 + $0xe0] sm:$0xff] }
 0x186   : > { %v3840_v12 = vpop.eup %2879  ;;  %v1568_v10 = vmul.f32 1.442695, %v1452_v61  ;;  %2172 = vmatpush.msrb.mxu1 %v591_v19  ;;  %2304 = vmatpush.msrb.mxu3 %v621_v59  ;;  %v620_v59 = vld [vmem:[%s3838_s13 + $0x1c8] sm:$0xff] }
 0x187   : > { %v3842_v11 = vpop.eup %2881  ;;  %v1538_v46 = vmul.f32 1.442695, %v1437_v13  ;;  %v1506_v18 = vmul.f32 1.442695, %v1421_v55  ;;  %v606_v55 = vld [vmem:[%s3838_s13 + $0x158] sm:$0xff] }
 0x188   : > { %1366 = vmax.xlane.f32.xlu1 %v3792_v50  ;;  %v3844_v0 = vpop.eup %2883  ;;  %2905 = vpow2.f32 %v1568_v10  ;;  %2238 = vmatpush.msrb.mxu2 %v606_v55 }
 0x189   : > { %1626 = vadd.xlane.f32.xlu0 %v3794_v44  ;;  %1656 = vadd.xlane.f32.xlu2 %v3796_v1  ;;  %v3865_v3 = vpop.eup %2885  ;;  %2907 = vpow2.f32 %v1538_v46 }
 0x18a   : > { %v3867_v17 = vpop.eup %2887  ;;  %2909 = vpow2.f32 %v1506_v18  ;;  %2305 = vmatpush.msrb.mxu3 %v620_v59  ;;  %v619_v59 = vld [vmem:[%s3838_s13 + $0x1c0] sm:$0xff] }
 0x18b   : > { %v3807_v4 = vpop.xlane.xlu1 %1378  ;;  %v3869_v49 = vpop.eup %2889 }
 0x18c   : > { %v3809_v63 = vpop.xlane.xlu2 %1318  ;;  %v3811_v6 = vpop.xlane.xlu0 %1284  ;;  %v1453_v45 = vsub.f32 %v3626_v25, %v3807_v4  ;;  %v590_v25 = vld [vmem:[%s3838_s13 + $0xd8] sm:$0xff]  ;;  %2306 = vmatpush.msrb.mxu3 %v619_v59  ;;  %v585_v59 = vld [vmem:[%s3838_s13 + $0xb0] sm:$0xff] }
 0x18d   : > { %v3890_v48 = vpop.eup %2891  ;;  %v1406_v61 = vsub.f32 %v3623_v24, %v3811_v6  ;;  %2173 = vmatpush.msrb.mxu1 %v590_v25  ;;  %v1423_v55 = vsub.f32 %v3632_v27, %v3809_v63  ;;  %v589_v27 = vld [vmem:[%s3838_s13 + $0xd0] sm:$0xff] }
 0x18e   : > { %v3892_v20 = vpop.eup %2893  ;;  %v1570_v19 = vmul.f32 1.442695, %v1453_v45  ;;  %v605_v45 = vld [vmem:[%s3838_s13 + $0x150] sm:$0xff] }
 0x18f   : > { %v3894_v42 = vpop.eup %2895  ;;  %v1476_v15 = vmul.f32 1.442695, %v1406_v61  ;;  %2239 = vmatpush.msrb.mxu2 %v605_v45  ;;  %2174 = vmatpush.msrb.mxu1 %v589_v27  ;;  %v1510_v25 = vmul.f32 1.442695, %v1423_v55  ;;  %v604_v55 = vld [vmem:[%s3838_s13 + $0x148] sm:$0xff] }
 0x190   : > { %1592 = vadd.xlane.f32.xlu1 %v3813_v40  ;;  %v3915_v60 = vpop.eup %2897 }
 0x191   : > { %1658 = vadd.xlane.f32.xlu0 %v3817_v57  ;;  %1594 = vadd.xlane.f32.xlu2 %v3815_v8  ;;  %v3917_v22 = vpop.eup %2899  ;;  %2911 = vpow2.f32 %v1476_v15 }
 0x192   : > { %v3919_v62 = vpop.eup %2901  ;;  %2240 = vmatpush.msrb.mxu2 %v604_v55 }
 0x193   : > { %v3828_v43 = vpop.xlane.xlu1 %1316  ;;  %v3940_v10 = vpop.eup %2903 }
 0x194   : > { %v3830_v7 = vpop.xlane.xlu2 %1350  ;;  %v3832_v9 = vpop.xlane.xlu0 %1348  ;;  %v1422_v13 = vsub.f32 %v3621_v23, %v3828_v43 }
 0x195   : > { %v3942_v23 = vpop.eup %2905  ;;  %v1438_v61 = vsub.f32 %v3630_v26, %v3832_v9  ;;  %v1439_v45 = vsub.f32 %v3641_v30, %v3830_v7  ;;  %v588_v30 = vld [vmem:[%s3838_s13 + $0xc8] sm:$0xff] }
 0x196   : > { %v1508_v46 = vmul.f32 1.442695, %v1422_v13  ;;  %v3944_v43 = vpop.eup %2907  ;;  %2175 = vmatpush.msrb.mxu1 %v588_v30 }
 0x197   : > { %v1540_v18 = vmul.f32 1.442695, %v1438_v61  ;;  %v3965_v15 = vpop.eup %2909 }
 0x198   : > { %1690 = vadd.xlane.f32.xlu1 %v3840_v12  ;;  %2913 = vpow2.f32 %v1508_v46 }
 0x199   : > { %1596 = vadd.xlane.f32.xlu0 %v3842_v11  ;;  %1692 = vadd.xlane.f32.xlu2 %v3844_v0  ;;  %2915 = vpow2.f32 %v1570_v19 }
 0x19a   : > { %2917 = vpow2.f32 %v1540_v18 }
 0x19b   : > { %v3859_v47 = vpop.xlane.xlu1 %1380 }
 0x19c   : > { %v3861_v14 = vpop.xlane.xlu0 %1382  ;;  %v3863_v52 = vpop.xlane.xlu2 %1288  ;;  %v1454_v13 = vsub.f32 %v3637_v29, %v3859_v47 }
 0x19d   : > { %v3967_v29 = vpop.eup %2911 }
 0x19e   : > { %v1572_v46 = vmul.f32 1.442695, %v1454_v13  ;;  %v3969_v47 = vpop.eup %2913  ;;  %v1408_v13 = vsub.f32 %v3644_v31, %v3863_v52 }
 0x19f   : > { %v3990_v18 = vpop.eup %2915 }
 0x1a0   : > { %1628 = vadd.xlane.f32.xlu1 %v3865_v3  ;;  %2919 = vpow2.f32 %v1572_v46  ;;  %v1480_v46 = vmul.f32 1.442695, %v1408_v13  ;;  %v3992_v31 = vpop.eup %2917 }
 0x1a1   : > { %1630 = vadd.xlane.f32.xlu0 %v3867_v17  ;;  %1598 = vadd.xlane.f32.xlu2 %v3869_v49  ;;  %4625 = vst [vmem:[#allocation28_spill] sm:$0xff] %v3992_v31  ;;  %2921 = vpow2.f32 %v1510_v25 }
 0x1a3   : > { %v3884_v39 = vpop.xlane.xlu1 %1286 }
 0x1a4   : > { %v3886_v16 = vpop.xlane.xlu0 %1320  ;;  %v3888_v37 = vpop.xlane.xlu2 %1322  ;;  %v1407_v61 = vsub.f32 %v3634_v28, %v3884_v39 }
 0x1a5   : > { %v1424_v55 = vsub.f32 %v3650_v33, %v3886_v16  ;;  %v571_v33 = vld [vmem:[%s3838_s13 + $0x40] sm:$0xff] }
 0x1a6   : > { %v1478_v19 = vmul.f32 1.442695, %v1407_v61  ;;  %v3994_v52 = vpop.eup %2919  ;;  %v1455_v61 = vsub.f32 %v3648_v32, %v3861_v14  ;;  %v1542_v32 = vmul.f32 1.442695, %v1439_v45  ;;  %v603_v45 = vld [vmem:[%s3838_s13 + $0x140] sm:$0xff]  ;;  %2111 = vmatpush.msrb.mxu0 %v571_v33  ;;  %v617_v33 = vld [vmem:[%s3838_s13 + $0x1b0] sm:$0xff] }
 0x1a7   : > { %2241 = vmatpush.msrb.mxu2 %v603_v45  ;;  %v587_v16 = vld [vmem:[%s3838_s13 + $0xc0] sm:$0xff] }
 0x1a8   : > { %1660 = vadd.xlane.f32.xlu1 %v3890_v48  ;;  %2923 = vpow2.f32 %v1478_v19  ;;  %v1574_v25 = vmul.f32 1.442695, %v1455_v61  ;;  %v4015_v19 = vpop.eup %2921  ;;  %2176 = vmatpush.msrb.mxu1 %v587_v16  ;;  %v4632_v16 = vld [vmem:[#allocation5_spill] sm:$0xff] }
 0x1a9   : > { %1694 = vadd.xlane.f32.xlu0 %v3894_v42  ;;  %1662 = vadd.xlane.f32.xlu2 %v3892_v20  ;;  %2925 = vpow2.f32 %v1480_v46  ;;  %4626 = vst [vmem:[#allocation29_spill] sm:$0xff] %v4015_v19 }
 0x1aa   : > { %2927 = vpow2.f32 %v1542_v32 }
 0x1ab   : > { %v3909_v53 = vpop.xlane.xlu1 %1384  ;;  %2929 = vpow2.f32 %v1574_v25  ;;  %v618_v25 = vld [vmem:[%s3838_s13 + $0x1b8] sm:$0xff] }
 0x1ac   : > { %v3911_v21 = vpop.xlane.xlu0 %1352  ;;  %v3913_v56 = vpop.xlane.xlu2 %1386  ;;  %2307 = vmatpush.msrb.mxu3 %v618_v25 }
 0x1ad   : > { %v1440_v13 = vsub.f32 %v3653_v34, %v3911_v21 }
 0x1ae   : > { %v4017_v34 = vpop.eup %2923  ;;  %2308 = vmatpush.msrb.mxu3 %v617_v33 }
 0x1af   : > { %v1544_v46 = vmul.f32 1.442695, %v1440_v13  ;;  %4627 = vst [vmem:[#allocation30_spill] sm:$0xff] %v4017_v34  ;;  %v4019_v21 = vpop.eup %2925 }
 0x1b0   : > { %1600 = vadd.xlane.f32.xlu1 %v3915_v60  ;;  %4628 = vst [vmem:[#allocation31_spill] sm:$0xff] %v4019_v21 }
 0x1b1   : > { %1602 = vadd.xlane.f32.xlu0 %v3919_v62  ;;  %1632 = vadd.xlane.f32.xlu2 %v3917_v22  ;;  %2931 = vpow2.f32 %v1544_v46  ;;  %v586_v46 = vld [vmem:[%s3838_s13 + $0xb8] sm:$0xff] }
 0x1b2   : > { %2177 = vmatpush.msrb.mxu1 %v586_v46  ;;  %v584_v46 = vld [vmem:[%s3838_s13 + $0xa8] sm:$0xff] }
 0x1b3   : > { %v3934_v36 = vpop.xlane.xlu1 %1290 }
 0x1b4   : > { %v3936_v24 = vpop.xlane.xlu0 %1292  ;;  %v3938_v6 = vpop.xlane.xlu2 %1294  ;;  %v1409_v61 = vsub.f32 %v3657_v35, %v3934_v36  ;;  %v1512_v35 = vmul.f32 1.442695, %v1424_v55  ;;  %2178 = vmatpush.msrb.mxu1 %v585_v59 }
 0x1b6   : > { %v1482_v32 = vmul.f32 1.442695, %v1409_v61  ;;  %2933 = vpow2.f32 %v1512_v35  ;;  %v602_v61 = vld [vmem:[%s3838_s13 + $0x138] sm:$0xff]  ;;  %v616_v35 = vld [vmem:[%s3838_s13 + $0x1a8] sm:$0xff]  ;;  %2179 = vmatpush.msrb.mxu1 %v584_v46  ;;  %v601_v46 = vld [vmem:[%s3838_s13 + $0x130] sm:$0xff] }
 0x1b7   : > { %2242 = vmatpush.msrb.mxu2 %v602_v61  ;;  %2309 = vmatpush.msrb.mxu3 %v616_v35  ;;  %v4638_v35 = vld [vmem:[#allocation6_spill] sm:$0xff] }
 0x1b8   : > { %1664 = vadd.xlane.f32.xlu1 %v3940_v10  ;;  %2935 = vpow2.f32 %v1482_v32  ;;  %v615_v32 = vld [vmem:[%s3838_s13 + $0x1a0] sm:$0xff] }
 0x1b9   : > { %1666 = vadd.xlane.f32.xlu0 %v3944_v43  ;;  %1696 = vadd.xlane.f32.xlu2 %v3942_v23 }
 0x1ba   : > { %2310 = vmatpush.msrb.mxu3 %v615_v32  ;;  %2243 = vmatpush.msrb.mxu2 %v601_v46  ;;  %v613_v32 = vld [vmem:[%s3838_s13 + $0x190] sm:$0xff] }
 0x1bb   : > { %v3959_v4 = vpop.xlane.xlu1 %1354 }
 0x1bc   : > { %v3961_v26 = vpop.xlane.xlu0 %1356  ;;  %v3963_v9 = vpop.xlane.xlu2 %1358  ;;  %v1441_v13 = vsub.f32 %v3666_v38, %v3959_v4 }
 0x1bd   : > { %v4042_v38 = vpop.eup %2927 }
 0x1be   : > { %4629 = vst [vmem:[#allocation32_spill] sm:$0xff] %v4042_v38  ;;  %v1546_v4 = vmul.f32 1.442695, %v1441_v13  ;;  %v4044_v45 = vpop.eup %2929  ;;  %v4633_v13 = vld [vmem:[#allocation8_spill] sm:$0xff] }
 0x1bf   : > { %4630 = vst [vmem:[#allocation33_spill] sm:$0xff] %v4044_v45  ;;  %v4048_v55 = vpop.eup %2931  ;;  %v1457_v25 = vsub.f32 %v4633_v13, %v3913_v56  ;;  %v583_v56 = vld [vmem:[%s3838_s13 + $0xa0] sm:$0xff] }
 0x1c0   : > { %1634 = vadd.xlane.f32.xlu1 %v3965_v15  ;;  %4631 = vst [vmem:[#allocation34_spill] sm:$0xff] %v4048_v55  ;;  %2937 = vpow2.f32 %v1546_v4  ;;  %2180 = vmatpush.msrb.mxu1 %v583_v56 }
 0x1c1   : > { %1636 = vadd.xlane.f32.xlu0 %v3969_v47  ;;  %1604 = vadd.xlane.f32.xlu2 %v3967_v29  ;;  %v1578_v4 = vmul.f32 1.442695, %v1457_v25  ;;  %v581_v25 = vld [vmem:[%s3838_s13 + $0x90] sm:$0xff] }
 0x1c3   : > { %v3984_v63 = vpop.xlane.xlu1 %1324 }
 0x1c4   : > { %v3986_v28 = vpop.xlane.xlu0 %1326  ;;  %v3988_v39 = vpop.xlane.xlu2 %1328 }
 0x1c8   : > { %1698 = vadd.xlane.f32.xlu1 %v3990_v18 }
 0x1c9   : > { %1700 = vadd.xlane.f32.xlu0 %v3994_v52  ;;  %1668 = vadd.xlane.f32.xlu2 %v3992_v31 }
 0x1cb   : > { %v4009_v7 = vpop.xlane.xlu1 %1388 }
 0x1cc   : > { %v4011_v14 = vpop.xlane.xlu0 %1390  ;;  %v4013_v27 = vpop.xlane.xlu2 %1392 }
 0x1d0   : > { %1606 = vadd.xlane.f32.xlu1 %v4017_v34 }
 0x1d1   : > { %1608 = vadd.xlane.f32.xlu0 %v4019_v21  ;;  %1638 = vadd.xlane.f32.xlu2 %v4015_v19  ;;  %v1456_v19 = vsub.f32 %v4632_v16, %v3909_v53  ;;  %v4634_v53 = vld [vmem:[#allocation9_spill] sm:$0xff]  ;;  %v1425_v21 = vsub.f32 %v4638_v35, %v3888_v37  ;;  %v600_v37 = vld [vmem:[%s3838_s13 + $0x128] sm:$0xff] }
 0x1d2   : > { %v1426_v16 = vsub.f32 %v4634_v53, %v3984_v63  ;;  %v4071_v63 = vpop.eup %2933  ;;  %2244 = vmatpush.msrb.mxu2 %v600_v37  ;;  %v597_v37 = vld [vmem:[%s3838_s13 + $0x110] sm:$0xff] }
 0x1d3   : > { %v4034_v54 = vpop.xlane.xlu1 %1296  ;;  %v1576_v59 = vmul.f32 1.442695, %v1456_v19  ;;  %4635 = vst [vmem:[#allocation5_spill] sm:$0xff] %v4071_v63  ;;  %v4073_v61 = vpop.eup %2935  ;;  %v614_v19 = vld [vmem:[%s3838_s13 + $0x198] sm:$0xff] }
 0x1d4   : > { %v4036_v36 = vpop.xlane.xlu0 %1298  ;;  %v4038_v30 = vpop.xlane.xlu2 %1300  ;;  %v1516_v33 = vmul.f32 1.442695, %v1426_v16  ;;  %4636 = vst [vmem:[#allocation8_spill] sm:$0xff] %v4073_v61  ;;  %v4639_v16 = vld [vmem:[#allocation10_spill] sm:$0xff]  ;;  %2311 = vmatpush.msrb.mxu3 %v614_v19  ;;  %v569_v19 = vld [vmem:[%s3838_s13 + $0x30] sm:$0xff] }
 0x1d5   : > { %v4077_v53 = vpop.eup %2937  ;;  %2939 = vpow2.f32 %v1576_v59  ;;  %v1442_v56 = vsub.f32 %v4639_v16, %v3961_v26  ;;  %v4640_v59 = vld [vmem:[#allocation12_spill] sm:$0xff]  ;;  %v612_v26 = vld [vmem:[%s3838_s13 + $0x188] sm:$0xff]  ;;  %v599_v16 = vld [vmem:[%s3838_s13 + $0x120] sm:$0xff] }
 0x1d6   : > { %4637 = vst [vmem:[#allocation9_spill] sm:$0xff] %v4077_v53  ;;  %2941 = vpow2.f32 %v1578_v4  ;;  %v1458_v35 = vsub.f32 %v4640_v59, %v4009_v7  ;;  %v580_v4 = vld [vmem:[%s3838_s13 + $0x88] sm:$0xff]  ;;  %2312 = vmatpush.msrb.mxu3 %v613_v32  ;;  %v579_v7 = vld [vmem:[%s3838_s13 + $0x80] sm:$0xff]  ;;  %2245 = vmatpush.msrb.mxu2 %v599_v16  ;;  %v598_v59 = vld [vmem:[%s3838_s13 + $0x118] sm:$0xff] }
 0x1d7   : > { %2943 = vpow2.f32 %v1516_v33  ;;  %v1548_v33 = vmul.f32 1.442695, %v1442_v56  ;;  %v568_v32 = vld [vmem:[%s3838_s13 + $0x28] sm:$0xff]  ;;  %v4643_v56 = vld [vmem:[#allocation7_spill] sm:$0xff]  ;;  %v567_v16 = vld [vmem:[%s3838_s13 + $0x20] sm:$0xff] }
 0x1d8   : > { %1670 = vadd.xlane.f32.xlu1 %v4042_v38  ;;  %2313 = vmatpush.msrb.mxu3 %v612_v26 }
 0x1d9   : > { %1672 = vadd.xlane.f32.xlu0 %v4048_v55  ;;  %1702 = vadd.xlane.f32.xlu2 %v4044_v45  ;;  %v582_v55 = vld [vmem:[%s3838_s13 + $0x98] sm:$0xff] }
 0x1da   : > { %2181 = vmatpush.msrb.mxu1 %v582_v55  ;;  %v570_v55 = vld [vmem:[%s3838_s13 + $0x38] sm:$0xff]  ;;  %2246 = vmatpush.msrb.mxu2 %v598_v59  ;;  %v595_v59 = vld [vmem:[%s3838_s13 + $0x100] sm:$0xff] }
 0x1db   : > { %v4062_v38 = vpop.xlane.xlu1 %1360  ;;  %2112 = vmatpush.msrb.mxu0 %v570_v55  ;;  %v611_v55 = vld [vmem:[%s3838_s13 + $0x180] sm:$0xff]  ;;  %v4105_v34 = vpop.eup %2939 }
 0x1dc   : > { %v4066_v13 = vpop.xlane.xlu0 %1362  ;;  %v4068_v45 = vpop.xlane.xlu2 %1364  ;;  %2182 = vmatpush.msrb.mxu1 %v581_v25  ;;  %v1580_v25 = vmul.f32 1.442695, %v1458_v35  ;;  %2314 = vmatpush.msrb.mxu3 %v611_v55  ;;  %v4644_v35 = vld [vmem:[#allocation11_spill] sm:$0xff]  ;;  %v566_v55 = vld [vmem:[%s3838_s13 + $0x18] sm:$0xff] }
 0x1dd   : > { %2113 = vmatpush.msrb.mxu0 %v569_v19  ;;  %v1411_v26 = vsub.f32 %v4644_v35, %v3938_v6  ;;  %2247 = vmatpush.msrb.mxu2 %v597_v37 }
 0x1de   : > { %2183 = vmatpush.msrb.mxu1 %v580_v4  ;;  %v1410_v4 = vsub.f32 %v4643_v56, %v3936_v24 }
 0x1df   : > { %2114 = vmatpush.msrb.mxu0 %v568_v32  ;;  %v1486_v35 = vmul.f32 1.442695, %v1411_v26  ;;  %v564_v32 = vld [vmem:[%s3838_s13 + $0x8] sm:$0xff]  ;;  %v4649_v26 = vld [vmem:[#allocation16_spill] sm:$0xff] }
 0x1e0   : > { %1640 = vadd.xlane.f32.xlu1 %v4071_v63  ;;  %2184 = vmatpush.msrb.mxu1 %v579_v7  ;;  %v596_v7 = vld [vmem:[%s3838_s13 + $0x108] sm:$0xff]  ;;  %v1484_v6 = vmul.f32 1.442695, %v1410_v4 }
 0x1e1   : > { %1610 = vadd.xlane.f32.xlu0 %v4073_v61  ;;  %1674 = vadd.xlane.f32.xlu2 %v4077_v53  ;;  %v1514_v53 = vmul.f32 1.442695, %v1425_v21  ;;  %v4107_v21 = vpop.eup %2941  ;;  %v4648_v4 = vld [vmem:[#allocation14_spill] sm:$0xff] }
 0x1e2   : > { %4641 = vst [vmem:[#allocation6_spill] sm:$0xff] %v4107_v21  ;;  %v4111_v31 = vpop.eup %2943  ;;  %2115 = vmatpush.msrb.mxu0 %v567_v16  ;;  %2248 = vmatpush.msrb.mxu2 %v596_v7  ;;  %v1459_v16 = vsub.f32 %v4649_v26, %v4011_v14  ;;  %v563_v7 = vld [vmem:[%s3838_s13] sm:$0xff] }
 0x1e3   : > { %v4093_v46 = vpop.xlane.xlu1 %1330  ;;  %4642 = vst [vmem:[#allocation10_spill] sm:$0xff] %v4111_v31  ;;  %2945 = vpow2.f32 %v1514_v53  ;;  %v4645_v53 = vld [vmem:[#allocation13_spill] sm:$0xff] }
 0x1e4   : > { %v4097_v61 = vpop.xlane.xlu0 %1332  ;;  %v4099_v63 = vpop.xlane.xlu2 %1334  ;;  %2947 = vpow2.f32 %v1548_v33  ;;  %v1427_v19 = vsub.f32 %v4645_v53, %v3986_v28  ;;  %2116 = vmatpush.msrb.mxu0 %v566_v55  ;;  %2249 = vmatpush.msrb.mxu2 %v595_v59  ;;  %v1443_v53 = vsub.f32 %v4648_v4, %v3963_v9 }
 0x1e5   : > { %2949 = vpow2.f32 %v1580_v25 }
 0x1e6   : > { %v1518_v28 = vmul.f32 1.442695, %v1427_v19  ;;  %2951 = vpow2.f32 %v1484_v6  ;;  %v4650_v19 = vld [vmem:[#allocation20_spill] sm:$0xff]  ;;  %v1550_v9 = vmul.f32 1.442695, %v1443_v53  ;;  %v4655_v53 = vld [vmem:[#allocation15_spill] sm:$0xff] }
 0x1e7   : > { %2953 = vpow2.f32 %v1486_v35  ;;  %v1460_v55 = vsub.f32 %v4650_v19, %v4013_v27  ;;  %v4654_v27 = vld [vmem:[#allocation17_spill] sm:$0xff] }
 0x1e8   : > { %1704 = vadd.xlane.f32.xlu1 %v4105_v34  ;;  %2955 = vpow2.f32 %v1518_v28 }
 0x1e9   : > { %1706 = vadd.xlane.f32.xlu0 %v4107_v21  ;;  %1644 = vadd.xlane.f32.xlu2 %v4111_v31  ;;  %v565_v31 = vld [vmem:[%s3838_s13 + $0x10] sm:$0xff]  ;;  %v4133_v21 = vpop.eup %2945  ;;  %v1584_v14 = vmul.f32 1.442695, %v1460_v55 }
 0x1ea   : > { %v4135_v25 = vpop.eup %2947  ;;  %2117 = vmatpush.msrb.mxu0 %v565_v31  ;;  %v1582_v31 = vmul.f32 1.442695, %v1459_v16  ;;  %v1412_v16 = vsub.f32 %v4655_v53, %v4034_v54 }
 0x1eb   : > { %v4124_v24 = vpop.xlane.xlu1 %1394  ;;  %4646 = vst [vmem:[#allocation12_spill] sm:$0xff] %v4135_v25  ;;  %v4138_v37 = vpop.eup %2949 }
 0x1ec   : > { %v4128_v33 = vpop.xlane.xlu0 %1396  ;;  %v4130_v56 = vpop.xlane.xlu2 %1398  ;;  %4647 = vst [vmem:[#allocation7_spill] sm:$0xff] %v4138_v37  ;;  %2118 = vmatpush.msrb.mxu0 %v564_v32  ;;  %v1428_v32 = vsub.f32 %v4654_v27, %v3988_v39 }
 0x1ed   : > { %v4152_v35 = vpop.eup %2951 }
 0x1ee   : > { %2119 = vmatpush.msrb.mxu0 %v563_v7  ;;  %4651 = vst [vmem:[#allocation11_spill] sm:$0xff] %v4152_v35  ;;  %v4154_v26 = vpop.eup %2953  ;;  %v1429_v7 = vsub.f32 %v3713_v58, %v4093_v46 }
 0x1ef   : > { %4652 = vst [vmem:[#allocation13_spill] sm:$0xff] %v4154_v26  ;;  %v4156_v28 = vpop.eup %2955 }
 0x1f0   : > { %1642 = vadd.xlane.f32.xlu1 %v4133_v21  ;;  %4653 = vst [vmem:[#allocation14_spill] sm:$0xff] %v4156_v28 }
 0x1f1   : > { %1708 = vadd.xlane.f32.xlu0 %v4138_v37  ;;  %1676 = vadd.xlane.f32.xlu2 %v4135_v25  ;;  %v1488_v25 = vmul.f32 1.442695, %v1412_v16 }
 0x1f3   : > { %v4150_v59 = vpop.xlane.xlu1 %1302 }
 0x1f4   : > { %v1689_v6 = vpop.xlane.xlu0 %1688  ;;  %v1625_v4 = vpop.xlane.xlu2 %1624 }
 0x1f5   : > { %2957 = vrcp.f32 %v1689_v6 }
 0x1f6   : > { %2959 = vrcp.f32 %v1625_v4 }
 0x1f7   : > { %2961 = vpow2.f32 %v1550_v9  ;;  %v1520_v9 = vmul.f32 1.442695, %v1428_v32 }
 0x1f8   : > { %1612 = vadd.xlane.f32.xlu1 %v4152_v35  ;;  %2963 = vpow2.f32 %v1582_v31 }
 0x1f9   : > { %1646 = vadd.xlane.f32.xlu0 %v4156_v28  ;;  %1614 = vadd.xlane.f32.xlu2 %v4154_v26  ;;  %2965 = vpow2.f32 %v1584_v14  ;;  %v1522_v26 = vmul.f32 1.442695, %v1429_v7 }
 0x1fb   : > { %v2958_v19 = vpop.eup %2957  ;;  %v4167_v55 = vpop.xlane.xlu1 %1366 }
 0x1fc   : > { %v2960_v39 = vpop.eup %2959  ;;  %v1832_v27 = vmul.f32 %v2958_v19, %v1689_v6  ;;  %v1627_v31 = vpop.xlane.xlu0 %1626  ;;  %v4656_v6 = vld [vmem:[#allocation18_spill] sm:$0xff] }
 0x1fd   : > { %v1657_v35 = vpop.xlane.xlu2 %1656  ;;  %v1800_v54 = vmul.f32 %v2960_v39, %v1625_v4  ;;  %2967 = vrcp.f32 %v1627_v31  ;;  %v4170_v53 = vpop.eup %2961  ;;  %v1444_v32 = vsub.f32 %v4656_v6, %v4062_v38  ;;  %v4657_v4 = vld [vmem:[#allocation21_spill] sm:$0xff] }
 0x1fe   : > { %v1896_v14 = vsub.f32 2.0, %v1832_v27  ;;  %2969 = vrcp.f32 %v1657_v35  ;;  %v4174_v58 = vpop.eup %2963  ;;  %v1445_v16 = vsub.f32 %v4657_v4, %v4066_v13  ;;  %v1461_v27 = vsub.f32 %v3726_v51, %v4124_v24 }
 0x1ff   : > { %v1864_v46 = vsub.f32 2.0, %v1800_v54  ;;  %v4176_v28 = vpop.eup %2965  ;;  %2971 = vpow2.f32 %v1520_v9 }
 0x200   : > { %v1960_v37 = vmul.f32 %v2958_v19, %v1896_v14  ;;  %1710 = vadd.xlane.f32.xlu1 %v4174_v58  ;;  %2973 = vpow2.f32 %v1488_v25  ;;  %v1552_v25 = vmul.f32 1.442695, %v1444_v32  ;;  %v4660_v32 = vld [vmem:[#allocation19_spill] sm:$0xff] }
 0x201   : > { %v1928_v7 = vmul.f32 %v2960_v39, %v1864_v46  ;;  %1678 = vadd.xlane.f32.xlu0 %v4170_v53  ;;  %1712 = vadd.xlane.f32.xlu2 %v4176_v28  ;;  %2975 = vpow2.f32 %v1522_v26  ;;  %v1554_v39 = vmul.f32 1.442695, %v1445_v16  ;;  %v1413_v4 = vsub.f32 %v4660_v32, %v4036_v36  ;;  %v4661_v16 = vld [vmem:[#allocation22_spill] sm:$0xff] }
 0x202   : > { %v2024_v9 = vmul.f32 %v3777_v2, %v1960_v37 }
 0x203   : > { %v2968_v54 = vpop.eup %2967  ;;  %v1593_v38 = vpop.xlane.xlu1 %1592  ;;  %v1992_v19 = vmul.f32 %v3775_v41, %v1928_v7  ;;  %v1586_v41 = vmul.f32 1.442695, %v1461_v27  ;;  %v1414_v7 = vsub.f32 %v4661_v16, %v4038_v30 }
 0x204   : > { %v2970_v14 = vpop.eup %2969  ;;  %v1801_v6 = vmul.f32 %v2968_v54, %v1627_v31  ;;  %2977 = vrcp.f32 %v1593_v38  ;;  %2088 = vst [vmem:[%s4189_s22 + $0x180] sm:$0xff] %v2024_v9  ;;  %2315 = vmatmul.f32.vlgmr.msrb.gmra.mxu3 %v2024_v9  ;;  %v1659_v13 = vpop.xlane.xlu0 %1658 }
 0x205   : > { %v1595_v26 = vpop.xlane.xlu2 %1594  ;;  %v1816_v51 = vmul.f32 %v2970_v14, %v1657_v35  ;;  %2979 = vrcp.f32 %v1659_v13  ;;  %2056 = vst [vmem:[%s4189_s22 + $0x80] sm:$0xff] %v1992_v19  ;;  %2185 = vmatmul.f32.vlgmr.msrb.gmra.mxu1 %v1992_v19  ;;  %v4193_v2 = vpop.eup %2971  ;;  %v4662_v19 = vld [vmem:[#allocation24_spill] sm:$0xff]  ;;  %v1492_v16 = vmul.f32 1.442695, %v1414_v7 }
 0x206   : > { %v1865_v24 = vsub.f32 2.0, %v1801_v6  ;;  %2981 = vrcp.f32 %v1595_v26  ;;  %v4195_v37 = vpop.eup %2973  ;;  %v1446_v6 = vsub.f32 %v4662_v19, %v4068_v45  ;;  %v4664_v19 = vld [vmem:[#allocation26_spill] sm:$0xff] }
 0x207   : > { %4658 = vst [vmem:[#allocation16_spill] sm:$0xff] %v4195_v37  ;;  %v1880_v31 = vsub.f32 2.0, %v1816_v51  ;;  %v4197_v46 = vpop.eup %2975  ;;  %2983 = vpow2.f32 %v1552_v25 }
 0x208   : > { %4659 = vst [vmem:[#allocation20_spill] sm:$0xff] %v4197_v46  ;;  %1648 = vadd.xlane.f32.xlu1 %v4193_v2  ;;  %v1929_v35 = vmul.f32 %v2968_v54, %v1865_v24  ;;  %2985 = vpow2.f32 %v1554_v39  ;;  %v1556_v45 = vmul.f32 1.442695, %v1446_v6 }
 0x209   : > { %v1944_v9 = vmul.f32 %v2970_v14, %v1880_v31  ;;  %1616 = vadd.xlane.f32.xlu0 %v4195_v37  ;;  %1650 = vadd.xlane.f32.xlu2 %v4197_v46  ;;  %2987 = vpow2.f32 %v1586_v41  ;;  %v1490_v14 = vmul.f32 1.442695, %v1413_v4 }
 0x20a   : > { %v2978_v27 = vpop.eup %2977  ;;  %v1993_v36 = vmul.f32 %v3794_v44, %v1929_v35  ;;  %v4663_v35 = vld [vmem:[#allocation23_spill] sm:$0xff] }
 0x20b   : > { %v2980_v25 = vpop.eup %2979  ;;  %v1784_v54 = vmul.f32 %v2978_v27, %v1593_v38  ;;  %v1691_v51 = vpop.xlane.xlu1 %1690  ;;  %v2008_v30 = vmul.f32 %v3796_v1, %v1944_v9  ;;  %v1462_v9 = vsub.f32 %v3741_v5, %v4128_v33 }
 0x20c   : > { %v2982_v39 = vpop.eup %2981  ;;  %v1817_v24 = vmul.f32 %v2980_v25, %v1659_v13  ;;  %2989 = vrcp.f32 %v1691_v51  ;;  %v1597_v31 = vpop.xlane.xlu0 %1596  ;;  %2057 = vst [vmem:[%s4189_s22 + $0x88] sm:$0xff] %v1993_v36 }
 0x20d   : > { %v1693_v32 = vpop.xlane.xlu2 %1692  ;;  %v1848_v46 = vsub.f32 2.0, %v1784_v54  ;;  %v1785_v37 = vmul.f32 %v2982_v39, %v1595_v26  ;;  %2991 = vrcp.f32 %v1597_v31  ;;  %2188 = vmatmul.f32.gmra.mxu1 %v1993_v36  ;;  %2072 = vst [vmem:[%s4189_s22 + $0x100] sm:$0xff] %v2008_v30  ;;  %2250 = vmatmul.f32.vlgmr.msrb.gmra.mxu2 %v2008_v30  ;;  %v4212_v44 = vpop.eup %2983  ;;  %v1430_v26 = vsub.f32 %v4663_v35, %v4097_v61 }
 0x20e   : > { %v1881_v38 = vsub.f32 2.0, %v1817_v24  ;;  %2993 = vrcp.f32 %v1693_v32  ;;  %v4214_v1 = vpop.eup %2985  ;;  %v1463_v61 = vsub.f32 %v4664_v19, %v4130_v56  ;;  %v1588_v24 = vmul.f32 1.442695, %v1462_v9  ;;  %v4665_v9 = vld [vmem:[#allocation27_spill] sm:$0xff] }
 0x20f   : > { %v1912_v41 = vmul.f32 %v2978_v27, %v1848_v46  ;;  %v1849_v13 = vsub.f32 2.0, %v1785_v37  ;;  %v4216_v4 = vpop.eup %2987  ;;  %2995 = vpow2.f32 %v1490_v14  ;;  %v1524_v30 = vmul.f32 1.442695, %v1430_v26 }
 0x210   : > { %1680 = vadd.xlane.f32.xlu1 %v4212_v44  ;;  %v1945_v7 = vmul.f32 %v2980_v25, %v1881_v38  ;;  %2997 = vpow2.f32 %v1492_v16 }
 0x211   : > { %1714 = vadd.xlane.f32.xlu0 %v4216_v4  ;;  %1682 = vadd.xlane.f32.xlu2 %v4214_v1  ;;  %v1976_v37 = vmul.f32 %v3813_v40, %v1912_v41  ;;  %v1913_v46 = vmul.f32 %v2982_v39, %v1849_v13  ;;  %2999 = vpow2.f32 %v1556_v45 }
 0x212   : > { %v2990_v27 = vpop.eup %2989  ;;  %v2009_v6 = vmul.f32 %v3817_v57, %v1945_v7 }
 0x213   : > { %v2992_v36 = vpop.eup %2991  ;;  %v1833_v25 = vmul.f32 %v2990_v27, %v1691_v51  ;;  %2040 = vst [vmem:[%s4189_s22] sm:$0xff] %v1976_v37  ;;  %2120 = vmatmul.f32.vlgmr.msrb.gmra.mxu0 %v1976_v37  ;;  %v1629_v5 = vpop.xlane.xlu1 %1628  ;;  %v1977_v33 = vmul.f32 %v3815_v8, %v1913_v46  ;;  %v1590_v51 = vmul.f32 1.442695, %v1463_v61  ;;  %v1415_v37 = vsub.f32 %v4665_v9, %v4150_v59 }
 0x214   : > { %v2994_v54 = vpop.eup %2993  ;;  %v1786_v40 = vmul.f32 %v2992_v36, %v1597_v31  ;;  %3001 = vrcp.f32 %v1629_v5  ;;  %v1631_v39 = vpop.xlane.xlu0 %1630  ;;  %2073 = vst [vmem:[%s4189_s22 + $0x108] sm:$0xff] %v2009_v6 }
 0x215   : > { %v1599_v14 = vpop.xlane.xlu2 %1598  ;;  %v1897_v16 = vsub.f32 2.0, %v1833_v25  ;;  %v1834_v56 = vmul.f32 %v2994_v54, %v1693_v32  ;;  %3003 = vrcp.f32 %v1631_v39  ;;  %2253 = vmatmul.f32.gmra.mxu2 %v2009_v6  ;;  %2041 = vst [vmem:[%s4189_s22 + $0x8] sm:$0xff] %v1977_v33  ;;  %v4233_v57 = vpop.eup %2995  ;;  %v1447_v32 = vsub.f32 %v3792_v50, %v4167_v55 }
 0x216   : > { %v1850_v45 = vsub.f32 2.0, %v1786_v40  ;;  %3005 = vrcp.f32 %v1599_v14  ;;  %v4235_v38 = vpop.eup %2997 }
 0x217   : > { %v1898_v8 = vsub.f32 2.0, %v1834_v56  ;;  %v1961_v41 = vmul.f32 %v2990_v27, %v1897_v16  ;;  %v4237_v31 = vpop.eup %2999  ;;  %3007 = vpow2.f32 %v1524_v30  ;;  %v1558_v25 = vmul.f32 1.442695, %v1447_v32  ;;  %v4666_v16 = vld [vmem:[#allocation25_spill] sm:$0xff] }
 0x218   : > { %1618 = vadd.xlane.f32.xlu1 %v4233_v57  ;;  %v1914_v13 = vmul.f32 %v2992_v36, %v1850_v45  ;;  %3009 = vpow2.f32 %v1588_v24 }
 0x219   : > { %1620 = vadd.xlane.f32.xlu2 %v4235_v38  ;;  %1684 = vadd.xlane.f32.xlu0 %v4237_v31  ;;  %v2025_v35 = vmul.f32 %v3840_v12, %v1961_v41  ;;  %v1962_v26 = vmul.f32 %v2994_v54, %v1898_v8  ;;  %3011 = vpow2.f32 %v1590_v51 }
 0x21a   : > { %v3002_v7 = vpop.eup %3001  ;;  %v1978_v46 = vmul.f32 %v3842_v11, %v1914_v13 }
 0x21b   : > { %v3004_v27 = vpop.eup %3003  ;;  %v1802_v19 = vmul.f32 %v3002_v7, %v1629_v5  ;;  %2123 = vmatmul.f32.gmra.mxu0 %v1977_v33  ;;  %2089 = vst [vmem:[%s4189_s22 + $0x188] sm:$0xff] %v2025_v35  ;;  %2318 = vmatmul.f32.gmra.mxu3 %v2025_v35  ;;  %v1661_v50 = vpop.xlane.xlu1 %1660  ;;  %v2026_v55 = vmul.f32 %v3844_v0, %v1962_v26  ;;  %v1494_v5 = vmul.f32 1.442695, %v1415_v37 }
 0x21c   : > { %v3006_v61 = vpop.eup %3005  ;;  %v1803_v12 = vmul.f32 %v3004_v27, %v1631_v39  ;;  %3013 = vrcp.f32 %v1661_v50  ;;  %v1695_v6 = vpop.xlane.xlu0 %1694  ;;  %2042 = vst [vmem:[%s4189_s22 + $0x10] sm:$0xff] %v1978_v46 }
 0x21d   : > { %v1663_v36 = vpop.xlane.xlu2 %1662  ;;  %v1866_v54 = vsub.f32 2.0, %v1802_v19  ;;  %v1787_v59 = vmul.f32 %v3006_v61, %v1599_v14  ;;  %3015 = vrcp.f32 %v1695_v6  ;;  %2090 = vst [vmem:[%s4189_s22 + $0x190] sm:$0xff] %v2026_v55  ;;  %v4252_v11 = vpop.eup %3007  ;;  %v1431_v14 = vsub.f32 %v4666_v16, %v4099_v63 }
 0x21e   : > { %v1867_v33 = vsub.f32 2.0, %v1803_v12  ;;  %3017 = vrcp.f32 %v1663_v36  ;;  %v4254_v30 = vpop.eup %3009 }
 0x21f   : > { %v1851_v40 = vsub.f32 2.0, %v1787_v59  ;;  %v1930_v0 = vmul.f32 %v3002_v7, %v1866_v54  ;;  %v4256_v39 = vpop.eup %3011  ;;  %3019 = vpow2.f32 %v1558_v25  ;;  %v1526_v9 = vmul.f32 1.442695, %v1431_v14 }
 0x220   : > { %1716 = vadd.xlane.f32.xlu1 %v4254_v30  ;;  %v1931_v24 = vmul.f32 %v3004_v27, %v1867_v33  ;;  %3021 = vpow2.f32 %v1494_v5 }
 0x221   : > { %1652 = vadd.xlane.f32.xlu0 %v4252_v11  ;;  %1718 = vadd.xlane.f32.xlu2 %v4256_v39  ;;  %v1994_v56 = vmul.f32 %v3865_v3, %v1930_v0  ;;  %v1915_v51 = vmul.f32 %v3006_v61, %v1851_v40 }
 0x222   : > { %v3014_v45 = vpop.eup %3013  ;;  %v1995_v8 = vmul.f32 %v3867_v17, %v1931_v24 }
 0x223   : > { %v3016_v41 = vpop.eup %3015  ;;  %v1818_v13 = vmul.f32 %v3014_v45, %v1661_v50  ;;  %2126 = vmatmul.f32.gmra.mxu0 %v1978_v46  ;;  %2058 = vst [vmem:[%s4189_s22 + $0x90] sm:$0xff] %v1994_v56  ;;  %2191 = vmatmul.f32.gmra.mxu1 %v1994_v56  ;;  %v1601_v63 = vpop.xlane.xlu1 %1600  ;;  %v1979_v32 = vmul.f32 %v3869_v49, %v1915_v51 }
 0x224   : > { %v3018_v35 = vpop.eup %3017  ;;  %v1835_v26 = vmul.f32 %v3016_v41, %v1695_v6  ;;  %2321 = vmatmul.f32.gmra.mxu3 %v2026_v55  ;;  %3023 = vrcp.f32 %v1601_v63  ;;  %v1603_v3 = vpop.xlane.xlu0 %1602  ;;  %2059 = vst [vmem:[%s4189_s22 + $0x98] sm:$0xff] %v1995_v8 }
 0x225   : > { %v1633_v7 = vpop.xlane.xlu2 %1632  ;;  %v1882_v37 = vsub.f32 2.0, %v1818_v13  ;;  %v1819_v27 = vmul.f32 %v3018_v35, %v1663_v36  ;;  %3025 = vrcp.f32 %v1603_v3  ;;  %2043 = vst [vmem:[%s4189_s22 + $0x18] sm:$0xff] %v1979_v32  ;;  %v4269_v46 = vpop.eup %3019 }
 0x226   : > { %v1899_v17 = vsub.f32 2.0, %v1835_v26  ;;  %3027 = vrcp.f32 %v1633_v7  ;;  %v4271_v49 = vpop.eup %3021 }
 0x227   : > { %v1883_v19 = vsub.f32 2.0, %v1819_v27  ;;  %v1946_v50 = vmul.f32 %v3014_v45, %v1882_v37  ;;  %3029 = vpow2.f32 %v1526_v9 }
 0x228   : > { %1686 = vadd.xlane.f32.xlu1 %v4269_v46  ;;  %v1963_v55 = vmul.f32 %v3016_v41, %v1899_v17 }
 0x229   : > { %1622 = vadd.xlane.f32.xlu0 %v4271_v49  ;;  %v2010_v61 = vmul.f32 %v3890_v48, %v1946_v50  ;;  %v1947_v12 = vmul.f32 %v3018_v35, %v1883_v19 }
 0x22a   : > { %v3024_v6 = vpop.eup %3023  ;;  %v2027_v36 = vmul.f32 %v3894_v42, %v1963_v55 }
 0x22b   : > { %v3026_v25 = vpop.eup %3025  ;;  %v1788_v54 = vmul.f32 %v3024_v6, %v1601_v63  ;;  %2129 = vmatmul.f32.gmra.mxu0 %v1979_v32  ;;  %2194 = vmatmul.f32.gmra.mxu1 %v1995_v8  ;;  %2074 = vst [vmem:[%s4189_s22 + $0x110] sm:$0xff] %v2010_v61  ;;  %v1665_v59 = vpop.xlane.xlu1 %1664  ;;  %v2011_v5 = vmul.f32 %v3892_v20, %v1947_v12 }
 0x22c   : > { %v3028_v33 = vpop.eup %3027  ;;  %v1789_v40 = vmul.f32 %v3026_v25, %v1603_v3  ;;  %2256 = vmatmul.f32.gmra.mxu2 %v2010_v61  ;;  %3031 = vrcp.f32 %v1665_v59  ;;  %v1667_v0 = vpop.xlane.xlu0 %1666  ;;  %2091 = vst [vmem:[%s4189_s22 + $0x198] sm:$0xff] %v2027_v36  ;;  %2324 = vmatmul.f32.gmra.mxu3 %v2027_v36 }
 0x22d   : > { %v1697_v48 = vpop.xlane.xlu2 %1696  ;;  %v1852_v24 = vsub.f32 2.0, %v1788_v54  ;;  %v1804_v16 = vmul.f32 %v3028_v33, %v1633_v7  ;;  %3033 = vrcp.f32 %v1667_v0  ;;  %2075 = vst [vmem:[%s4189_s22 + $0x118] sm:$0xff] %v2011_v5  ;;  %v4281_v14 = vpop.eup %3029 }
 0x22e   : > { %v1853_v42 = vsub.f32 2.0, %v1789_v40  ;;  %3035 = vrcp.f32 %v1697_v48 }
 0x22f   : > { %v1868_v56 = vsub.f32 2.0, %v1804_v16  ;;  %v1916_v51 = vmul.f32 %v3024_v6, %v1852_v24 }
 0x230   : > { %1654 = vadd.xlane.f32.xlu1 %v4281_v14  ;;  %v1917_v20 = vmul.f32 %v3026_v25, %v1853_v42 }
 0x231   : > { %v1980_v45 = vmul.f32 %v3915_v60, %v1916_v51  ;;  %v1932_v8 = vmul.f32 %v3028_v33, %v1868_v56 }
 0x232   : > { %v3032_v41 = vpop.eup %3031  ;;  %v1981_v13 = vmul.f32 %v3919_v62, %v1917_v20 }
 0x233   : > { %v3034_v63 = vpop.eup %3033  ;;  %v1820_v32 = vmul.f32 %v3032_v41, %v1665_v59  ;;  %2044 = vst [vmem:[%s4189_s22 + $0x20] sm:$0xff] %v1980_v45  ;;  %2132 = vmatmul.f32.gmra.mxu0 %v1980_v45  ;;  %v1635_v35 = vpop.xlane.xlu1 %1634  ;;  %v1996_v26 = vmul.f32 %v3917_v22, %v1932_v8 }
 0x234   : > { %v3036_v3 = vpop.eup %3035  ;;  %v1821_v7 = vmul.f32 %v3034_v63, %v1667_v0  ;;  %2259 = vmatmul.f32.gmra.mxu2 %v2011_v5  ;;  %3037 = vrcp.f32 %v1635_v35  ;;  %v1637_v9 = vpop.xlane.xlu0 %1636  ;;  %2045 = vst [vmem:[%s4189_s22 + $0x28] sm:$0xff] %v1981_v13 }
 0x235   : > { %v1605_v37 = vpop.xlane.xlu2 %1604  ;;  %v1884_v60 = vsub.f32 2.0, %v1820_v32  ;;  %v1836_v27 = vmul.f32 %v3036_v3, %v1697_v48  ;;  %3039 = vrcp.f32 %v1637_v9  ;;  %2060 = vst [vmem:[%s4189_s22 + $0xa0] sm:$0xff] %v1996_v26  ;;  %2197 = vmatmul.f32.gmra.mxu1 %v1996_v26 }
 0x236   : > { %v1885_v62 = vsub.f32 2.0, %v1821_v7  ;;  %3041 = vrcp.f32 %v1605_v37 }
 0x237   : > { %v1900_v17 = vsub.f32 2.0, %v1836_v27  ;;  %v1948_v19 = vmul.f32 %v3032_v41, %v1884_v60 }
 0x238   : > { %v1949_v50 = vmul.f32 %v3034_v63, %v1885_v62 }
 0x239   : > { %v2012_v22 = vmul.f32 %v3940_v10, %v1948_v19  ;;  %v1964_v55 = vmul.f32 %v3036_v3, %v1900_v17 }
 0x23a   : > { %v3038_v61 = vpop.eup %3037  ;;  %v2013_v12 = vmul.f32 %v3944_v43, %v1949_v50  ;;  %v4667_v50 = vld [vmem:[#allocation28_spill] sm:$0xff] }
 0x23b   : > { %v3040_v6 = vpop.eup %3039  ;;  %v1805_v36 = vmul.f32 %v3038_v61, %v1635_v35  ;;  %2135 = vmatmul.f32.gmra.mxu0 %v1981_v13  ;;  %2076 = vst [vmem:[%s4189_s22 + $0x120] sm:$0xff] %v2012_v22  ;;  %v1699_v25 = vpop.xlane.xlu1 %1698  ;;  %v2028_v54 = vmul.f32 %v3942_v23, %v1964_v55 }
 0x23c   : > { %v3042_v59 = vpop.eup %3041  ;;  %v1806_v5 = vmul.f32 %v3040_v6, %v1637_v9  ;;  %2262 = vmatmul.f32.gmra.mxu2 %v2012_v22  ;;  %3043 = vrcp.f32 %v1699_v25  ;;  %v1701_v33 = vpop.xlane.xlu0 %1700  ;;  %2077 = vst [vmem:[%s4189_s22 + $0x128] sm:$0xff] %v2013_v12 }
 0x23d   : > { %v1669_v40 = vpop.xlane.xlu2 %1668  ;;  %v1869_v10 = vsub.f32 2.0, %v1805_v36  ;;  %v1790_v0 = vmul.f32 %v3042_v59, %v1605_v37  ;;  %3045 = vrcp.f32 %v1701_v33  ;;  %2092 = vst [vmem:[%s4189_s22 + $0x1a0] sm:$0xff] %v2028_v54  ;;  %2327 = vmatmul.f32.gmra.mxu3 %v2028_v54 }
 0x23e   : > { %v1870_v43 = vsub.f32 2.0, %v1806_v5  ;;  %3047 = vrcp.f32 %v1669_v40  ;;  %v4668_v5 = vld [vmem:[#allocation30_spill] sm:$0xff] }
 0x23f   : > { %v1854_v48 = vsub.f32 2.0, %v1790_v0  ;;  %v1933_v24 = vmul.f32 %v3038_v61, %v1869_v10  ;;  %v4669_v0 = vld [vmem:[#allocation31_spill] sm:$0xff] }
 0x240   : > { %v1934_v16 = vmul.f32 %v3040_v6, %v1870_v43 }
 0x241   : > { %v1997_v23 = vmul.f32 %v3965_v15, %v1933_v24  ;;  %v1918_v42 = vmul.f32 %v3042_v59, %v1854_v48 }
 0x242   : > { %v3044_v56 = vpop.eup %3043  ;;  %v1998_v51 = vmul.f32 %v3969_v47, %v1934_v16 }
 0x243   : > { %v3046_v20 = vpop.eup %3045  ;;  %v1837_v45 = vmul.f32 %v3044_v56, %v1699_v25  ;;  %2061 = vst [vmem:[%s4189_s22 + $0xa8] sm:$0xff] %v1997_v23  ;;  %2200 = vmatmul.f32.gmra.mxu1 %v1997_v23  ;;  %v1607_v8 = vpop.xlane.xlu1 %1606  ;;  %v1982_v41 = vmul.f32 %v3967_v29, %v1918_v42  ;;  %v4670_v23 = vld [vmem:[#allocation29_spill] sm:$0xff] }
 0x244   : > { %v3048_v13 = vpop.eup %3047  ;;  %v1838_v63 = vmul.f32 %v3046_v20, %v1701_v33  ;;  %2265 = vmatmul.f32.gmra.mxu2 %v2013_v12  ;;  %3049 = vrcp.f32 %v1607_v8  ;;  %v1609_v32 = vpop.xlane.xlu0 %1608  ;;  %2062 = vst [vmem:[%s4189_s22 + $0xb0] sm:$0xff] %v1998_v51 }
 0x245   : > { %v1639_v35 = vpop.xlane.xlu2 %1638  ;;  %v1901_v15 = vsub.f32 2.0, %v1837_v45  ;;  %v1822_v26 = vmul.f32 %v3048_v13, %v1669_v40  ;;  %3051 = vrcp.f32 %v1609_v32  ;;  %2046 = vst [vmem:[%s4189_s22 + $0x30] sm:$0xff] %v1982_v41  ;;  %2138 = vmatmul.f32.gmra.mxu0 %v1982_v41 }
 0x246   : > { %v1902_v47 = vsub.f32 2.0, %v1838_v63  ;;  %3053 = vrcp.f32 %v1639_v35 }
 0x247   : > { %v1886_v3 = vsub.f32 2.0, %v1822_v26  ;;  %v1965_v7 = vmul.f32 %v3044_v56, %v1901_v15  ;;  %v4671_v15 = vld [vmem:[#allocation32_spill] sm:$0xff] }
 0x248   : > { %v1966_v9 = vmul.f32 %v3046_v20, %v1902_v47 }
 0x249   : > { %v2029_v29 = vmul.f32 %v3990_v18, %v1965_v7  ;;  %v1950_v37 = vmul.f32 %v3048_v13, %v1886_v3  ;;  %v4672_v7 = vld [vmem:[#allocation34_spill] sm:$0xff] }
 0x24a   : > { %v3050_v60 = vpop.eup %3049  ;;  %v2030_v27 = vmul.f32 %v3994_v52, %v1966_v9 }
 0x24b   : > { %v3052_v62 = vpop.eup %3051  ;;  %v1791_v17 = vmul.f32 %v3050_v60, %v1607_v8  ;;  %2203 = vmatmul.f32.gmra.mxu1 %v1998_v51  ;;  %2093 = vst [vmem:[%s4189_s22 + $0x1a8] sm:$0xff] %v2029_v29  ;;  %2330 = vmatmul.f32.gmra.mxu3 %v2029_v29  ;;  %v1671_v19 = vpop.xlane.xlu1 %1670  ;;  %v2014_v22 = vmul.f32 %v4667_v50, %v1950_v37 }
 0x24c   : > { %v3054_v55 = vpop.eup %3053  ;;  %v1792_v61 = vmul.f32 %v3052_v62, %v1609_v32  ;;  %3055 = vrcp.f32 %v1671_v19  ;;  %v1673_v12 = vpop.xlane.xlu0 %1672  ;;  %2094 = vst [vmem:[%s4189_s22 + $0x1b0] sm:$0xff] %v2030_v27 }
 0x24d   : > { %v1703_v6 = vpop.xlane.xlu2 %1702  ;;  %v1855_v18 = vsub.f32 2.0, %v1791_v17  ;;  %v1807_v36 = vmul.f32 %v3054_v55, %v1639_v35  ;;  %3057 = vrcp.f32 %v1673_v12  ;;  %2078 = vst [vmem:[%s4189_s22 + $0x130] sm:$0xff] %v2014_v22  ;;  %2268 = vmatmul.f32.gmra.mxu2 %v2014_v22 }
 0x24e   : > { %v1856_v52 = vsub.f32 2.0, %v1792_v61  ;;  %3059 = vrcp.f32 %v1703_v6 }
 0x24f   : > { %v1871_v25 = vsub.f32 2.0, %v1807_v36  ;;  %v1919_v54 = vmul.f32 %v3050_v60, %v1855_v18 }
 0x250   : > { %v1920_v59 = vmul.f32 %v3052_v62, %v1856_v52 }
 0x251   : > { %v1983_v33 = vmul.f32 %v4668_v5, %v1919_v54  ;;  %v1935_v40 = vmul.f32 %v3054_v55, %v1871_v25  ;;  %v4674_v25 = vld [vmem:[#allocation5_spill] sm:$0xff]  ;;  %v4675_v5 = vld [vmem:[#allocation8_spill] sm:$0xff] }
 0x252   : > { %v3056_v10 = vpop.eup %3055  ;;  %v1984_v43 = vmul.f32 %v4669_v0, %v1920_v59 }
 0x253   : > { %v3058_v48 = vpop.eup %3057  ;;  %v1823_v24 = vmul.f32 %v3056_v10, %v1671_v19  ;;  %2047 = vst [vmem:[%s4189_s22 + $0x38] sm:$0xff] %v1983_v33  ;;  %2141 = vmatmul.f32.gmra.mxu0 %v1983_v33  ;;  %2333 = vmatmul.f32.gmra.mxu3 %v2030_v27  ;;  %v1641_v16 = vpop.xlane.xlu1 %1640  ;;  %v1999_v42 = vmul.f32 %v4670_v23, %v1935_v40  ;;  %v4673_v27 = vld [vmem:[#allocation33_spill] sm:$0xff] }
 0x254   : > { %v3060_v56 = vpop.eup %3059  ;;  %v1824_v51 = vmul.f32 %v3058_v48, %v1673_v12  ;;  %3061 = vrcp.f32 %v1641_v16  ;;  %v1611_v20 = vpop.xlane.xlu0 %1610  ;;  %2048 = vst [vmem:[%s4189_s22 + $0x40] sm:$0xff] %v1984_v43 }
 0x255   : > { %v1675_v45 = vpop.xlane.xlu2 %1674  ;;  %v1887_v8 = vsub.f32 2.0, %v1823_v24  ;;  %v1839_v41 = vmul.f32 %v3060_v56, %v1703_v6  ;;  %3063 = vrcp.f32 %v1611_v20  ;;  %2063 = vst [vmem:[%s4189_s22 + $0xb8] sm:$0xff] %v1999_v42  ;;  %2206 = vmatmul.f32.gmra.mxu1 %v1999_v42 }
 0x256   : > { %v1888_v13 = vsub.f32 2.0, %v1824_v51  ;;  %3065 = vrcp.f32 %v1675_v45 }
 0x257   : > { %v1903_v63 = vsub.f32 2.0, %v1839_v41  ;;  %v1951_v32 = vmul.f32 %v3056_v10, %v1887_v8 }
 0x258   : > { %v1952_v35 = vmul.f32 %v3058_v48, %v1888_v13 }
 0x259   : > { %v2015_v26 = vmul.f32 %v4671_v15, %v1951_v32  ;;  %v1967_v47 = vmul.f32 %v3060_v56, %v1903_v63 }
 0x25a   : > { %v3062_v3 = vpop.eup %3061  ;;  %v2016_v9 = vmul.f32 %v4672_v7, %v1952_v35  ;;  %v4677_v35 = vld [vmem:[#allocation6_spill] sm:$0xff] }
 0x25b   : > { %v3064_v29 = vpop.eup %3063  ;;  %v1808_v37 = vmul.f32 %v3062_v3, %v1641_v16  ;;  %2144 = vmatmul.f32.gmra.mxu0 %v1984_v43  ;;  %2079 = vst [vmem:[%s4189_s22 + $0x138] sm:$0xff] %v2015_v26  ;;  %2271 = vmatmul.f32.gmra.mxu2 %v2015_v26  ;;  %v1705_v60 = vpop.xlane.xlu1 %1704  ;;  %v2031_v62 = vmul.f32 %v4673_v27, %v1967_v47  ;;  %v4676_v43 = vld [vmem:[#allocation9_spill] sm:$0xff]  ;;  %v4678_v7 = vld [vmem:[#allocation10_spill] sm:$0xff] }
 0x25c   : > { %v3066_v17 = vpop.eup %3065  ;;  %v1793_v19 = vmul.f32 %v3064_v29, %v1611_v20  ;;  %3067 = vrcp.f32 %v1705_v60  ;;  %v1707_v50 = vpop.xlane.xlu0 %1706  ;;  %2080 = vst [vmem:[%s4189_s22 + $0x140] sm:$0xff] %v2016_v9 }
 0x25d   : > { %v1645_v22 = vpop.xlane.xlu2 %1644  ;;  %v1872_v55 = vsub.f32 2.0, %v1808_v37  ;;  %v1825_v61 = vmul.f32 %v3066_v17, %v1675_v45  ;;  %3069 = vrcp.f32 %v1707_v50  ;;  %2095 = vst [vmem:[%s4189_s22 + $0x1b8] sm:$0xff] %v2031_v62  ;;  %2336 = vmatmul.f32.gmra.mxu3 %v2031_v62 }
 0x25e   : > { %v1857_v12 = vsub.f32 2.0, %v1793_v19  ;;  %3071 = vrcp.f32 %v1645_v22 }
 0x25f   : > { %v1936_v6 = vmul.f32 %v3062_v3, %v1872_v55  ;;  %v1889_v18 = vsub.f32 2.0, %v1825_v61 }
 0x260   : > { %v1921_v36 = vmul.f32 %v3064_v29, %v1857_v12 }
 0x261   : > { %v1953_v52 = vmul.f32 %v3066_v17, %v1889_v18  ;;  %v2000_v54 = vmul.f32 %v4674_v25, %v1936_v6  ;;  %v4679_v6 = vld [vmem:[#allocation7_spill] sm:$0xff] }
 0x262   : > { %v3068_v59 = vpop.eup %3067  ;;  %v1985_v33 = vmul.f32 %v4675_v5, %v1921_v36 }
 0x263   : > { %v3070_v40 = vpop.eup %3069  ;;  %v1840_v10 = vmul.f32 %v3068_v59, %v1705_v60  ;;  %2064 = vst [vmem:[%s4189_s22 + $0xc0] sm:$0xff] %v2000_v54  ;;  %2209 = vmatmul.f32.gmra.mxu1 %v2000_v54  ;;  %2274 = vmatmul.f32.gmra.mxu2 %v2016_v9  ;;  %v1643_v0 = vpop.xlane.xlu1 %1642  ;;  %v2017_v48 = vmul.f32 %v4676_v43, %v1953_v52  ;;  %v4680_v54 = vld [vmem:[#allocation12_spill] sm:$0xff] }
 0x264   : > { %v3072_v24 = vpop.eup %3071  ;;  %v1841_v16 = vmul.f32 %v3070_v40, %v1707_v50  ;;  %3073 = vrcp.f32 %v1643_v0  ;;  %v1709_v23 = vpop.xlane.xlu0 %1708  ;;  %2049 = vst [vmem:[%s4189_s22 + $0x48] sm:$0xff] %v1985_v33  ;;  %2147 = vmatmul.f32.gmra.mxu0 %v1985_v33 }
 0x265   : > { %v1677_v42 = vpop.xlane.xlu2 %1676  ;;  %v1904_v56 = vsub.f32 2.0, %v1840_v10  ;;  %v1810_v51 = vmul.f32 %v3072_v24, %v1645_v22  ;;  %3075 = vrcp.f32 %v1709_v23  ;;  %2081 = vst [vmem:[%s4189_s22 + $0x148] sm:$0xff] %v2017_v48 }
 0x266   : > { %v1905_v20 = vsub.f32 2.0, %v1841_v16  ;;  %3077 = vrcp.f32 %v1677_v42 }
 0x267   : > { %v1968_v45 = vmul.f32 %v3068_v59, %v1904_v56  ;;  %v1874_v8 = vsub.f32 2.0, %v1810_v51 }
 0x268   : > { %v1969_v41 = vmul.f32 %v3070_v40, %v1905_v20  ;;  %v4682_v20 = vld [vmem:[#allocation14_spill] sm:$0xff] }
 0x269   : > { %v1938_v13 = vmul.f32 %v3072_v24, %v1874_v8  ;;  %v2032_v63 = vmul.f32 %v4105_v34, %v1968_v45 }
 0x26a   : > { %v3074_v32 = vpop.eup %3073  ;;  %v2033_v15 = vmul.f32 %v4677_v35, %v1969_v41 }
 0x26b   : > { %v3076_v26 = vpop.eup %3075  ;;  %v1809_v47 = vmul.f32 %v3074_v32, %v1643_v0  ;;  %2277 = vmatmul.f32.gmra.mxu2 %v2017_v48  ;;  %2096 = vst [vmem:[%s4189_s22 + $0x1c0] sm:$0xff] %v2032_v63  ;;  %2339 = vmatmul.f32.gmra.mxu3 %v2032_v63  ;;  %v1613_v3 = vpop.xlane.xlu1 %1612  ;;  %v2002_v9 = vmul.f32 %v4678_v7, %v1938_v13  ;;  %v4683_v63 = vld [vmem:[#allocation13_spill] sm:$0xff] }
 0x26c   : > { %v3078_v29 = vpop.eup %3077  ;;  %v1842_v37 = vmul.f32 %v3076_v26, %v1709_v23  ;;  %3079 = vrcp.f32 %v1613_v3  ;;  %v1647_v60 = vpop.xlane.xlu0 %1646  ;;  %2097 = vst [vmem:[%s4189_s22 + $0x1c8] sm:$0xff] %v2033_v15 }
 0x26d   : > { %v1615_v27 = vpop.xlane.xlu2 %1614  ;;  %v1873_v34 = vsub.f32 2.0, %v1809_v47  ;;  %v1826_v62 = vmul.f32 %v3078_v29, %v1677_v42  ;;  %3081 = vrcp.f32 %v1647_v60  ;;  %2066 = vst [vmem:[%s4189_s22 + $0xd0] sm:$0xff] %v2002_v9  ;;  %v4681_v42 = vld [vmem:[#allocation11_spill] sm:$0xff] }
 0x26e   : > { %v1906_v17 = vsub.f32 2.0, %v1842_v37  ;;  %3083 = vrcp.f32 %v1615_v27 }
 0x26f   : > { %v1937_v19 = vmul.f32 %v3074_v32, %v1873_v34  ;;  %v1890_v50 = vsub.f32 2.0, %v1826_v62 }
 0x270   : > { %v1970_v22 = vmul.f32 %v3076_v26, %v1906_v17 }
 0x271   : > { %v1954_v55 = vmul.f32 %v3078_v29, %v1890_v50  ;;  %v2001_v61 = vmul.f32 %v4133_v21, %v1937_v19 }
 0x272   : > { %v3080_v12 = vpop.eup %3079  ;;  %v2034_v18 = vmul.f32 %v4679_v6, %v1970_v22 }
 0x273   : > { %v3082_v36 = vpop.eup %3081  ;;  %v1794_v52 = vmul.f32 %v3080_v12, %v1613_v3  ;;  %2065 = vst [vmem:[%s4189_s22 + $0xc8] sm:$0xff] %v2001_v61  ;;  %2212 = vmatmul.f32.gmra.mxu1 %v2001_v61  ;;  %2342 = vmatmul.f32.gmra.mxu3 %v2033_v15  ;;  %v1711_v25 = vpop.xlane.xlu1 %1710  ;;  %v2018_v59 = vmul.f32 %v4680_v54, %v1954_v55 }
 0x274   : > { %v3084_v5 = vpop.eup %3083  ;;  %v1811_v33 = vmul.f32 %v3082_v36, %v1647_v60  ;;  %3085 = vrcp.f32 %v1711_v25  ;;  %v1679_v40 = vpop.xlane.xlu0 %1678  ;;  %2098 = vst [vmem:[%s4189_s22 + $0x1d0] sm:$0xff] %v2034_v18 }
 0x275   : > { %v1713_v10 = vpop.xlane.xlu2 %1712  ;;  %v1858_v0 = vsub.f32 2.0, %v1794_v52  ;;  %v1795_v21 = vmul.f32 %v3084_v5, %v1615_v27  ;;  %3087 = vrcp.f32 %v1679_v40  ;;  %2082 = vst [vmem:[%s4189_s22 + $0x150] sm:$0xff] %v2018_v59  ;;  %2280 = vmatmul.f32.gmra.mxu2 %v2018_v59 }
 0x276   : > { %v1875_v43 = vsub.f32 2.0, %v1811_v33  ;;  %3089 = vrcp.f32 %v1713_v10 }
 0x277   : > { %v1922_v48 = vmul.f32 %v3080_v12, %v1858_v0  ;;  %v1859_v24 = vsub.f32 2.0, %v1795_v21  ;;  %v4684_v0 = vld [vmem:[#allocation16_spill] sm:$0xff] }
 0x278   : > { %v1939_v16 = vmul.f32 %v3082_v36, %v1875_v43 }
 0x279   : > { %v1923_v23 = vmul.f32 %v3084_v5, %v1859_v24  ;;  %v1986_v56 = vmul.f32 %v4681_v42, %v1922_v48 }
 0x27a   : > { %v3086_v51 = vpop.eup %3085  ;;  %v2003_v45 = vmul.f32 %v4682_v20, %v1939_v16  ;;  %v4685_v16 = vld [vmem:[#allocation20_spill] sm:$0xff] }
 0x27b   : > { %v3088_v8 = vpop.eup %3087  ;;  %v1843_v41 = vmul.f32 %v3086_v51, %v1711_v25  ;;  %2050 = vst [vmem:[%s4189_s22 + $0x50] sm:$0xff] %v1986_v56  ;;  %2150 = vmatmul.f32.gmra.mxu0 %v1986_v56  ;;  %2215 = vmatmul.f32.gmra.mxu1 %v2002_v9  ;;  %v1649_v13 = vpop.xlane.xlu1 %1648  ;;  %v1987_v32 = vmul.f32 %v4683_v63, %v1923_v23 }
 0x27c   : > { %v3090_v35 = vpop.eup %3089  ;;  %v1827_v15 = vmul.f32 %v3088_v8, %v1679_v40  ;;  %2345 = vmatmul.f32.gmra.mxu3 %v2034_v18  ;;  %3091 = vrcp.f32 %v1649_v13  ;;  %v1617_v26 = vpop.xlane.xlu0 %1616  ;;  %2067 = vst [vmem:[%s4189_s22 + $0xd8] sm:$0xff] %v2003_v45 }
 0x27d   : > { %v1651_v47 = vpop.xlane.xlu2 %1650  ;;  %v1907_v3 = vsub.f32 2.0, %v1843_v41  ;;  %v1844_v7 = vmul.f32 %v3090_v35, %v1713_v10  ;;  %3093 = vrcp.f32 %v1617_v26  ;;  %2051 = vst [vmem:[%s4189_s22 + $0x58] sm:$0xff] %v1987_v32 }
 0x27e   : > { %v1891_v29 = vsub.f32 2.0, %v1827_v15  ;;  %3095 = vrcp.f32 %v1651_v47 }
 0x27f   : > { %v1971_v37 = vmul.f32 %v3086_v51, %v1907_v3  ;;  %v1908_v60 = vsub.f32 2.0, %v1844_v7 }
 0x280   : > { %v1955_v9 = vmul.f32 %v3088_v8, %v1891_v29 }
 0x281   : > { %v1972_v27 = vmul.f32 %v3090_v35, %v1908_v60  ;;  %v2035_v34 = vmul.f32 %v4174_v58, %v1971_v37 }
 0x282   : > { %v3092_v62 = vpop.eup %3091  ;;  %v2186_v17 = vpop.f32.mrf.mxu1  ;;  %v2019_v19 = vmul.f32 %v4170_v53, %v1955_v9 }
 0x283   : > { %v3094_v50 = vpop.eup %3093  ;;  %v1812_v22 = vmul.f32 %v3092_v62, %v1649_v13  ;;  %2380 = vst.msk [vmem:[%s4348_s29 + $0x80] sm:$0xff] %vm627_vm0, %v2186_v17  ;;  %2153 = vmatmul.f32.gmra.mxu0 %v1987_v32  ;;  %2218 = vmatmul.f32.gmra.mxu1 %v2003_v45  ;;  %v1681_v55 = vpop.xlane.xlu1 %1680  ;;  %v2036_v61 = vmul.f32 %v4176_v28, %v1972_v27 }
 0x284   : > { %v3096_v12 = vpop.eup %3095  ;;  %v1796_v6 = vmul.f32 %v3094_v50, %v1617_v26  ;;  %2099 = vst [vmem:[%s4189_s22 + $0x1d8] sm:$0xff] %v2035_v34  ;;  %2348 = vmatmul.f32.gmra.mxu3 %v2035_v34  ;;  %3097 = vrcp.f32 %v1681_v55  ;;  %v1715_v58 = vpop.xlane.xlu0 %1714  ;;  %2283 = vmatmul.f32.gmra.mxu2 %v2019_v19 }
 0x285   : > { %v1683_v18 = vpop.xlane.xlu2 %1682  ;;  %v1876_v53 = vsub.f32 2.0, %v1812_v22  ;;  %v1813_v36 = vmul.f32 %v3096_v12, %v1651_v47  ;;  %3099 = vrcp.f32 %v1715_v58  ;;  %2083 = vst [vmem:[%s4189_s22 + $0x158] sm:$0xff] %v2019_v19 }
 0x286   : > { %v1860_v52 = vsub.f32 2.0, %v1796_v6  ;;  %3101 = vrcp.f32 %v1683_v18  ;;  %2100 = vst [vmem:[%s4189_s22 + $0x1e0] sm:$0xff] %v2036_v61 }
 0x287   : > { %v1940_v25 = vmul.f32 %v3092_v62, %v1876_v53  ;;  %v1877_v54 = vsub.f32 2.0, %v1813_v36  ;;  %v2316_v28 = vpop.f32.mrf.mxu3 }
 0x288   : > { %v1924_v59 = vmul.f32 %v3094_v50, %v1860_v52  ;;  %2412 = vst.msk [vmem:[%s4348_s29 + $0x180] sm:$0xff] %vm627_vm0, %v2316_v28 }
 0x289   : > { %v1941_v5 = vmul.f32 %v3096_v12, %v1877_v54  ;;  %v2004_v33 = vmul.f32 %v4193_v2, %v1940_v25 }
 0x28a   : > { %v3098_v40 = vpop.eup %3097  ;;  %v2189_v10 = vpop.f32.mrf.mxu1  ;;  %v1988_v21 = vmul.f32 %v4684_v0, %v1924_v59 }
 0x28b   : > { %v3100_v43 = vpop.eup %3099  ;;  %v1828_v48 = vmul.f32 %v3098_v40, %v1681_v55  ;;  %2381 = vst.msk [vmem:[%s4348_s29 + $0x88] sm:$0xff] %vm627_vm0, %v2189_v10  ;;  %2221 = vmatmul.f32.gmra.mxu1 %v2004_v33  ;;  %v1619_v24 = vpop.xlane.xlu1 %1618  ;;  %v2005_v23 = vmul.f32 %v4685_v16, %v1941_v5 }
 0x28c   : > { %v3102_v42 = vpop.eup %3101  ;;  %v1845_v56 = vmul.f32 %v3100_v43, %v1715_v58  ;;  %2068 = vst [vmem:[%s4189_s22 + $0xe0] sm:$0xff] %v2004_v33  ;;  %2351 = vmatmul.f32.gmra.mxu3 %v2036_v61  ;;  %3103 = vrcp.f32 %v1619_v24  ;;  %v1685_v2 = vpop.xlane.xlu0 %1684  ;;  %2156 = vmatmul.f32.gmra.mxu0 %v1988_v21 }
 0x28d   : > { %v1621_v51 = vpop.xlane.xlu2 %1620  ;;  %v1892_v20 = vsub.f32 2.0, %v1828_v48  ;;  %v1829_v45 = vmul.f32 %v3102_v42, %v1683_v18  ;;  %3105 = vrcp.f32 %v1685_v2  ;;  %2052 = vst [vmem:[%s4189_s22 + $0x60] sm:$0xff] %v1988_v21 }
 0x28e   : > { %v1909_v8 = vsub.f32 2.0, %v1845_v56  ;;  %3107 = vrcp.f32 %v1621_v51  ;;  %2069 = vst [vmem:[%s4189_s22 + $0xe8] sm:$0xff] %v2005_v23 }
 0x28f   : > { %v1956_v41 = vmul.f32 %v3098_v40, %v1892_v20  ;;  %v1893_v13 = vsub.f32 2.0, %v1829_v45 }
 0x290   : > { %v1973_v63 = vmul.f32 %v3100_v43, %v1909_v8  ;;  %v2121_v32 = vpop.f32.mrf.mxu0  ;;  %v2251_v35 = vpop.f32.mrf.mxu2 }
 0x291   : > { %v1957_v15 = vmul.f32 %v3102_v42, %v1893_v13  ;;  %2364 = vst.msk [vmem:[%s4348_s29] sm:$0xff] %vm627_vm0, %v2121_v32  ;;  %v2020_v26 = vmul.f32 %v4212_v44, %v1956_v41 }
 0x292   : > { %v3104_v47 = vpop.eup %3103  ;;  %2396 = vst.msk [vmem:[%s4348_s29 + $0x100] sm:$0xff] %vm627_vm0, %v2251_v35  ;;  %v2037_v3 = vmul.f32 %v4216_v4, %v1973_v63 }
 0x293   : > { %v3106_v7 = vpop.eup %3105  ;;  %v1797_v29 = vmul.f32 %v3104_v47, %v1619_v24  ;;  %2224 = vmatmul.f32.gmra.mxu1 %v2005_v23  ;;  %2084 = vst [vmem:[%s4189_s22 + $0x160] sm:$0xff] %v2020_v26  ;;  %2286 = vmatmul.f32.gmra.mxu2 %v2020_v26  ;;  %v1717_v37 = vpop.xlane.xlu1 %1716  ;;  %v2021_v60 = vmul.f32 %v4214_v1, %v1957_v15 }
 0x294   : > { %v3108_v9 = vpop.eup %3107  ;;  %v1830_v27 = vmul.f32 %v3106_v7, %v1685_v2  ;;  %3109 = vrcp.f32 %v1717_v37  ;;  %v1653_v34 = vpop.xlane.xlu0 %1652  ;;  %2101 = vst [vmem:[%s4189_s22 + $0x1e8] sm:$0xff] %v2037_v3  ;;  %2354 = vmatmul.f32.gmra.mxu3 %v2037_v3 }
 0x295   : > { %v1719_v44 = vpop.xlane.xlu2 %1718  ;;  %v1861_v62 = vsub.f32 2.0, %v1797_v29  ;;  %v1798_v4 = vmul.f32 %v3108_v9, %v1621_v51  ;;  %3111 = vrcp.f32 %v1653_v34  ;;  %2085 = vst [vmem:[%s4189_s22 + $0x168] sm:$0xff] %v2021_v60 }
 0x296   : > { %v1894_v17 = vsub.f32 2.0, %v1830_v27  ;;  %3113 = vrcp.f32 %v1719_v44 }
 0x297   : > { %v1925_v19 = vmul.f32 %v3104_v47, %v1861_v62  ;;  %v1862_v50 = vsub.f32 2.0, %v1798_v4 }
 0x298   : > { %v1958_v22 = vmul.f32 %v3106_v7, %v1894_v17  ;;  %v2124_v1 = vpop.f32.mrf.mxu0  ;;  %v2254_v55 = vpop.f32.mrf.mxu2 }
 0x299   : > { %v1926_v61 = vmul.f32 %v3108_v9, %v1862_v50  ;;  %2365 = vst.msk [vmem:[%s4348_s29 + $0x8] sm:$0xff] %vm627_vm0, %v2124_v1  ;;  %v1989_v12 = vmul.f32 %v4233_v57, %v1925_v19 }
 0x29a   : > { %v3110_v6 = vpop.eup %3109  ;;  %2397 = vst.msk [vmem:[%s4348_s29 + $0x108] sm:$0xff] %vm627_vm0, %v2254_v55  ;;  %v2022_v58 = vmul.f32 %v4237_v31, %v1958_v22 }
 0x29b   : > { %v3112_v18 = vpop.eup %3111  ;;  %v1846_v53 = vmul.f32 %v3110_v6, %v1717_v37  ;;  %2053 = vst [vmem:[%s4189_s22 + $0x68] sm:$0xff] %v1989_v12  ;;  %2159 = vmatmul.f32.gmra.mxu0 %v1989_v12  ;;  %2289 = vmatmul.f32.gmra.mxu2 %v2021_v60  ;;  %v1687_v36 = vpop.xlane.xlu1 %1686  ;;  %v1990_v52 = vmul.f32 %v4235_v38, %v1926_v61 }
 0x29c   : > { %v3114_v25 = vpop.eup %3113  ;;  %v1814_v54 = vmul.f32 %v3112_v18, %v1653_v34  ;;  %3115 = vrcp.f32 %v1687_v36  ;;  %v1623_v57 = vpop.xlane.xlu0 %1622  ;;  %2086 = vst [vmem:[%s4189_s22 + $0x170] sm:$0xff] %v2022_v58 }
 0x29d   : > { %v1910_v28 = vsub.f32 2.0, %v1846_v53  ;;  %v1847_v59 = vmul.f32 %v3114_v25, %v1719_v44  ;;  %3117 = vrcp.f32 %v1623_v57  ;;  %2054 = vst [vmem:[%s4189_s22 + $0x70] sm:$0xff] %v1990_v52 }
 0x29e   : > { %v1878_v31 = vsub.f32 2.0, %v1814_v54  ;;  %v2319_v5 = vpop.f32.mrf.mxu3 }
 0x29f   : > { %v1974_v33 = vmul.f32 %v3110_v6, %v1910_v28  ;;  %v1911_v40 = vsub.f32 2.0, %v1847_v59  ;;  %2413 = vst.msk [vmem:[%s4348_s29 + $0x188] sm:$0xff] %vm627_vm0, %v2319_v5 }
 0x2a0   : > { %v1942_v10 = vmul.f32 %v3112_v18, %v1878_v31  ;;  %v2127_v38 = vpop.f32.mrf.mxu0  ;;  %v2192_v0 = vpop.f32.mrf.mxu1 }
 0x2a1   : > { %v1975_v21 = vmul.f32 %v3114_v25, %v1911_v40  ;;  %2366 = vst.msk [vmem:[%s4348_s29 + $0x10] sm:$0xff] %vm627_vm0, %v2127_v38  ;;  %v2038_v43 = vmul.f32 %v4254_v30, %v1974_v33 }
 0x2a2   : > { %v3116_v48 = vpop.eup %3115  ;;  %2382 = vst.msk [vmem:[%s4348_s29 + $0x90] sm:$0xff] %vm627_vm0, %v2192_v0  ;;  %v2006_v24 = vmul.f32 %v4252_v11, %v1942_v10 }
 0x2a3   : > { %v3118_v16 = vpop.eup %3117  ;;  %v1831_v23 = vmul.f32 %v3116_v48, %v1687_v36  ;;  %2162 = vmatmul.f32.gmra.mxu0 %v1990_v52  ;;  %2292 = vmatmul.f32.gmra.mxu2 %v2022_v58  ;;  %2102 = vst [vmem:[%s4189_s22 + $0x1f0] sm:$0xff] %v2038_v43  ;;  %v1655_v42 = vpop.xlane.xlu1 %1654  ;;  %v2039_v56 = vmul.f32 %v4256_v39, %v1975_v21 }
 0x2a4   : > { %v1799_v2 = vmul.f32 %v3118_v16, %v1623_v57  ;;  %2357 = vmatmul.f32.gmra.mxu3 %v2038_v43  ;;  %3119 = vrcp.f32 %v1655_v42  ;;  %2070 = vst [vmem:[%s4189_s22 + $0xf0] sm:$0xff] %v2006_v24  ;;  %2227 = vmatmul.f32.gmra.mxu1 %v2006_v24 }
 0x2a5   : > { %v1895_v30 = vsub.f32 2.0, %v1831_v23  ;;  %2103 = vst [vmem:[%s4189_s22 + $0x1f8] sm:$0xff] %v2039_v56 }
 0x2a6   : > { %v1863_v11 = vsub.f32 2.0, %v1799_v2 }
 0x2a7   : > { %v1959_v51 = vmul.f32 %v3116_v48, %v1895_v30  ;;  %v2322_v20 = vpop.f32.mrf.mxu3 }
 0x2a8   : > { %v1927_v45 = vmul.f32 %v3118_v16, %v1863_v11  ;;  %2414 = vst.msk [vmem:[%s4348_s29 + $0x190] sm:$0xff] %vm627_vm0, %v2322_v20  ;;  %v2130_v8 = vpop.f32.mrf.mxu0  ;;  %v2195_v41 = vpop.f32.mrf.mxu1 }
 0x2a9   : > { %2367 = vst.msk [vmem:[%s4348_s29 + $0x18] sm:$0xff] %vm627_vm0, %v2130_v8  ;;  %v2023_v39 = vmul.f32 %v4269_v46, %v1959_v51 }
 0x2aa   : > { %v3120_v13 = vpop.eup %3119  ;;  %2383 = vst.msk [vmem:[%s4348_s29 + $0x98] sm:$0xff] %vm627_vm0, %v2195_v41  ;;  %v1991_v63 = vmul.f32 %v4271_v49, %v1927_v45 }
 0x2ab   : > { %v1815_v32 = vmul.f32 %v3120_v13, %v1655_v42  ;;  %2087 = vst [vmem:[%s4189_s22 + $0x178] sm:$0xff] %v2023_v39  ;;  %2295 = vmatmul.f32.gmra.mxu2 %v2023_v39 }
 0x2ac   : > { %2360 = vmatmul.f32.gmra.mxu3 %v2039_v56  ;;  %2055 = vst [vmem:[%s4189_s22 + $0x78] sm:$0xff] %v1991_v63  ;;  %2165 = vmatmul.f32.gmra.mxu0 %v1991_v63 }
 0x2ad   : > { %v1879_v35 = vsub.f32 2.0, %v1815_v32 }
 0x2af   : > { %v1943_v15 = vmul.f32 %v3120_v13, %v1879_v35  ;;  %v2257_v26 = vpop.f32.mrf.mxu2  ;;  %v2325_v46 = vpop.f32.mrf.mxu3 }
 0x2b0   : > { %2398 = vst.msk [vmem:[%s4348_s29 + $0x110] sm:$0xff] %vm627_vm0, %v2257_v26  ;;  %v2133_v47 = vpop.f32.mrf.mxu0 }
 0x2b1   : > { %2368 = vst.msk [vmem:[%s4348_s29 + $0x20] sm:$0xff] %vm627_vm0, %v2133_v47  ;;  %v2007_v49 = vmul.f32 %v4281_v14, %v1943_v15 }
 0x2b2   : > { %2415 = vst.msk [vmem:[%s4348_s29 + $0x198] sm:$0xff] %vm627_vm0, %v2325_v46  ;;  %v2198_v3 = vpop.f32.mrf.mxu1 }
 0x2b3   : > { %2384 = vst.msk [vmem:[%s4348_s29 + $0xa0] sm:$0xff] %vm627_vm0, %v2198_v3  ;;  %2230 = vmatmul.f32.gmra.mxu1 %v2007_v49 }
 0x2b4   : > { %2071 = vst [vmem:[%s4189_s22 + $0xf8] sm:$0xff] %v2007_v49 }
 0x2b5   : > { %3148 = shalt.err (!%p3145_p5)
}
 0x2b6   : > { %s3201_s14 = smov 128   ;;  %s3202_s22 = smov 8  }
 0x2b7   : > { %2808 = dma.vmem_to_hbm [thread:$0]  (%p3268_p4), %s2466_s8, 8192, %s2468_s9, %s2443_s18, %s3201_s14, %s3201_s14, %s3202_s22   ;;  %v2260_v14 = vpop.f32.mrf.mxu2 }
 0x2b8   : > { %2399 = vst.msk [vmem:[%s4348_s29 + $0x118] sm:$0xff] %vm627_vm0, %v2260_v14  ;;  %v2136_v7 = vpop.f32.mrf.mxu0 }
 0x2b9   : > { %2369 = vst.msk [vmem:[%s4348_s29 + $0x28] sm:$0xff] %vm627_vm0, %v2136_v7 }
 0x2bf   : > { %v2263_v29 = vpop.f32.mrf.mxu2 }
 0x2c0   : > { %2400 = vst.msk [vmem:[%s4348_s29 + $0x120] sm:$0xff] %vm627_vm0, %v2263_v29  ;;  %v2201_v37 = vpop.f32.mrf.mxu1  ;;  %v2328_v60 = vpop.f32.mrf.mxu3 }
 0x2c1   : > { %2385 = vst.msk [vmem:[%s4348_s29 + $0xa8] sm:$0xff] %vm627_vm0, %v2201_v37 }
 0x2c2   : > { %2416 = vst.msk [vmem:[%s4348_s29 + $0x1a0] sm:$0xff] %vm627_vm0, %v2328_v60  ;;  %v2139_v9 = vpop.f32.mrf.mxu0 }
 0x2c3   : > { %2370 = vst.msk [vmem:[%s4348_s29 + $0x30] sm:$0xff] %vm627_vm0, %v2139_v9 }
 0x2c7   : > { %v2266_v27 = vpop.f32.mrf.mxu2 }
 0x2c8   : > { %2401 = vst.msk [vmem:[%s4348_s29 + $0x128] sm:$0xff] %vm627_vm0, %v2266_v27  ;;  %v2204_v34 = vpop.f32.mrf.mxu1 }
 0x2c9   : > { %2386 = vst.msk [vmem:[%s4348_s29 + $0xb0] sm:$0xff] %vm627_vm0, %v2204_v34 }
 0x2ce   : > { %v2331_v44 = vpop.f32.mrf.mxu3 }
 0x2cf   : > { %2417 = vst.msk [vmem:[%s4348_s29 + $0x1a8] sm:$0xff] %vm627_vm0, %v2331_v44 }
 0x2d0   : > { %v2142_v62 = vpop.f32.mrf.mxu0  ;;  %v2269_v4 = vpop.f32.mrf.mxu2 }
 0x2d1   : > { %2371 = vst.msk [vmem:[%s4348_s29 + $0x38] sm:$0xff] %vm627_vm0, %v2142_v62 }
 0x2d2   : > { %2402 = vst.msk [vmem:[%s4348_s29 + $0x130] sm:$0xff] %vm627_vm0, %v2269_v4  ;;  %v2207_v17 = vpop.f32.mrf.mxu1 }
 0x2d3   : > { %2387 = vst.msk [vmem:[%s4348_s29 + $0xb8] sm:$0xff] %vm627_vm0, %v2207_v17 }
 0x2d6   : > { %v2334_v19 = vpop.f32.mrf.mxu3 }
 0x2d7   : > { %2418 = vst.msk [vmem:[%s4348_s29 + $0x1b0] sm:$0xff] %vm627_vm0, %v2334_v19 }
 0x2d8   : > { %v2145_v50 = vpop.f32.mrf.mxu0 }
 0x2d9   : > { %2372 = vst.msk [vmem:[%s4348_s29 + $0x40] sm:$0xff] %vm627_vm0, %v2145_v50 }
 0x2de   : > { %v2272_v22 = vpop.f32.mrf.mxu2 }
 0x2df   : > { %2403 = vst.msk [vmem:[%s4348_s29 + $0x138] sm:$0xff] %vm627_vm0, %v2272_v22 }
 0x2e0   : > { %v2210_v1 = vpop.f32.mrf.mxu1  ;;  %v2337_v55 = vpop.f32.mrf.mxu3 }
 0x2e1   : > { %2388 = vst.msk [vmem:[%s4348_s29 + $0xc0] sm:$0xff] %vm627_vm0, %v2210_v1  ;;  %v2148_v61 = vpop.f32.mrf.mxu0 }
 0x2e2   : > { %2419 = vst.msk [vmem:[%s4348_s29 + $0x1b8] sm:$0xff] %vm627_vm0, %v2337_v55 }
 0x2e3   : > { %2373 = vst.msk [vmem:[%s4348_s29 + $0x48] sm:$0xff] %vm627_vm0, %v2148_v61 }
 0x2e6   : > { %v2275_v12 = vpop.f32.mrf.mxu2 }
 0x2e7   : > { %2404 = vst.msk [vmem:[%s4348_s29 + $0x140] sm:$0xff] %vm627_vm0, %v2275_v12 }
 0x2ee   : > { %v2278_v6 = vpop.f32.mrf.mxu2  ;;  %v2340_v58 = vpop.f32.mrf.mxu3 }
 0x2ef   : > { %2405 = vst.msk [vmem:[%s4348_s29 + $0x148] sm:$0xff] %vm627_vm0, %v2278_v6 }
 0x2f0   : > { %2420 = vst.msk [vmem:[%s4348_s29 + $0x1c0] sm:$0xff] %vm627_vm0, %v2340_v58  ;;  %v2213_v18 = vpop.f32.mrf.mxu1 }
 0x2f1   : > { %2389 = vst.msk [vmem:[%s4348_s29 + $0xc8] sm:$0xff] %vm627_vm0, %v2213_v18 }
 0x2f6   : > { %v2343_v53 = vpop.f32.mrf.mxu3 }
 0x2f7   : > { %2421 = vst.msk [vmem:[%s4348_s29 + $0x1c8] sm:$0xff] %vm627_vm0, %v2343_v53 }
 0x2f8   : > { %v2151_v36 = vpop.f32.mrf.mxu0  ;;  %v2216_v52 = vpop.f32.mrf.mxu1 }
 0x2f9   : > { %2374 = vst.msk [vmem:[%s4348_s29 + $0x50] sm:$0xff] %vm627_vm0, %v2151_v36  ;;  %v2281_v25 = vpop.f32.mrf.mxu2 }
 0x2fa   : > { %2390 = vst.msk [vmem:[%s4348_s29 + $0xd0] sm:$0xff] %vm627_vm0, %v2216_v52 }
 0x2fb   : > { %2406 = vst.msk [vmem:[%s4348_s29 + $0x150] sm:$0xff] %vm627_vm0, %v2281_v25 }
 0x2ff   : > { %v2346_v54 = vpop.f32.mrf.mxu3 }
 0x300   : > { %2422 = vst.msk [vmem:[%s4348_s29 + $0x1d0] sm:$0xff] %vm627_vm0, %v2346_v54  ;;  %v2154_v57 = vpop.f32.mrf.mxu0  ;;  %v2219_v28 = vpop.f32.mrf.mxu1 }
 0x301   : > { %2375 = vst.msk [vmem:[%s4348_s29 + $0x58] sm:$0xff] %vm627_vm0, %v2154_v57 }
 0x302   : > { %2391 = vst.msk [vmem:[%s4348_s29 + $0xd8] sm:$0xff] %vm627_vm0, %v2219_v28 }
 0x307   : > { %v2349_v59 = vpop.f32.mrf.mxu3  ;;  %v2284_v31 = vpop.f32.mrf.mxu2 }
 0x308   : > { %2423 = vst.msk [vmem:[%s4348_s29 + $0x1d8] sm:$0xff] %vm627_vm0, %v2349_v59  ;;  %v2222_v5 = vpop.f32.mrf.mxu1 }
 0x309   : > { %2392 = vst.msk [vmem:[%s4348_s29 + $0xe0] sm:$0xff] %vm627_vm0, %v2222_v5  ;;  %v2157_v33 = vpop.f32.mrf.mxu0 }
 0x30a   : > { %2407 = vst.msk [vmem:[%s4348_s29 + $0x158] sm:$0xff] %vm627_vm0, %v2284_v31 }
 0x30b   : > { %2376 = vst.msk [vmem:[%s4348_s29 + $0x60] sm:$0xff] %vm627_vm0, %v2157_v33 }
 0x30f   : > { %v2352_v40 = vpop.f32.mrf.mxu3 }
 0x310   : > { %2424 = vst.msk [vmem:[%s4348_s29 + $0x1e0] sm:$0xff] %vm627_vm0, %v2352_v40  ;;  %v2225_v10 = vpop.f32.mrf.mxu1 }
 0x311   : > { %2393 = vst.msk [vmem:[%s4348_s29 + $0xe8] sm:$0xff] %vm627_vm0, %v2225_v10 }
 0x316   : > { %v2287_v38 = vpop.f32.mrf.mxu2 }
 0x317   : > { %2408 = vst.msk [vmem:[%s4348_s29 + $0x160] sm:$0xff] %vm627_vm0, %v2287_v38  ;;  %v2355_v0 = vpop.f32.mrf.mxu3 }
 0x318   : > { %v2160_v21 = vpop.f32.mrf.mxu0  ;;  %2425 = vst.msk [vmem:[%s4348_s29 + $0x1e8] sm:$0xff] %vm627_vm0, %v2355_v0 }
 0x319   : > { %2377 = vst.msk [vmem:[%s4348_s29 + $0x68] sm:$0xff] %vm627_vm0, %v2160_v21 }
 0x31e   : > { %v2290_v43 = vpop.f32.mrf.mxu2 }
 0x31f   : > { %2409 = vst.msk [vmem:[%s4348_s29 + $0x168] sm:$0xff] %vm627_vm0, %v2290_v43 }
 0x320   : > { %v2163_v48 = vpop.f32.mrf.mxu0 }
 0x321   : > { %2378 = vst.msk [vmem:[%s4348_s29 + $0x70] sm:$0xff] %vm627_vm0, %v2163_v48  ;;  %v2228_v24 = vpop.f32.mrf.mxu1 }
 0x322   : > { %2394 = vst.msk [vmem:[%s4348_s29 + $0xf0] sm:$0xff] %vm627_vm0, %v2228_v24 }
 0x326   : > { %v2293_v16 = vpop.f32.mrf.mxu2 }
 0x327   : > { %2410 = vst.msk [vmem:[%s4348_s29 + $0x170] sm:$0xff] %vm627_vm0, %v2293_v16  ;;  %v2358_v23 = vpop.f32.mrf.mxu3 }
 0x328   : > { %2426 = vst.msk [vmem:[%s4348_s29 + $0x1f0] sm:$0xff] %vm627_vm0, %v2358_v23 }
 0x329   : > { %v2166_v42 = vpop.f32.mrf.mxu0 }
 0x32a   : > { %2379 = vst.msk [vmem:[%s4348_s29 + $0x78] sm:$0xff] %vm627_vm0, %v2166_v42 }
 0x32e   : > { %v2296_v56 = vpop.f32.mrf.mxu2 }
 0x32f   : > { %2411 = vst.msk [vmem:[%s4348_s29 + $0x178] sm:$0xff] %vm627_vm0, %v2296_v56  ;;  %v2361_v2 = vpop.f32.mrf.mxu3 }
 0x330   : > { %2427 = vst.msk [vmem:[%s4348_s29 + $0x1f8] sm:$0xff] %vm627_vm0, %v2361_v2  ;;  %v2231_v30 = vpop.f32.mrf.mxu1 }
 0x331   : > { %2395 = vst.msk [vmem:[%s4348_s29 + $0xf8] sm:$0xff] %vm627_vm0, %v2231_v30 }
 0x332 PF: > { %p2814_p4 = scmp.ge.s32.totalorder %s3199_s20, 2  ;;  %s2499_s25 = sand.u32 1, %s3179_s15  }
 0x333   : > { %s2500_s30 = scalar_lea.sflag [#allocation3], %s2499_s25 }
 0x334   : > { %p2811_p6 = pnand %p2814_p4, %p3275_p8 }
 0x336   : > { %p2812_p7 = pneg %p2811_p6 }
 0x338   : > { %3174 = dma.done.wait (%p2812_p7), %s2500_s30, 8192  }
 0x339   : > { %3176 = vsyncadd (%p2812_p7), %s2500_s30, 4294959104  ;;  %s18_s20 = sadd.s32 1, %s3199_s20   ;;  %s4686_s15 = smov %s3183_s16 }
 0x33a   : > { %p15_p9 = scmp.ge.s32.totalorder %s18_s20, 4   ;;  %s4687_s16 = smov %s3187_s17 }
 0x33b   : > { %s4688_s17 = smov %s3281_s28  ;;  %s4689_s18 = smov %s3195_s19 }
 0x33c   : > { %s4690_s19 = smov %s4692_s23  ;;  %17 = sbr.rel (!%p15_p9) target bundleno = 4 (0x4), region = 85 }
 0x341   :  { %2506 = vsyncpa [#allocation3], 1 }
 0x342   :  { %2508 = vsyncpa [#allocation3 + $0x1], 1 }

// kernel: tpu_custom_call.1
= control target key start
LH: loop header
LB: loop body
LE: loop exit
PB: predicated region body
PF: predicated region fallthrough
CT: control target
= control target key end

     0   :  { %10 = vsyncpa [#allocation3], 0  ;;  %s4547_s0 = inlined_call_operand.vmem [shape: f32[2,4,128,64], index: 0, kind: input, shape index: {}]   ;;  %s4548_s1 = inlined_call_operand.vmem [shape: f32[2,4,128,64], index: 1, kind: input, shape index: {}]   ;;  %s4549_s2 = inlined_call_operand.vmem [shape: f32[2,4,128,64], index: 2, kind: input, shape index: {}]   ;;  %s4550_s3 = inlined_call_operand.vmem [shape: f32[2,4,128,64], index: 3, kind: output, shape index: {0}]   ;;  %s4551_s4 = inlined_call_operand.hbm [shape: f32[2,4,128,128], index: 4, kind: output, shape index: {1}]  }
   0x1   :  { %12 = vsyncpa [#allocation3 + $0x1], 0  ;;  %s3222_s15 = smov 0   ;;  %s3224_s16 = smov 0  }
   0x2   :  { %s3226_s17 = smov 0   ;;  %s3228_s18 = smov 0  }
   0x3   :  { %s3230_s19 = smov 0   ;;  %s3232_s20 = smov 0  }
   0x4 LB: > { %s2650_s21 = sadd.s32 4294967295, %s3193_s20   ;;  %s2651_s22 = sadd.s32 4294967294, %s3193_s20   ;;  %s3193_s20 = sphi %s3232_s20, %s18_s20   ;;  %s3189_s19 = sphi %s3230_s19, %s4684_s19   ;;  %s3185_s18 = sphi %s3228_s18, %s4683_s18   ;;  %s3181_s17 = sphi %s3226_s17, %s4682_s17   ;;  %s3177_s16 = sphi %s3224_s16, %s4681_s16   ;;  %s3173_s15 = sphi %s3222_s15, %s4680_s15  }
   0x5   : > { %s37_s23 = sadd.s32 1, %s3189_s19  ;;  %s164_s24 = sadd.s32 1, %s3181_s17 }
   0x6   : > { %p39_p0 = scmp.ge.s32.totalorder %s37_s23, 2  ;;  %p174_p1 = scmp.ne.s32.totalorder %s3181_s17, %s3177_s16 }
   0x7   : > { %p175_p2 = scmp.eq.s32.totalorder %s2650_s21, 1  ;;  %p180_p3 = scmp.ne.s32.totalorder %s3177_s16, %s3173_s15 }
   0x8   : > { %s4686_s23 = smov (%p39_p0, %s37_s23), 0  ;;  %p181_p5 = scmp.eq.s32.totalorder %s2651_s22, 1 }
   0x9   : > { %p3262_p4 = por %p175_p2, %p174_p1  ;;  %s157_s26 = ssub.s32 %s3189_s19, %s4686_s23 }
   0xa   : > { %p2654_p6 = scmp.ge.s32.totalorder %s3193_s20, 1  ;;  %p162_p7 = scmp.eq.s32.totalorder %s157_s26, 0 }
   0xb   : > { %p3269_p8 = por %p181_p5, %p180_p3  ;;  %p246_p9 = scmp.lt.s32.totalorder %s3193_s20, 3 }
   0xc   : > { %s3275_s28 = scalar_select %p162_p7, %s3181_s17, %s164_s24  }
   0xd   : > { %p247_p10 = pnand %p2654_p6, %p246_p9 }
   0xf   : > { %250 = sbr.rel (%p247_p10) target bundleno = 818 (0x332), region = 32 }
  0x14   : > { %p317_p11 = scmp.lt.s32.totalorder %s3185_s18, 1  ;;  %vm627_vm0 = vcmask 523264   ;;  %s312_s14 = sand.u32 1, %s3177_s16  }
  0x15   : > { %s2655_s21 = sshll.u32 %s312_s14, 9 }
  0x16   : > { %s318_s29 = scalar_select %p317_p11, %s3185_s18, 1 }
  0x17   : > { %s4183_s22 = scalar_lea.vmem [#allocation2], %s2655_s21  ;;  %s3135_s21 = scalar_lea.hbm %s4551_s4, 1024 }
  0x18   : > { %s3279_s30 = sshll.u32 %s318_s29, 9  ;;  %s2465_s8 = sshll.u32 %s4183_s22, 4  ;;  %s2466_s8 = int_to_ptr.vmem [resolvable:$true] %s2465_s8 }
  0x19   : > { %s3285_s7 = scalar_lea.vmem %s4548_s1, %s3279_s30  ;;  %s3405_s10 = scalar_lea.vmem %s4547_s0, %s3279_s30 }
  0x1a   : > { %v514_v0 = vld [vmem:[%s3285_s7 + $0x78] sm:$0xff]  ;;  %v513_v4 = vld [vmem:[%s3285_s7 + $0x70] sm:$0xff]  ;;  %v512_v8 = vld [vmem:[%s3285_s7 + $0x68] sm:$0xff]  ;;  %s3832_s13 = scalar_lea.vmem %s4549_s2, %s3279_s30  ;;  %s4342_s29 = scalar_lea.vmem %s4550_s3, %s3279_s30 }
  0x1b   : > { %v530_v1 = vld [vmem:[%s3285_s7 + $0xf8] sm:$0xff]  ;;  %2664 = vmatpush.xpose.msk.msra.mxu0 %vm627_vm0, %v514_v0  ;;  %v529_v5 = vld [vmem:[%s3285_s7 + $0xf0] sm:$0xff]  ;;  %v528_v9 = vld [vmem:[%s3285_s7 + $0xe8] sm:$0xff]  ;;  %s2801_s30 = sshll.u32 %s3185_s18, 9  ;;  %s2443_s18 = scalar_lea.sflag [#allocation3], %s312_s14 }
  0x1c   : > { %v562_v2 = vld [vmem:[%s3285_s7 + $0x1f8] sm:$0xff]  ;;  %2696 = vmatpush.xpose.msk.msra.mxu1 %vm627_vm0, %v530_v1  ;;  %v561_v6 = vld [vmem:[%s3285_s7 + $0x1f0] sm:$0xff]  ;;  %v560_v10 = vld [vmem:[%s3285_s7 + $0x1e8] sm:$0xff] }
  0x1d   : > { %v546_v3 = vld [vmem:[%s3285_s7 + $0x178] sm:$0xff]  ;;  %2760 = vmatpush.xpose.msk.msra.mxu3 %vm627_vm0, %v562_v2  ;;  %v545_v7 = vld [vmem:[%s3285_s7 + $0x170] sm:$0xff]  ;;  %v544_v11 = vld [vmem:[%s3285_s7 + $0x168] sm:$0xff] }
  0x1e   : > { %2728 = vmatpush.xpose.msk.msra.mxu2 %vm627_vm0, %v546_v3  ;;  %v511_v12 = vld [vmem:[%s3285_s7 + $0x60] sm:$0xff]  ;;  %v510_v16 = vld [vmem:[%s3285_s7 + $0x58] sm:$0xff]  ;;  %v509_v20 = vld [vmem:[%s3285_s7 + $0x50] sm:$0xff] }
  0x1f   : > { %2665 = vmatpush.xpose.msk.msra.mxu0 %vm627_vm0, %v513_v4  ;;  %v527_v13 = vld [vmem:[%s3285_s7 + $0xe0] sm:$0xff]  ;;  %v526_v17 = vld [vmem:[%s3285_s7 + $0xd8] sm:$0xff]  ;;  %v525_v21 = vld [vmem:[%s3285_s7 + $0xd0] sm:$0xff] }
  0x20   : > { %2697 = vmatpush.xpose.msk.msra.mxu1 %vm627_vm0, %v529_v5  ;;  %v559_v14 = vld [vmem:[%s3285_s7 + $0x1e0] sm:$0xff]  ;;  %v558_v18 = vld [vmem:[%s3285_s7 + $0x1d8] sm:$0xff]  ;;  %v557_v22 = vld [vmem:[%s3285_s7 + $0x1d0] sm:$0xff] }
  0x21   : > { %2761 = vmatpush.xpose.msk.msra.mxu3 %vm627_vm0, %v561_v6  ;;  %v543_v15 = vld [vmem:[%s3285_s7 + $0x160] sm:$0xff]  ;;  %v542_v19 = vld [vmem:[%s3285_s7 + $0x158] sm:$0xff]  ;;  %v541_v23 = vld [vmem:[%s3285_s7 + $0x150] sm:$0xff] }
  0x22   : > { %2729 = vmatpush.xpose.msk.msra.mxu2 %vm627_vm0, %v545_v7  ;;  %v508_v24 = vld [vmem:[%s3285_s7 + $0x48] sm:$0xff]  ;;  %v507_v28 = vld [vmem:[%s3285_s7 + $0x40] sm:$0xff]  ;;  %v506_v32 = vld [vmem:[%s3285_s7 + $0x38] sm:$0xff] }
  0x23   : > { %2666 = vmatpush.xpose.msk.msra.mxu0 %vm627_vm0, %v512_v8  ;;  %v524_v25 = vld [vmem:[%s3285_s7 + $0xc8] sm:$0xff]  ;;  %v523_v29 = vld [vmem:[%s3285_s7 + $0xc0] sm:$0xff]  ;;  %v522_v33 = vld [vmem:[%s3285_s7 + $0xb8] sm:$0xff] }
  0x24   : > { %2698 = vmatpush.xpose.msk.msra.mxu1 %vm627_vm0, %v528_v9  ;;  %v556_v26 = vld [vmem:[%s3285_s7 + $0x1c8] sm:$0xff]  ;;  %v555_v30 = vld [vmem:[%s3285_s7 + $0x1c0] sm:$0xff]  ;;  %v554_v34 = vld [vmem:[%s3285_s7 + $0x1b8] sm:$0xff] }
  0x25   : > { %2762 = vmatpush.xpose.msk.msra.mxu3 %vm627_vm0, %v560_v10  ;;  %v540_v27 = vld [vmem:[%s3285_s7 + $0x148] sm:$0xff]  ;;  %v539_v31 = vld [vmem:[%s3285_s7 + $0x140] sm:$0xff]  ;;  %v538_v35 = vld [vmem:[%s3285_s7 + $0x138] sm:$0xff] }
  0x26   : > { %2730 = vmatpush.xpose.msk.msra.mxu2 %vm627_vm0, %v544_v11  ;;  %v505_v36 = vld [vmem:[%s3285_s7 + $0x30] sm:$0xff]  ;;  %v504_v40 = vld [vmem:[%s3285_s7 + $0x28] sm:$0xff]  ;;  %v503_v44 = vld [vmem:[%s3285_s7 + $0x20] sm:$0xff] }
  0x27   : > { %2667 = vmatpush.xpose.msk.msra.mxu0 %vm627_vm0, %v511_v12  ;;  %v521_v37 = vld [vmem:[%s3285_s7 + $0xb0] sm:$0xff]  ;;  %v520_v41 = vld [vmem:[%s3285_s7 + $0xa8] sm:$0xff]  ;;  %v519_v45 = vld [vmem:[%s3285_s7 + $0xa0] sm:$0xff] }
  0x28   : > { %2699 = vmatpush.xpose.msk.msra.mxu1 %vm627_vm0, %v527_v13  ;;  %v553_v38 = vld [vmem:[%s3285_s7 + $0x1b0] sm:$0xff]  ;;  %v552_v42 = vld [vmem:[%s3285_s7 + $0x1a8] sm:$0xff]  ;;  %v551_v46 = vld [vmem:[%s3285_s7 + $0x1a0] sm:$0xff] }
  0x29   : > { %2763 = vmatpush.xpose.msk.msra.mxu3 %vm627_vm0, %v559_v14  ;;  %v537_v39 = vld [vmem:[%s3285_s7 + $0x130] sm:$0xff]  ;;  %v536_v43 = vld [vmem:[%s3285_s7 + $0x128] sm:$0xff]  ;;  %v535_v47 = vld [vmem:[%s3285_s7 + $0x120] sm:$0xff] }
  0x2a   : > { %2731 = vmatpush.xpose.msk.msra.mxu2 %vm627_vm0, %v543_v15  ;;  %v502_v48 = vld [vmem:[%s3285_s7 + $0x18] sm:$0xff]  ;;  %v501_v52 = vld [vmem:[%s3285_s7 + $0x10] sm:$0xff]  ;;  %v500_v56 = vld [vmem:[%s3285_s7 + $0x8] sm:$0xff] }
  0x2b   : > { %2668 = vmatpush.xpose.msk.msra.mxu0 %vm627_vm0, %v510_v16  ;;  %v518_v49 = vld [vmem:[%s3285_s7 + $0x98] sm:$0xff]  ;;  %v517_v53 = vld [vmem:[%s3285_s7 + $0x90] sm:$0xff]  ;;  %v516_v57 = vld [vmem:[%s3285_s7 + $0x88] sm:$0xff] }
  0x2c   : > { %2700 = vmatpush.xpose.msk.msra.mxu1 %vm627_vm0, %v526_v17  ;;  %v550_v50 = vld [vmem:[%s3285_s7 + $0x198] sm:$0xff]  ;;  %v549_v54 = vld [vmem:[%s3285_s7 + $0x190] sm:$0xff]  ;;  %v548_v58 = vld [vmem:[%s3285_s7 + $0x188] sm:$0xff] }
  0x2d   : > { %2764 = vmatpush.xpose.msk.msra.mxu3 %vm627_vm0, %v558_v18  ;;  %v534_v51 = vld [vmem:[%s3285_s7 + $0x118] sm:$0xff]  ;;  %v533_v55 = vld [vmem:[%s3285_s7 + $0x110] sm:$0xff]  ;;  %v532_v59 = vld [vmem:[%s3285_s7 + $0x108] sm:$0xff] }
  0x2e   : > { %2732 = vmatpush.xpose.msk.msra.mxu2 %vm627_vm0, %v542_v19  ;;  %v499_v60 = vld [vmem:[%s3285_s7] sm:$0xff]  ;;  %v372_v8 = vld [vmem:[%s3405_s10 + $0x8] sm:$0xff]  ;;  %v373_v16 = vld [vmem:[%s3405_s10 + $0x10] sm:$0xff] }
  0x2f   : > { %2669 = vmatpush.xpose.msk.msra.mxu0 %vm627_vm0, %v509_v20  ;;  %v371_v61 = vld [vmem:[%s3405_s10] sm:$0xff]  ;;  %v388_v9 = vld [vmem:[%s3405_s10 + $0x88] sm:$0xff]  ;;  %v436_v12 = vmul.f32 0.125, %v372_v8  ;;  %v389_v17 = vld [vmem:[%s3405_s10 + $0x90] sm:$0xff]  ;;  %v437_v20 = vmul.f32 0.125, %v373_v16 }
  0x30   : > { %2701 = vmatpush.xpose.msk.msra.mxu1 %vm627_vm0, %v525_v21  ;;  %v387_v62 = vld [vmem:[%s3405_s10 + $0x80] sm:$0xff]  ;;  %v435_v4 = vmul.f32 0.125, %v371_v61  ;;  %v420_v10 = vld [vmem:[%s3405_s10 + $0x188] sm:$0xff]  ;;  %v452_v13 = vmul.f32 0.125, %v388_v9  ;;  %v421_v18 = vld [vmem:[%s3405_s10 + $0x190] sm:$0xff]  ;;  %v453_v21 = vmul.f32 0.125, %v389_v17 }
  0x31   : > { %2765 = vmatpush.xpose.msk.msra.mxu3 %vm627_vm0, %v557_v22  ;;  %v515_v63 = vld [vmem:[%s3285_s7 + $0x80] sm:$0xff]  ;;  %v451_v5 = vmul.f32 0.125, %v387_v62  ;;  %v404_v11 = vld [vmem:[%s3405_s10 + $0x108] sm:$0xff]  ;;  %v484_v14 = vmul.f32 0.125, %v420_v10  ;;  %v405_v19 = vld [vmem:[%s3405_s10 + $0x110] sm:$0xff]  ;;  %v485_v22 = vmul.f32 0.125, %v421_v18 }
  0x32   : > { %2733 = vmatpush.xpose.msk.msra.mxu2 %vm627_vm0, %v541_v23  ;;  %v419_v0 = vld [vmem:[%s3405_s10 + $0x180] sm:$0xff]  ;;  %v468_v15 = vmul.f32 0.125, %v404_v11  ;;  %v469_v23 = vmul.f32 0.125, %v405_v19  ;;  %v380_v8 = vld [vmem:[%s3405_s10 + $0x48] sm:$0xff]  ;;  %v381_v16 = vld [vmem:[%s3405_s10 + $0x50] sm:$0xff] }
  0x33   : > { %2670 = vmatpush.xpose.msk.msra.mxu0 %vm627_vm0, %v508_v24  ;;  %v403_v1 = vld [vmem:[%s3405_s10 + $0x100] sm:$0xff]  ;;  %v483_v6 = vmul.f32 0.125, %v419_v0  ;;  %v374_v24 = vld [vmem:[%s3405_s10 + $0x18] sm:$0xff]  ;;  %v396_v9 = vld [vmem:[%s3405_s10 + $0xc8] sm:$0xff] }
  0x34   : > { %2702 = vmatpush.xpose.msk.msra.mxu1 %vm627_vm0, %v524_v25  ;;  %v547_v2 = vld [vmem:[%s3285_s7 + $0x180] sm:$0xff]  ;;  %v467_v7 = vmul.f32 0.125, %v403_v1  ;;  %v390_v25 = vld [vmem:[%s3405_s10 + $0x98] sm:$0xff]  ;;  %v412_v10 = vld [vmem:[%s3405_s10 + $0x148] sm:$0xff] }
  0x35   : > { %2766 = vmatpush.xpose.msk.msra.mxu3 %vm627_vm0, %v556_v26  ;;  %v531_v3 = vld [vmem:[%s3285_s7 + $0x100] sm:$0xff]  ;;  %v406_v26 = vld [vmem:[%s3405_s10 + $0x118] sm:$0xff]  ;;  %v428_v11 = vld [vmem:[%s3405_s10 + $0x1c8] sm:$0xff]  ;;  %s2464_s7 = scalar_lea.hbm %s4551_s4, %s2801_s30 }
  0x36   : > { %2734 = vmatpush.xpose.msk.msra.mxu2 %vm627_vm0, %v540_v27  ;;  %v422_v27 = vld [vmem:[%s3405_s10 + $0x198] sm:$0xff]  ;;  %v379_v0 = vld [vmem:[%s3405_s10 + $0x40] sm:$0xff]  ;;  %v397_v17 = vld [vmem:[%s3405_s10 + $0xd0] sm:$0xff]  ;;  %s2467_s9 = sshll.u32 %s2464_s7, 4  ;;  %s2468_s9 = int_to_ptr.hbm [resolvable:$true] %s2467_s9 }
  0x37   : > { %2671 = vmatpush.xpose.msk.msra.mxu0 %vm627_vm0, %v507_v28  ;;  %v438_v28 = vmul.f32 0.125, %v374_v24  ;;  %v395_v1 = vld [vmem:[%s3405_s10 + $0xc0] sm:$0xff]  ;;  %v413_v18 = vld [vmem:[%s3405_s10 + $0x150] sm:$0xff]  ;;  %v382_v24 = vld [vmem:[%s3405_s10 + $0x58] sm:$0xff] }
  0x38   : > { %2703 = vmatpush.xpose.msk.msra.mxu1 %vm627_vm0, %v523_v29  ;;  %v454_v29 = vmul.f32 0.125, %v390_v25  ;;  %v429_v19 = vld [vmem:[%s3405_s10 + $0x1d0] sm:$0xff]  ;;  %v398_v25 = vld [vmem:[%s3405_s10 + $0xd8] sm:$0xff] }
  0x39   : > { %2767 = vmatpush.xpose.msk.msra.mxu3 %vm627_vm0, %v555_v30  ;;  %v470_v30 = vmul.f32 0.125, %v406_v26  ;;  %v414_v26 = vld [vmem:[%s3405_s10 + $0x158] sm:$0xff] }
  0x3a   : > { %2735 = vmatpush.xpose.msk.msra.mxu2 %vm627_vm0, %v539_v31  ;;  %v486_v31 = vmul.f32 0.125, %v422_v27  ;;  %v430_v27 = vld [vmem:[%s3405_s10 + $0x1d8] sm:$0xff] }
  0x3b   : > { %2672 = vmatpush.xpose.msk.msra.mxu0 %vm627_vm0, %v506_v32  ;;  %v375_v32 = vld [vmem:[%s3405_s10 + $0x20] sm:$0xff] }
  0x3c   : > { %2704 = vmatpush.xpose.msk.msra.mxu1 %vm627_vm0, %v522_v33  ;;  %v391_v33 = vld [vmem:[%s3405_s10 + $0xa0] sm:$0xff] }
  0x3d   : > { %2768 = vmatpush.xpose.msk.msra.mxu3 %vm627_vm0, %v554_v34  ;;  %v407_v34 = vld [vmem:[%s3405_s10 + $0x120] sm:$0xff] }
  0x3e   : > { %2736 = vmatpush.xpose.msk.msra.mxu2 %vm627_vm0, %v538_v35  ;;  %v423_v35 = vld [vmem:[%s3405_s10 + $0x1a0] sm:$0xff] }
  0x3f   : > { %2673 = vmatpush.xpose.msk.msra.mxu0 %vm627_vm0, %v505_v36  ;;  %v439_v36 = vmul.f32 0.125, %v375_v32  ;;  %v383_v32 = vld [vmem:[%s3405_s10 + $0x60] sm:$0xff] }
  0x40   : > { %2705 = vmatpush.xpose.msk.msra.mxu1 %vm627_vm0, %v521_v37  ;;  %v455_v37 = vmul.f32 0.125, %v391_v33  ;;  %v399_v33 = vld [vmem:[%s3405_s10 + $0xe0] sm:$0xff] }
  0x41   : > { %2769 = vmatpush.xpose.msk.msra.mxu3 %vm627_vm0, %v553_v38  ;;  %v471_v38 = vmul.f32 0.125, %v407_v34  ;;  %v415_v34 = vld [vmem:[%s3405_s10 + $0x160] sm:$0xff] }
  0x42   : > { %2737 = vmatpush.xpose.msk.msra.mxu2 %vm627_vm0, %v537_v39  ;;  %v487_v39 = vmul.f32 0.125, %v423_v35  ;;  %v431_v35 = vld [vmem:[%s3405_s10 + $0x1e0] sm:$0xff] }
  0x43   : > { %2674 = vmatpush.xpose.msk.msra.mxu0 %vm627_vm0, %v504_v40  ;;  %v376_v40 = vld [vmem:[%s3405_s10 + $0x28] sm:$0xff] }
  0x44   : > { %2706 = vmatpush.xpose.msk.msra.mxu1 %vm627_vm0, %v520_v41  ;;  %v392_v41 = vld [vmem:[%s3405_s10 + $0xa8] sm:$0xff] }
  0x45   : > { %2770 = vmatpush.xpose.msk.msra.mxu3 %vm627_vm0, %v552_v42  ;;  %v408_v42 = vld [vmem:[%s3405_s10 + $0x128] sm:$0xff] }
  0x46   : > { %2738 = vmatpush.xpose.msk.msra.mxu2 %vm627_vm0, %v536_v43  ;;  %v424_v43 = vld [vmem:[%s3405_s10 + $0x1a8] sm:$0xff] }
  0x47   : > { %2675 = vmatpush.xpose.msk.msra.mxu0 %vm627_vm0, %v503_v44  ;;  %v440_v44 = vmul.f32 0.125, %v376_v40  ;;  %v384_v40 = vld [vmem:[%s3405_s10 + $0x68] sm:$0xff] }
  0x48   : > { %2707 = vmatpush.xpose.msk.msra.mxu1 %vm627_vm0, %v519_v45  ;;  %v456_v45 = vmul.f32 0.125, %v392_v41  ;;  %v416_v41 = vld [vmem:[%s3405_s10 + $0x168] sm:$0xff] }
  0x49   : > { %2771 = vmatpush.xpose.msk.msra.mxu3 %vm627_vm0, %v551_v46  ;;  %v472_v46 = vmul.f32 0.125, %v408_v42  ;;  %v448_v42 = vmul.f32 0.125, %v384_v40 }
  0x4a   : > { %2739 = vmatpush.xpose.msk.msra.mxu2 %vm627_vm0, %v535_v47  ;;  %v488_v47 = vmul.f32 0.125, %v424_v43  ;;  %v480_v43 = vmul.f32 0.125, %v416_v41 }
  0x4b   : > { %2676 = vmatpush.xpose.msk.msra.mxu0 %vm627_vm0, %v502_v48  ;;  %v393_v48 = vld [vmem:[%s3405_s10 + $0xb0] sm:$0xff] }
  0x4c   : > { %2708 = vmatpush.xpose.msk.msra.mxu1 %vm627_vm0, %v518_v49  ;;  %v377_v49 = vld [vmem:[%s3405_s10 + $0x30] sm:$0xff] }
  0x4d   : > { %2772 = vmatpush.xpose.msk.msra.mxu3 %vm627_vm0, %v550_v50  ;;  %v409_v50 = vld [vmem:[%s3405_s10 + $0x130] sm:$0xff] }
  0x4e   : > { %2740 = vmatpush.xpose.msk.msra.mxu2 %vm627_vm0, %v534_v51  ;;  %v425_v51 = vld [vmem:[%s3405_s10 + $0x1b0] sm:$0xff] }
  0x4f   : > { %2677 = vmatpush.xpose.msk.msra.mxu0 %vm627_vm0, %v501_v52  ;;  %v457_v52 = vmul.f32 0.125, %v393_v48  ;;  %v385_v48 = vld [vmem:[%s3405_s10 + $0x70] sm:$0xff] }
  0x50   : > { %2709 = vmatpush.xpose.msk.msra.mxu1 %vm627_vm0, %v517_v53  ;;  %v441_v53 = vmul.f32 0.125, %v377_v49  ;;  %v417_v49 = vld [vmem:[%s3405_s10 + $0x170] sm:$0xff] }
  0x51   : > { %2773 = vmatpush.xpose.msk.msra.mxu3 %vm627_vm0, %v549_v54  ;;  %v473_v54 = vmul.f32 0.125, %v409_v50  ;;  %v449_v50 = vmul.f32 0.125, %v385_v48 }
  0x52   : > { %2741 = vmatpush.xpose.msk.msra.mxu2 %vm627_vm0, %v533_v55  ;;  %v489_v55 = vmul.f32 0.125, %v425_v51  ;;  %v481_v51 = vmul.f32 0.125, %v417_v49 }
  0x53   : > { %2678 = vmatpush.xpose.msk.msra.mxu0 %vm627_vm0, %v500_v56  ;;  %v394_v56 = vld [vmem:[%s3405_s10 + $0xb8] sm:$0xff] }
  0x54   : > { %2710 = vmatpush.xpose.msk.msra.mxu1 %vm627_vm0, %v516_v57  ;;  %v378_v57 = vld [vmem:[%s3405_s10 + $0x38] sm:$0xff] }
  0x55   : > { %2774 = vmatpush.xpose.msk.msra.mxu3 %vm627_vm0, %v548_v58  ;;  %v410_v58 = vld [vmem:[%s3405_s10 + $0x138] sm:$0xff]  ;;  %v442_v61 = vmul.f32 0.125, %v378_v57 }
  0x56   : > { %2742 = vmatpush.xpose.msk.msra.mxu2 %vm627_vm0, %v532_v59  ;;  %v426_v59 = vld [vmem:[%s3405_s10 + $0x1b8] sm:$0xff]  ;;  %v474_v62 = vmul.f32 0.125, %v410_v58 }
  0x57   : > { %2679 = vmatpush.xpose.msk.msra.mxu0 %vm627_vm0, %v499_v60  ;;  %v458_v60 = vmul.f32 0.125, %v394_v56  ;;  %v402_v56 = vld [vmem:[%s3405_s10 + $0xf8] sm:$0xff] }
  0x58   : > { %2711 = vmatpush.xpose.msk.msra.mxu1 %vm627_vm0, %v515_v63  ;;  %v490_v63 = vmul.f32 0.125, %v426_v59  ;;  %v434_v57 = vld [vmem:[%s3405_s10 + $0x1f8] sm:$0xff]  ;;  %v466_v58 = vmul.f32 0.125, %v402_v56 }
  0x59   : > { %2775 = vmatpush.xpose.msk.msra.mxu3 %vm627_vm0, %v547_v2  ;;  %v411_v2 = vld [vmem:[%s3405_s10 + $0x140] sm:$0xff]  ;;  %v498_v59 = vmul.f32 0.125, %v434_v57 }
  0x5a   : > { %2743 = vmatpush.xpose.msk.msra.mxu2 %vm627_vm0, %v531_v3  ;;  %2680 = vmatmul.msk.f32.vlgmr.msra.gmra.mxu0 %vm627_vm0, %v435_v4  ;;  %v427_v3 = vld [vmem:[%s3405_s10 + $0x1c0] sm:$0xff]  ;;  %v443_v4 = vmul.f32 0.125, %v379_v0  ;;  %v386_v0 = vld [vmem:[%s3405_s10 + $0x78] sm:$0xff] }
  0x5b   : > { %2712 = vmatmul.msk.f32.vlgmr.msra.gmra.mxu1 %vm627_vm0, %v451_v5  ;;  %v459_v5 = vmul.f32 0.125, %v395_v1 }
  0x5c   : > { %2776 = vmatmul.msk.f32.vlgmr.msra.gmra.mxu3 %vm627_vm0, %v483_v6  ;;  %v475_v6 = vmul.f32 0.125, %v411_v2 }
  0x5d   : > { %2744 = vmatmul.msk.f32.vlgmr.msra.gmra.mxu2 %vm627_vm0, %v467_v7  ;;  %v491_v7 = vmul.f32 0.125, %v427_v3  ;;  %v450_v3 = vmul.f32 0.125, %v386_v0 }
  0x62   : > { %2681 = vmatmul.msk.f32.gmra.mxu0 %vm627_vm0, %v436_v12  ;;  %v444_v12 = vmul.f32 0.125, %v380_v8 }
  0x63   : > { %2713 = vmatmul.msk.f32.gmra.mxu1 %vm627_vm0, %v452_v13  ;;  %v460_v13 = vmul.f32 0.125, %v396_v9 }
  0x64   : > { %2777 = vmatmul.msk.f32.gmra.mxu3 %vm627_vm0, %v484_v14  ;;  %v476_v14 = vmul.f32 0.125, %v412_v10 }
  0x65   : > { %2745 = vmatmul.msk.f32.gmra.mxu2 %vm627_vm0, %v468_v15  ;;  %v492_v15 = vmul.f32 0.125, %v428_v11 }
  0x6a   : > { %2682 = vmatmul.msk.f32.gmra.mxu0 %vm627_vm0, %v437_v20  ;;  %v445_v20 = vmul.f32 0.125, %v381_v16 }
  0x6b   : > { %2714 = vmatmul.msk.f32.gmra.mxu1 %vm627_vm0, %v453_v21  ;;  %v461_v21 = vmul.f32 0.125, %v397_v17 }
  0x6c   : > { %2778 = vmatmul.msk.f32.gmra.mxu3 %vm627_vm0, %v485_v22  ;;  %v477_v22 = vmul.f32 0.125, %v413_v18 }
  0x6d   : > { %2746 = vmatmul.msk.f32.gmra.mxu2 %vm627_vm0, %v469_v23  ;;  %v493_v23 = vmul.f32 0.125, %v429_v19 }
  0x72   : > { %2683 = vmatmul.msk.f32.gmra.mxu0 %vm627_vm0, %v438_v28  ;;  %v446_v28 = vmul.f32 0.125, %v382_v24 }
  0x73   : > { %2715 = vmatmul.msk.f32.gmra.mxu1 %vm627_vm0, %v454_v29  ;;  %v462_v29 = vmul.f32 0.125, %v398_v25 }
  0x74   : > { %2779 = vmatmul.msk.f32.gmra.mxu3 %vm627_vm0, %v486_v31  ;;  %v494_v31 = vmul.f32 0.125, %v430_v27 }
  0x75   : > { %2747 = vmatmul.msk.f32.gmra.mxu2 %vm627_vm0, %v470_v30  ;;  %v478_v30 = vmul.f32 0.125, %v414_v26 }
  0x7a   : > { %2684 = vmatmul.msk.f32.gmra.mxu0 %vm627_vm0, %v439_v36  ;;  %v447_v36 = vmul.f32 0.125, %v383_v32 }
  0x7b   : > { %2716 = vmatmul.msk.f32.gmra.mxu1 %vm627_vm0, %v455_v37  ;;  %v463_v37 = vmul.f32 0.125, %v399_v33 }
  0x7c   : > { %2780 = vmatmul.msk.f32.gmra.mxu3 %vm627_vm0, %v487_v39  ;;  %v495_v39 = vmul.f32 0.125, %v431_v35 }
  0x7d   : > { %2748 = vmatmul.msk.f32.gmra.mxu2 %vm627_vm0, %v471_v38  ;;  %v479_v38 = vmul.f32 0.125, %v415_v34 }
  0x82   : > { %2685 = vmatmul.msk.f32.gmra.mxu0 %vm627_vm0, %v440_v44  ;;  %v400_v44 = vld [vmem:[%s3405_s10 + $0xe8] sm:$0xff] }
  0x83   : > { %2717 = vmatmul.msk.f32.gmra.mxu1 %vm627_vm0, %v456_v45  ;;  %v464_v45 = vmul.f32 0.125, %v400_v44 }
  0x84   : > { %2781 = vmatmul.msk.f32.gmra.mxu3 %vm627_vm0, %v488_v47 }
  0x85   : > { %2749 = vmatmul.msk.f32.gmra.mxu2 %vm627_vm0, %v472_v46  ;;  %v432_v46 = vld [vmem:[%s3405_s10 + $0x1e8] sm:$0xff] }
  0x86   : > { %v496_v47 = vmul.f32 0.125, %v432_v46 }
  0x8a   : > { %2686 = vmatmul.msk.f32.gmra.mxu0 %vm627_vm0, %v441_v53  ;;  %v433_v53 = vld [vmem:[%s3405_s10 + $0x1f0] sm:$0xff] }
  0x8b   : > { %2718 = vmatmul.msk.f32.gmra.mxu1 %vm627_vm0, %v457_v52  ;;  %v401_v52 = vld [vmem:[%s3405_s10 + $0xf0] sm:$0xff] }
  0x8c   : > { %2782 = vmatmul.msk.f32.gmra.mxu3 %vm627_vm0, %v489_v55  ;;  %v497_v55 = vmul.f32 0.125, %v433_v53 }
  0x8d   : > { %2750 = vmatmul.msk.f32.gmra.mxu2 %vm627_vm0, %v473_v54  ;;  %v465_v54 = vmul.f32 0.125, %v401_v52 }
  0x92   : > { %2687 = vmatmul.msk.f32.gmra.mxu0 %vm627_vm0, %v442_v61 }
  0x93   : > { %2719 = vmatmul.msk.f32.gmra.mxu1 %vm627_vm0, %v458_v60 }
  0x94   : > { %2783 = vmatmul.msk.f32.gmra.mxu3 %vm627_vm0, %v490_v63 }
  0x95   : > { %2751 = vmatmul.msk.f32.gmra.mxu2 %vm627_vm0, %v474_v62 }
  0x9a   : > { %2688 = vmatmul.msk.f32.gmra.mxu0 %vm627_vm0, %v443_v4  ;;  %v418_v4 = vld [vmem:[%s3405_s10 + $0x178] sm:$0xff]  ;;  %s3129_s10 = sshra.s32 %s2468_s9, 4  ;;  %s3130_s10 = int_to_ptr.hbm [resolvable:$true] %s3129_s10 }
  0x9b   : > { %2720 = vmatmul.msk.f32.gmra.mxu1 %vm627_vm0, %v459_v5  ;;  %v482_v5 = vmul.f32 0.125, %v418_v4  ;;  %s3131_s11 = scalar_lea.hbm %s3130_s10, 512  ;;  %p3136_p1 = scmp.lt.s32.totalorder %s3130_s10, %s4551_s4 }
  0x9c   : > { %2784 = vmatmul.msk.f32.gmra.mxu3 %vm627_vm0, %v491_v7  ;;  %p3132_p12 = scmp.ne.s32.totalorder %s3130_s10, %s3131_s11  ;;  %p3137_p2 = scmp.lt.s32.totalorder %s3135_s21, %s3131_s11 }
  0x9d   : > { %2752 = vmatmul.msk.f32.gmra.mxu2 %vm627_vm0, %v475_v6 }
  0x9e   : > { %p3133_p13 = pnand %p3132_p12, %p3262_p4  ;;  %p3138_p3 = por %p3137_p2, %p3136_p1 }
  0xa0   : > { %p3134_p0 = pneg %p3133_p13 }
  0xa2   : > { %2689 = vmatmul.msk.f32.gmra.mxu0 %vm627_vm0, %v444_v12  ;;  %p3139_p5 = pnand %p3138_p3, %p3134_p0 }
  0xa3   : > { %2721 = vmatmul.msk.f32.gmra.mxu1 %vm627_vm0, %v460_v13 }
  0xa4   : > { %2785 = vmatmul.msk.f32.gmra.mxu3 %vm627_vm0, %v492_v15 }
  0xa5   : > { %2753 = vmatmul.msk.f32.gmra.mxu2 %vm627_vm0, %v476_v14 }
  0xaa   : > { %2690 = vmatmul.msk.f32.gmra.mxu0 %vm627_vm0, %v445_v20 }
  0xab   : > { %2722 = vmatmul.msk.f32.gmra.mxu1 %vm627_vm0, %v461_v21 }
  0xac   : > { %2786 = vmatmul.msk.f32.gmra.mxu3 %vm627_vm0, %v493_v23 }
  0xad   : > { %2754 = vmatmul.msk.f32.gmra.mxu2 %vm627_vm0, %v477_v22 }
  0xb2   : > { %2691 = vmatmul.msk.f32.gmra.mxu0 %vm627_vm0, %v446_v28 }
  0xb3   : > { %2723 = vmatmul.msk.f32.gmra.mxu1 %vm627_vm0, %v462_v29 }
  0xb4   : > { %2787 = vmatmul.msk.f32.gmra.mxu3 %vm627_vm0, %v494_v31 }
  0xb5   : > { %2755 = vmatmul.msk.f32.gmra.mxu2 %vm627_vm0, %v478_v30 }
  0xba   : > { %2692 = vmatmul.msk.f32.gmra.mxu0 %vm627_vm0, %v447_v36 }
  0xbb   : > { %2724 = vmatmul.msk.f32.gmra.mxu1 %vm627_vm0, %v463_v37 }
  0xbc   : > { %2788 = vmatmul.msk.f32.gmra.mxu3 %vm627_vm0, %v495_v39 }
  0xbd   : > { %2756 = vmatmul.msk.f32.gmra.mxu2 %vm627_vm0, %v479_v38 }
  0xc2   : > { %2693 = vmatmul.msk.f32.gmra.mxu0 %vm627_vm0, %v448_v42 }
  0xc3   : > { %2725 = vmatmul.msk.f32.gmra.mxu1 %vm627_vm0, %v464_v45 }
  0xc4   : > { %2789 = vmatmul.msk.f32.gmra.mxu3 %vm627_vm0, %v496_v47 }
  0xc5   : > { %2757 = vmatmul.msk.f32.gmra.mxu2 %vm627_vm0, %v480_v43 }
  0xca   : > { %2694 = vmatmul.msk.f32.gmra.mxu0 %vm627_vm0, %v449_v50 }
  0xcb   : > { %2726 = vmatmul.msk.f32.gmra.mxu1 %vm627_vm0, %v465_v54 }
  0xcc   : > { %2790 = vmatmul.msk.f32.gmra.mxu3 %vm627_vm0, %v497_v55 }
  0xcd   : > { %2758 = vmatmul.msk.f32.gmra.mxu2 %vm627_vm0, %v481_v51 }
  0xd2   : > { %2695 = vmatmul.msk.f32.gmra.mxu0 %vm627_vm0, %v450_v3 }
  0xd3   : > { %2727 = vmatmul.msk.f32.gmra.mxu1 %vm627_vm0, %v466_v58 }
  0xd4   : > { %2791 = vmatmul.msk.f32.gmra.mxu3 %vm627_vm0, %v498_v59 }
  0xd5   : > { %2759 = vmatmul.msk.f32.gmra.mxu2 %vm627_vm0, %v482_v5 }
  0xd7   : > { %v3545_v60 = vpop.f32.mrf.mxu0 }
  0xd8   : > { %v3547_v61 = vpop.f32.mrf.mxu1  ;;  %1272 = vmax.xlane.f32.xlu0 %v3545_v60 }
  0xd9   : > { %1304 = vmax.xlane.f32.xlu2 %v3547_v61 }
  0xdf   : > { %v3551_v62 = vpop.f32.mrf.mxu3  ;;  %v3557_v1 = vpop.f32.mrf.mxu0 }
  0xe0   : > { %v3553_v63 = vpop.f32.mrf.mxu2  ;;  %1368 = vmax.xlane.f32.xlu1 %v3551_v62  ;;  %v3559_v2 = vpop.f32.mrf.mxu1 }
  0xe1   : > { %1306 = vmax.xlane.f32.xlu2 %v3559_v2  ;;  %1336 = vmax.xlane.f32.xlu0 %v3553_v63 }
  0xe7   : > { %v3566_v6 = vpop.f32.mrf.mxu3  ;;  %v3571_v8 = vpop.f32.mrf.mxu0 }
  0xe8   : > { %v3568_v7 = vpop.f32.mrf.mxu2  ;;  %1370 = vmax.xlane.f32.xlu1 %v3566_v6  ;;  %v3573_v9 = vpop.f32.mrf.mxu1 }
  0xe9   : > { %1308 = vmax.xlane.f32.xlu2 %v3573_v9  ;;  %1274 = vmax.xlane.f32.xlu0 %v3557_v1 }
  0xef   : > { %v3580_v11 = vpop.f32.mrf.mxu0  ;;  %v3586_v13 = vpop.f32.mrf.mxu3 }
  0xf0   : > { %v3577_v10 = vpop.f32.mrf.mxu2  ;;  %1276 = vmax.xlane.f32.xlu1 %v3571_v8  ;;  %v3582_v12 = vpop.f32.mrf.mxu1 }
  0xf1   : > { %1310 = vmax.xlane.f32.xlu2 %v3582_v12  ;;  %1338 = vmax.xlane.f32.xlu0 %v3568_v7 }
  0xf7   : > { %v3591_v15 = vpop.f32.mrf.mxu0  ;;  %v3597_v17 = vpop.f32.mrf.mxu3 }
  0xf8   : > { %v3588_v14 = vpop.f32.mrf.mxu2  ;;  %1372 = vmax.xlane.f32.xlu1 %v3586_v13  ;;  %v3593_v16 = vpop.f32.mrf.mxu1 }
  0xf9   : > { %1340 = vmax.xlane.f32.xlu0 %v3577_v10  ;;  %1280 = vmax.xlane.f32.xlu2 %v3591_v15 }
  0xff   : > { %v3606_v20 = vpop.f32.mrf.mxu0  ;;  %v3608_v21 = vpop.f32.mrf.mxu3 }
 0x100   : > { %1278 = vmax.xlane.f32.xlu1 %v3580_v11  ;;  %v3600_v18 = vpop.f32.mrf.mxu2  ;;  %v3604_v19 = vpop.f32.mrf.mxu1 }
 0x101   : > { %1342 = vmax.xlane.f32.xlu0 %v3588_v14  ;;  %1312 = vmax.xlane.f32.xlu2 %v3593_v16 }
 0x107   : > { %v3617_v24 = vpop.f32.mrf.mxu0  ;;  %v3620_v25 = vpop.f32.mrf.mxu3 }
 0x108   : > { %1374 = vmax.xlane.f32.xlu1 %v3597_v17  ;;  %v3613_v22 = vpop.f32.mrf.mxu2  ;;  %v3615_v23 = vpop.f32.mrf.mxu1 }
 0x109   : > { %1344 = vmax.xlane.f32.xlu0 %v3600_v18  ;;  %1282 = vmax.xlane.f32.xlu2 %v3606_v20 }
 0x10f   : > { %v3628_v28 = vpop.f32.mrf.mxu0  ;;  %v3631_v29 = vpop.f32.mrf.mxu3 }
 0x110   : > { %1376 = vmax.xlane.f32.xlu1 %v3608_v21  ;;  %v3624_v26 = vpop.f32.mrf.mxu2  ;;  %v3626_v27 = vpop.f32.mrf.mxu1 }
 0x111   : > { %1346 = vmax.xlane.f32.xlu0 %v3613_v22  ;;  %1314 = vmax.xlane.f32.xlu2 %v3604_v19 }
 0x117   : > { %v3638_v31 = vpop.f32.mrf.mxu0  ;;  %v3642_v32 = vpop.f32.mrf.mxu3 }
 0x118   : > { %1378 = vmax.xlane.f32.xlu1 %v3620_v25  ;;  %v3635_v30 = vpop.f32.mrf.mxu2  ;;  %v3644_v33 = vpop.f32.mrf.mxu1 }
 0x119   : > { %1318 = vmax.xlane.f32.xlu2 %v3626_v27  ;;  %1284 = vmax.xlane.f32.xlu0 %v3617_v24 }
 0x11f   : > { %v3651_v35 = vpop.f32.mrf.mxu0  ;;  %v3653_v36 = vpop.f32.mrf.mxu3 }
 0x120   : > { %1316 = vmax.xlane.f32.xlu1 %v3615_v23  ;;  %v3647_v34 = vpop.f32.mrf.mxu2  ;;  %4596 = vst [vmem:[#allocation5_spill] sm:$0xff] %v3653_v36  ;;  %v3655_v37 = vpop.f32.mrf.mxu1 }
 0x121   : > { %1350 = vmax.xlane.f32.xlu2 %v3635_v30  ;;  %1348 = vmax.xlane.f32.xlu0 %v3624_v26  ;;  %4597 = vst [vmem:[#allocation6_spill] sm:$0xff] %v3655_v37 }
 0x127   : > { %v3662_v39 = vpop.f32.mrf.mxu0  ;;  %v3664_v40 = vpop.f32.mrf.mxu3 }
 0x128   : > { %1380 = vmax.xlane.f32.xlu1 %v3631_v29  ;;  %v3660_v38 = vpop.f32.mrf.mxu2  ;;  %4598 = vst [vmem:[#allocation7_spill] sm:$0xff] %v3662_v39  ;;  %v3669_v41 = vpop.f32.mrf.mxu1 }
 0x129   : > { %1382 = vmax.xlane.f32.xlu0 %v3642_v32  ;;  %1288 = vmax.xlane.f32.xlu2 %v3638_v31  ;;  %4599 = vst [vmem:[#allocation8_spill] sm:$0xff] %v3664_v40 }
 0x12a   : > { %4600 = vst [vmem:[#allocation9_spill] sm:$0xff] %v3669_v41 }
 0x12f   : > { %v3673_v43 = vpop.f32.mrf.mxu0  ;;  %v3678_v44 = vpop.f32.mrf.mxu3 }
 0x130   : > { %1286 = vmax.xlane.f32.xlu1 %v3628_v28  ;;  %v3671_v42 = vpop.f32.mrf.mxu2  ;;  %4602 = vst [vmem:[#allocation11_spill] sm:$0xff] %v3673_v43  ;;  %v3680_v45 = vpop.f32.mrf.mxu1 }
 0x131   : > { %1320 = vmax.xlane.f32.xlu0 %v3644_v33  ;;  %1322 = vmax.xlane.f32.xlu2 %v3655_v37  ;;  %4601 = vst [vmem:[#allocation10_spill] sm:$0xff] %v3671_v42 }
 0x132   : > { %4603 = vst [vmem:[#allocation12_spill] sm:$0xff] %v3678_v44 }
 0x133   : > { %4604 = vst [vmem:[#allocation13_spill] sm:$0xff] %v3680_v45 }
 0x137   : > { %v3687_v47 = vpop.f32.mrf.mxu0  ;;  %v3689_v48 = vpop.f32.mrf.mxu3 }
 0x138   : > { %1384 = vmax.xlane.f32.xlu1 %v3653_v36  ;;  %v3682_v46 = vpop.f32.mrf.mxu2  ;;  %4606 = vst [vmem:[#allocation15_spill] sm:$0xff] %v3687_v47  ;;  %v3693_v51 = vpop.f32.mrf.mxu1 }
 0x139   : > { %1352 = vmax.xlane.f32.xlu0 %v3647_v34  ;;  %1386 = vmax.xlane.f32.xlu2 %v3664_v40  ;;  %4605 = vst [vmem:[#allocation14_spill] sm:$0xff] %v3682_v46 }
 0x13a   : > { %4607 = vst [vmem:[#allocation16_spill] sm:$0xff] %v3689_v48 }
 0x13b   : > { %4608 = vst [vmem:[#allocation17_spill] sm:$0xff] %v3693_v51 }
 0x13f   : > { %v3700_v54 = vpop.f32.mrf.mxu0  ;;  %v3702_v57 = vpop.f32.mrf.mxu3 }
 0x140   : > { %1290 = vmax.xlane.f32.xlu1 %v3651_v35  ;;  %v3698_v52 = vpop.f32.mrf.mxu2  ;;  %4610 = vst [vmem:[#allocation19_spill] sm:$0xff] %v3700_v54  ;;  %v3707_v58 = vpop.f32.mrf.mxu1 }
 0x141   : > { %1292 = vmax.xlane.f32.xlu0 %v3662_v39  ;;  %1294 = vmax.xlane.f32.xlu2 %v3673_v43  ;;  %4609 = vst [vmem:[#allocation18_spill] sm:$0xff] %v3698_v52 }
 0x142   : > { %4611 = vst [vmem:[#allocation20_spill] sm:$0xff] %v3702_v57 }
 0x147   : > { %v3715_v5 = vpop.f32.mrf.mxu0 }
 0x148   : > { %1354 = vmax.xlane.f32.xlu1 %v3660_v38  ;;  %v3711_v0 = vpop.f32.mrf.mxu2  ;;  %4613 = vst [vmem:[#allocation22_spill] sm:$0xff] %v3715_v5 }
 0x149   : > { %1356 = vmax.xlane.f32.xlu0 %v3671_v42  ;;  %1358 = vmax.xlane.f32.xlu2 %v3682_v46  ;;  %4612 = vst [vmem:[#allocation21_spill] sm:$0xff] %v3711_v0 }
 0x14b   : > { %v3691_v50 = vpop.xlane.xlu0 %1272 }
 0x14c   : > { %v1305_v49 = vpop.xlane.xlu2 %1304 }
 0x14d   : > { %v1416_v42 = vsub.f32 %v3547_v61, %v1305_v49 }
 0x150   : > { %1324 = vmax.xlane.f32.xlu1 %v3669_v41  ;;  %v3728_v43 = vpop.f32.mrf.mxu2  ;;  %v1496_v41 = vmul.f32 1.442695, %v1416_v42 }
 0x151   : > { %1326 = vmax.xlane.f32.xlu0 %v3680_v45  ;;  %1328 = vmax.xlane.f32.xlu2 %v3693_v51  ;;  %v3720_v51 = vpop.f32.mrf.mxu3  ;;  %4615 = vst [vmem:[#allocation24_spill] sm:$0xff] %v3728_v43 }
 0x152   : > { %2859 = vpow2.f32 %v1496_v41 }
 0x153   : > { %v1369_v53 = vpop.xlane.xlu1 %1368 }
 0x154   : > { %v1307_v55 = vpop.xlane.xlu2 %1306  ;;  %v1337_v56 = vpop.xlane.xlu0 %1336 }
 0x155   : > { %v1417_v61 = vsub.f32 %v3559_v2, %v1307_v55  ;;  %v1400_v55 = vsub.f32 %v3545_v60, %v3691_v50 }
 0x158   : > { %1388 = vmax.xlane.f32.xlu1 %v3678_v44  ;;  %v3769_v41 = vpop.eup %2859  ;;  %v3786_v50 = vpop.f32.mrf.mxu2 }
 0x159   : > { %1390 = vmax.xlane.f32.xlu0 %v3689_v48  ;;  %1392 = vmax.xlane.f32.xlu2 %v3702_v57  ;;  %v3724_v48 = vpop.f32.mrf.mxu1 }
 0x15a   : > { %4614 = vst [vmem:[#allocation23_spill] sm:$0xff] %v3724_v48 }
 0x15b   : > { %v3709_v59 = vpop.xlane.xlu1 %1370 }
 0x15c   : > { %v3713_v3 = vpop.xlane.xlu2 %1308  ;;  %v1275_v4 = vpop.xlane.xlu0 %1274 }
 0x160   : > { %1296 = vmax.xlane.f32.xlu1 %v3687_v47 }
 0x161   : > { %1298 = vmax.xlane.f32.xlu0 %v3700_v54  ;;  %1300 = vmax.xlane.f32.xlu2 %v3715_v5  ;;  %v3735_v5 = vpop.f32.mrf.mxu3  ;;  %v3741_v44 = vpop.f32.mrf.mxu1 }
 0x162   : > { %4616 = vst [vmem:[#allocation25_spill] sm:$0xff] %v3741_v44 }
 0x163   : > { %v3722_v57 = vpop.xlane.xlu1 %1276 }
 0x164   : > { %v3726_v46 = vpop.xlane.xlu2 %1310  ;;  %v1339_v45 = vpop.xlane.xlu0 %1338 }
 0x168   : > { %1360 = vmax.xlane.f32.xlu1 %v3698_v52 }
 0x169   : > { %1362 = vmax.xlane.f32.xlu0 %v3711_v0  ;;  %1364 = vmax.xlane.f32.xlu2 %v3728_v43  ;;  %v1448_v43 = vsub.f32 %v3551_v62, %v1369_v53  ;;  %v3754_v36 = vpop.f32.mrf.mxu3  ;;  %v1432_v62 = vsub.f32 %v3553_v63, %v1337_v56  ;;  %v1401_v63 = vsub.f32 %v3557_v1, %v1275_v4 }
 0x16a   : > { %4617 = vst [vmem:[#allocation26_spill] sm:$0xff] %v3754_v36 }
 0x16b   : > { %v3733_v54 = vpop.xlane.xlu1 %1372  ;;  %v1560_v40 = vmul.f32 1.442695, %v1448_v43  ;;  %v1498_v43 = vmul.f32 1.442695, %v1417_v61  ;;  %v1464_v61 = vmul.f32 1.442695, %v1400_v55 }
 0x16c   : > { %v3737_v47 = vpop.xlane.xlu0 %1340  ;;  %v3739_v39 = vpop.xlane.xlu2 %1280  ;;  %v1466_v60 = vmul.f32 1.442695, %v1401_v63 }
 0x16d   : > { %2861 = vpow2.f32 %v1560_v40  ;;  %v1433_v40 = vsub.f32 %v3568_v7, %v1339_v45  ;;  %v1402_v7 = vsub.f32 %v3571_v8, %v3722_v57  ;;  %v1450_v45 = vsub.f32 %v3586_v13, %v3733_v54 }
 0x16e   : > { %2863 = vpow2.f32 %v1498_v43  ;;  %v1418_v13 = vsub.f32 %v3573_v9, %v3713_v3  ;;  %v1419_v54 = vsub.f32 %v3582_v12, %v3726_v46 }
 0x16f   : > { %v1530_v43 = vmul.f32 1.442695, %v1433_v40 }
 0x170   : > { %1330 = vmax.xlane.f32.xlu1 %v3707_v58  ;;  %v1502_v3 = vmul.f32 1.442695, %v1419_v54  ;;  %v578_v54 = vld [vmem:[%s3832_s13 + $0x78] sm:$0xff] }
 0x171   : > { %1332 = vmax.xlane.f32.xlu0 %v3724_v48  ;;  %1334 = vmax.xlane.f32.xlu2 %v3741_v44  ;;  %v3767_v44 = vpop.f32.mrf.mxu0  ;;  %v1528_v48 = vmul.f32 1.442695, %v1432_v62 }
 0x172   : > { %4618 = vst [vmem:[#allocation27_spill] sm:$0xff] %v3767_v44  ;;  %2104 = vmatpush.msrb.mxu0 %v578_v54  ;;  %v577_v54 = vld [vmem:[%s3832_s13 + $0x70] sm:$0xff] }
 0x173   : > { %v3748_v0 = vpop.xlane.xlu1 %1278  ;;  %v3771_v2 = vpop.eup %2861  ;;  %2865 = vpow2.f32 %v1528_v48  ;;  %v1449_v48 = vsub.f32 %v3566_v6, %v3709_v59  ;;  %v1468_v59 = vmul.f32 1.442695, %v1402_v7 }
 0x174   : > { %v3750_v52 = vpop.xlane.xlu0 %1342  ;;  %v3752_v37 = vpop.xlane.xlu2 %1312  ;;  %2867 = vpow2.f32 %v1464_v61  ;;  %v1564_v61 = vmul.f32 1.442695, %v1450_v45  ;;  %v1434_v45 = vsub.f32 %v3577_v10, %v3737_v47  ;;  %v594_v10 = vld [vmem:[%s3832_s13 + $0xf8] sm:$0xff]  ;;  %2105 = vmatpush.msrb.mxu0 %v577_v54  ;;  %v576_v54 = vld [vmem:[%s3832_s13 + $0x68] sm:$0xff] }
 0x175   : > { %2869 = vpow2.f32 %v1466_v60  ;;  %v1562_v55 = vmul.f32 1.442695, %v1449_v48  ;;  %v1403_v60 = vsub.f32 %v3580_v11, %v3748_v0  ;;  %v1500_v48 = vmul.f32 1.442695, %v1418_v13  ;;  %2169 = vmatpush.msrb.mxu1 %v594_v10 }
 0x176   : > { %2871 = vpow2.f32 %v1530_v43  ;;  %2106 = vmatpush.msrb.mxu0 %v576_v54  ;;  %v575_v54 = vld [vmem:[%s3832_s13 + $0x60] sm:$0xff] }
 0x177   : > { %2873 = vpow2.f32 %v1562_v55  ;;  %v1470_v46 = vmul.f32 1.442695, %v1403_v60  ;;  %v610_v55 = vld [vmem:[%s3832_s13 + $0x178] sm:$0xff]  ;;  %v1532_v60 = vmul.f32 1.442695, %v1434_v45  ;;  %v609_v45 = vld [vmem:[%s3832_s13 + $0x170] sm:$0xff] }
 0x178   : > { %1394 = vmax.xlane.f32.xlu1 %v3720_v51  ;;  %2875 = vpow2.f32 %v1468_v59  ;;  %v626_v59 = vld [vmem:[%s3832_s13 + $0x1f8] sm:$0xff]  ;;  %2234 = vmatpush.msrb.mxu2 %v610_v55  ;;  %v1404_v55 = vsub.f32 %v3591_v15, %v3739_v39  ;;  %v593_v15 = vld [vmem:[%s3832_s13 + $0xf0] sm:$0xff] }
 0x179   : > { %1396 = vmax.xlane.f32.xlu0 %v3735_v5  ;;  %1398 = vmax.xlane.f32.xlu2 %v3754_v36  ;;  %2877 = vpow2.f32 %v1564_v61  ;;  %v1435_v61 = vsub.f32 %v3588_v14, %v3750_v52 }
 0x17a   : > { %2879 = vpow2.f32 %v1500_v48  ;;  %2299 = vmatpush.msrb.mxu3 %v626_v59  ;;  %v625_v59 = vld [vmem:[%s3832_s13 + $0x1f0] sm:$0xff]  ;;  %2235 = vmatpush.msrb.mxu2 %v609_v45  ;;  %v1472_v10 = vmul.f32 1.442695, %v1404_v55  ;;  %v608_v55 = vld [vmem:[%s3832_s13 + $0x168] sm:$0xff] }
 0x17b   : > { %v3761_v49 = vpop.xlane.xlu1 %1374  ;;  %2881 = vpow2.f32 %v1502_v3  ;;  %v1534_v48 = vmul.f32 1.442695, %v1435_v61  ;;  %v1420_v61 = vsub.f32 %v3593_v16, %v3752_v37  ;;  %2170 = vmatpush.msrb.mxu1 %v593_v15  ;;  %2107 = vmatpush.msrb.mxu0 %v575_v54  ;;  %v574_v54 = vld [vmem:[%s3832_s13 + $0x58] sm:$0xff] }
 0x17c   : > { %v3763_v53 = vpop.xlane.xlu0 %1344  ;;  %v3765_v42 = vpop.xlane.xlu2 %1282  ;;  %2883 = vpow2.f32 %v1470_v46  ;;  %v1451_v13 = vsub.f32 %v3597_v17, %v3761_v49  ;;  %2300 = vmatpush.msrb.mxu3 %v625_v59  ;;  %v624_v59 = vld [vmem:[%s3832_s13 + $0x1e8] sm:$0xff]  ;;  %2236 = vmatpush.msrb.mxu2 %v608_v55 }
 0x17d   : > { %2885 = vpow2.f32 %v1532_v60  ;;  %v1504_v60 = vmul.f32 1.442695, %v1420_v61  ;;  %v1436_v45 = vsub.f32 %v3600_v18, %v3763_v53  ;;  %v592_v18 = vld [vmem:[%s3832_s13 + $0xe8] sm:$0xff]  ;;  %2108 = vmatpush.msrb.mxu0 %v574_v54  ;;  %v573_v54 = vld [vmem:[%s3832_s13 + $0x50] sm:$0xff] }
 0x17e   : > { %v1566_v46 = vmul.f32 1.442695, %v1451_v13  ;;  %2887 = vpow2.f32 %v1534_v48  ;;  %v1405_v13 = vsub.f32 %v3606_v20, %v3765_v42  ;;  %2301 = vmatpush.msrb.mxu3 %v624_v59  ;;  %2171 = vmatpush.msrb.mxu1 %v592_v18  ;;  %v623_v59 = vld [vmem:[%s3832_s13 + $0x1e0] sm:$0xff] }
 0x17f   : > { %v1536_v15 = vmul.f32 1.442695, %v1436_v45  ;;  %v607_v45 = vld [vmem:[%s3832_s13 + $0x160] sm:$0xff]  ;;  %2109 = vmatpush.msrb.mxu0 %v573_v54  ;;  %v572_v54 = vld [vmem:[%s3832_s13 + $0x48] sm:$0xff] }
 0x180   : > { %1302 = vmax.xlane.f32.xlu1 %v3767_v44  ;;  %v3788_v44 = vpop.eup %2863  ;;  %2889 = vpow2.f32 %v1566_v46  ;;  %v1474_v46 = vmul.f32 1.442695, %v1405_v13  ;;  %2237 = vmatpush.msrb.mxu2 %v607_v45 }
 0x181   : > { %1688 = vadd.xlane.f32.xlu0 %v3771_v2  ;;  %1624 = vadd.xlane.f32.xlu2 %v3769_v41  ;;  %v3790_v1 = vpop.eup %2865  ;;  %2891 = vpow2.f32 %v1472_v10 }
 0x182   : > { %v3807_v40 = vpop.eup %2867  ;;  %2893 = vpow2.f32 %v1504_v60  ;;  %2302 = vmatpush.msrb.mxu3 %v623_v59  ;;  %v622_v59 = vld [vmem:[%s3832_s13 + $0x1d8] sm:$0xff]  ;;  %2110 = vmatpush.msrb.mxu0 %v572_v54 }
 0x183   : > { %v3780_v56 = vpop.xlane.xlu1 %1376  ;;  %v3809_v8 = vpop.eup %2869  ;;  %2895 = vpow2.f32 %v1474_v46 }
 0x184   : > { %v3782_v62 = vpop.xlane.xlu0 %1346  ;;  %v3784_v36 = vpop.xlane.xlu2 %1314  ;;  %v1452_v61 = vsub.f32 %v3608_v21, %v3780_v56  ;;  %2897 = vpow2.f32 %v1536_v15  ;;  %2303 = vmatpush.msrb.mxu3 %v622_v59  ;;  %v621_v59 = vld [vmem:[%s3832_s13 + $0x1d0] sm:$0xff] }
 0x185   : > { %v3811_v57 = vpop.eup %2871  ;;  %v1437_v13 = vsub.f32 %v3613_v22, %v3782_v62  ;;  %v1421_v55 = vsub.f32 %v3604_v19, %v3784_v36  ;;  %v591_v19 = vld [vmem:[%s3832_s13 + $0xe0] sm:$0xff] }
 0x186   : > { %v3834_v12 = vpop.eup %2873  ;;  %v1568_v10 = vmul.f32 1.442695, %v1452_v61  ;;  %2172 = vmatpush.msrb.mxu1 %v591_v19  ;;  %2304 = vmatpush.msrb.mxu3 %v621_v59  ;;  %v620_v59 = vld [vmem:[%s3832_s13 + $0x1c8] sm:$0xff] }
 0x187   : > { %v3836_v11 = vpop.eup %2875  ;;  %v1538_v46 = vmul.f32 1.442695, %v1437_v13  ;;  %v1506_v18 = vmul.f32 1.442695, %v1421_v55  ;;  %v606_v55 = vld [vmem:[%s3832_s13 + $0x158] sm:$0xff] }
 0x188   : > { %1366 = vmax.xlane.f32.xlu1 %v3786_v50  ;;  %v3838_v0 = vpop.eup %2877  ;;  %2899 = vpow2.f32 %v1568_v10  ;;  %2238 = vmatpush.msrb.mxu2 %v606_v55 }
 0x189   : > { %1626 = vadd.xlane.f32.xlu0 %v3788_v44  ;;  %1656 = vadd.xlane.f32.xlu2 %v3790_v1  ;;  %v3859_v3 = vpop.eup %2879  ;;  %2901 = vpow2.f32 %v1538_v46 }
 0x18a   : > { %v3861_v17 = vpop.eup %2881  ;;  %2903 = vpow2.f32 %v1506_v18  ;;  %2305 = vmatpush.msrb.mxu3 %v620_v59  ;;  %v619_v59 = vld [vmem:[%s3832_s13 + $0x1c0] sm:$0xff] }
 0x18b   : > { %v3801_v4 = vpop.xlane.xlu1 %1378  ;;  %v3863_v49 = vpop.eup %2883 }
 0x18c   : > { %v3803_v63 = vpop.xlane.xlu2 %1318  ;;  %v3805_v6 = vpop.xlane.xlu0 %1284  ;;  %v1453_v45 = vsub.f32 %v3620_v25, %v3801_v4  ;;  %v590_v25 = vld [vmem:[%s3832_s13 + $0xd8] sm:$0xff]  ;;  %2306 = vmatpush.msrb.mxu3 %v619_v59  ;;  %v585_v59 = vld [vmem:[%s3832_s13 + $0xb0] sm:$0xff] }
 0x18d   : > { %v3884_v48 = vpop.eup %2885  ;;  %v1406_v61 = vsub.f32 %v3617_v24, %v3805_v6  ;;  %2173 = vmatpush.msrb.mxu1 %v590_v25  ;;  %v1423_v55 = vsub.f32 %v3626_v27, %v3803_v63  ;;  %v589_v27 = vld [vmem:[%s3832_s13 + $0xd0] sm:$0xff] }
 0x18e   : > { %v3886_v20 = vpop.eup %2887  ;;  %v1570_v19 = vmul.f32 1.442695, %v1453_v45  ;;  %v605_v45 = vld [vmem:[%s3832_s13 + $0x150] sm:$0xff] }
 0x18f   : > { %v3888_v42 = vpop.eup %2889  ;;  %v1476_v15 = vmul.f32 1.442695, %v1406_v61  ;;  %2239 = vmatpush.msrb.mxu2 %v605_v45  ;;  %2174 = vmatpush.msrb.mxu1 %v589_v27  ;;  %v1510_v25 = vmul.f32 1.442695, %v1423_v55  ;;  %v604_v55 = vld [vmem:[%s3832_s13 + $0x148] sm:$0xff] }
 0x190   : > { %1592 = vadd.xlane.f32.xlu1 %v3807_v40  ;;  %v3909_v60 = vpop.eup %2891 }
 0x191   : > { %1658 = vadd.xlane.f32.xlu0 %v3811_v57  ;;  %1594 = vadd.xlane.f32.xlu2 %v3809_v8  ;;  %v3911_v22 = vpop.eup %2893  ;;  %2905 = vpow2.f32 %v1476_v15 }
 0x192   : > { %v3913_v62 = vpop.eup %2895  ;;  %2240 = vmatpush.msrb.mxu2 %v604_v55 }
 0x193   : > { %v3822_v43 = vpop.xlane.xlu1 %1316  ;;  %v3934_v10 = vpop.eup %2897 }
 0x194   : > { %v3824_v7 = vpop.xlane.xlu2 %1350  ;;  %v3826_v9 = vpop.xlane.xlu0 %1348  ;;  %v1422_v13 = vsub.f32 %v3615_v23, %v3822_v43 }
 0x195   : > { %v3936_v23 = vpop.eup %2899  ;;  %v1438_v61 = vsub.f32 %v3624_v26, %v3826_v9  ;;  %v1439_v45 = vsub.f32 %v3635_v30, %v3824_v7  ;;  %v588_v30 = vld [vmem:[%s3832_s13 + $0xc8] sm:$0xff] }
 0x196   : > { %v1508_v46 = vmul.f32 1.442695, %v1422_v13  ;;  %v3938_v43 = vpop.eup %2901  ;;  %2175 = vmatpush.msrb.mxu1 %v588_v30 }
 0x197   : > { %v1540_v18 = vmul.f32 1.442695, %v1438_v61  ;;  %v3959_v15 = vpop.eup %2903 }
 0x198   : > { %1690 = vadd.xlane.f32.xlu1 %v3834_v12  ;;  %2907 = vpow2.f32 %v1508_v46 }
 0x199   : > { %1596 = vadd.xlane.f32.xlu0 %v3836_v11  ;;  %1692 = vadd.xlane.f32.xlu2 %v3838_v0  ;;  %2909 = vpow2.f32 %v1570_v19 }
 0x19a   : > { %2911 = vpow2.f32 %v1540_v18 }
 0x19b   : > { %v3853_v47 = vpop.xlane.xlu1 %1380 }
 0x19c   : > { %v3855_v14 = vpop.xlane.xlu0 %1382  ;;  %v3857_v52 = vpop.xlane.xlu2 %1288  ;;  %v1454_v13 = vsub.f32 %v3631_v29, %v3853_v47 }
 0x19d   : > { %v3961_v29 = vpop.eup %2905 }
 0x19e   : > { %v1572_v46 = vmul.f32 1.442695, %v1454_v13  ;;  %v3963_v47 = vpop.eup %2907  ;;  %v1408_v13 = vsub.f32 %v3638_v31, %v3857_v52 }
 0x19f   : > { %v3984_v18 = vpop.eup %2909 }
 0x1a0   : > { %1628 = vadd.xlane.f32.xlu1 %v3859_v3  ;;  %2913 = vpow2.f32 %v1572_v46  ;;  %v1480_v46 = vmul.f32 1.442695, %v1408_v13  ;;  %v3986_v31 = vpop.eup %2911 }
 0x1a1   : > { %1630 = vadd.xlane.f32.xlu0 %v3861_v17  ;;  %1598 = vadd.xlane.f32.xlu2 %v3863_v49  ;;  %4619 = vst [vmem:[#allocation28_spill] sm:$0xff] %v3986_v31  ;;  %2915 = vpow2.f32 %v1510_v25 }
 0x1a3   : > { %v3878_v39 = vpop.xlane.xlu1 %1286 }
 0x1a4   : > { %v3880_v16 = vpop.xlane.xlu0 %1320  ;;  %v3882_v37 = vpop.xlane.xlu2 %1322  ;;  %v1407_v61 = vsub.f32 %v3628_v28, %v3878_v39 }
 0x1a5   : > { %v1424_v55 = vsub.f32 %v3644_v33, %v3880_v16  ;;  %v571_v33 = vld [vmem:[%s3832_s13 + $0x40] sm:$0xff] }
 0x1a6   : > { %v1478_v19 = vmul.f32 1.442695, %v1407_v61  ;;  %v3988_v52 = vpop.eup %2913  ;;  %v1455_v61 = vsub.f32 %v3642_v32, %v3855_v14  ;;  %v1542_v32 = vmul.f32 1.442695, %v1439_v45  ;;  %v603_v45 = vld [vmem:[%s3832_s13 + $0x140] sm:$0xff]  ;;  %2111 = vmatpush.msrb.mxu0 %v571_v33  ;;  %v617_v33 = vld [vmem:[%s3832_s13 + $0x1b0] sm:$0xff] }
 0x1a7   : > { %2241 = vmatpush.msrb.mxu2 %v603_v45  ;;  %v587_v16 = vld [vmem:[%s3832_s13 + $0xc0] sm:$0xff] }
 0x1a8   : > { %1660 = vadd.xlane.f32.xlu1 %v3884_v48  ;;  %2917 = vpow2.f32 %v1478_v19  ;;  %v1574_v25 = vmul.f32 1.442695, %v1455_v61  ;;  %v4009_v19 = vpop.eup %2915  ;;  %2176 = vmatpush.msrb.mxu1 %v587_v16  ;;  %v4626_v16 = vld [vmem:[#allocation5_spill] sm:$0xff] }
 0x1a9   : > { %1694 = vadd.xlane.f32.xlu0 %v3888_v42  ;;  %1662 = vadd.xlane.f32.xlu2 %v3886_v20  ;;  %2919 = vpow2.f32 %v1480_v46  ;;  %4620 = vst [vmem:[#allocation29_spill] sm:$0xff] %v4009_v19 }
 0x1aa   : > { %2921 = vpow2.f32 %v1542_v32 }
 0x1ab   : > { %v3903_v53 = vpop.xlane.xlu1 %1384  ;;  %2923 = vpow2.f32 %v1574_v25  ;;  %v618_v25 = vld [vmem:[%s3832_s13 + $0x1b8] sm:$0xff] }
 0x1ac   : > { %v3905_v21 = vpop.xlane.xlu0 %1352  ;;  %v3907_v56 = vpop.xlane.xlu2 %1386  ;;  %2307 = vmatpush.msrb.mxu3 %v618_v25 }
 0x1ad   : > { %v1440_v13 = vsub.f32 %v3647_v34, %v3905_v21 }
 0x1ae   : > { %v4011_v34 = vpop.eup %2917  ;;  %2308 = vmatpush.msrb.mxu3 %v617_v33 }
 0x1af   : > { %v1544_v46 = vmul.f32 1.442695, %v1440_v13  ;;  %4621 = vst [vmem:[#allocation30_spill] sm:$0xff] %v4011_v34  ;;  %v4013_v21 = vpop.eup %2919 }
 0x1b0   : > { %1600 = vadd.xlane.f32.xlu1 %v3909_v60  ;;  %4622 = vst [vmem:[#allocation31_spill] sm:$0xff] %v4013_v21 }
 0x1b1   : > { %1602 = vadd.xlane.f32.xlu0 %v3913_v62  ;;  %1632 = vadd.xlane.f32.xlu2 %v3911_v22  ;;  %2925 = vpow2.f32 %v1544_v46  ;;  %v586_v46 = vld [vmem:[%s3832_s13 + $0xb8] sm:$0xff] }
 0x1b2   : > { %2177 = vmatpush.msrb.mxu1 %v586_v46  ;;  %v584_v46 = vld [vmem:[%s3832_s13 + $0xa8] sm:$0xff] }
 0x1b3   : > { %v3928_v36 = vpop.xlane.xlu1 %1290 }
 0x1b4   : > { %v3930_v24 = vpop.xlane.xlu0 %1292  ;;  %v3932_v6 = vpop.xlane.xlu2 %1294  ;;  %v1409_v61 = vsub.f32 %v3651_v35, %v3928_v36  ;;  %v1512_v35 = vmul.f32 1.442695, %v1424_v55  ;;  %2178 = vmatpush.msrb.mxu1 %v585_v59 }
 0x1b6   : > { %v1482_v32 = vmul.f32 1.442695, %v1409_v61  ;;  %2927 = vpow2.f32 %v1512_v35  ;;  %v602_v61 = vld [vmem:[%s3832_s13 + $0x138] sm:$0xff]  ;;  %v616_v35 = vld [vmem:[%s3832_s13 + $0x1a8] sm:$0xff]  ;;  %2179 = vmatpush.msrb.mxu1 %v584_v46  ;;  %v601_v46 = vld [vmem:[%s3832_s13 + $0x130] sm:$0xff] }
 0x1b7   : > { %2242 = vmatpush.msrb.mxu2 %v602_v61  ;;  %2309 = vmatpush.msrb.mxu3 %v616_v35  ;;  %v4632_v35 = vld [vmem:[#allocation6_spill] sm:$0xff] }
 0x1b8   : > { %1664 = vadd.xlane.f32.xlu1 %v3934_v10  ;;  %2929 = vpow2.f32 %v1482_v32  ;;  %v615_v32 = vld [vmem:[%s3832_s13 + $0x1a0] sm:$0xff] }
 0x1b9   : > { %1666 = vadd.xlane.f32.xlu0 %v3938_v43  ;;  %1696 = vadd.xlane.f32.xlu2 %v3936_v23 }
 0x1ba   : > { %2310 = vmatpush.msrb.mxu3 %v615_v32  ;;  %2243 = vmatpush.msrb.mxu2 %v601_v46  ;;  %v613_v32 = vld [vmem:[%s3832_s13 + $0x190] sm:$0xff] }
 0x1bb   : > { %v3953_v4 = vpop.xlane.xlu1 %1354 }
 0x1bc   : > { %v3955_v26 = vpop.xlane.xlu0 %1356  ;;  %v3957_v9 = vpop.xlane.xlu2 %1358  ;;  %v1441_v13 = vsub.f32 %v3660_v38, %v3953_v4 }
 0x1bd   : > { %v4036_v38 = vpop.eup %2921 }
 0x1be   : > { %4623 = vst [vmem:[#allocation32_spill] sm:$0xff] %v4036_v38  ;;  %v1546_v4 = vmul.f32 1.442695, %v1441_v13  ;;  %v4038_v45 = vpop.eup %2923  ;;  %v4627_v13 = vld [vmem:[#allocation8_spill] sm:$0xff] }
 0x1bf   : > { %4624 = vst [vmem:[#allocation33_spill] sm:$0xff] %v4038_v45  ;;  %v4042_v55 = vpop.eup %2925  ;;  %v1457_v25 = vsub.f32 %v4627_v13, %v3907_v56  ;;  %v583_v56 = vld [vmem:[%s3832_s13 + $0xa0] sm:$0xff] }
 0x1c0   : > { %1634 = vadd.xlane.f32.xlu1 %v3959_v15  ;;  %4625 = vst [vmem:[#allocation34_spill] sm:$0xff] %v4042_v55  ;;  %2931 = vpow2.f32 %v1546_v4  ;;  %2180 = vmatpush.msrb.mxu1 %v583_v56 }
 0x1c1   : > { %1636 = vadd.xlane.f32.xlu0 %v3963_v47  ;;  %1604 = vadd.xlane.f32.xlu2 %v3961_v29  ;;  %v1578_v4 = vmul.f32 1.442695, %v1457_v25  ;;  %v581_v25 = vld [vmem:[%s3832_s13 + $0x90] sm:$0xff] }
 0x1c3   : > { %v3978_v63 = vpop.xlane.xlu1 %1324 }
 0x1c4   : > { %v3980_v28 = vpop.xlane.xlu0 %1326  ;;  %v3982_v39 = vpop.xlane.xlu2 %1328 }
 0x1c8   : > { %1698 = vadd.xlane.f32.xlu1 %v3984_v18 }
 0x1c9   : > { %1700 = vadd.xlane.f32.xlu0 %v3988_v52  ;;  %1668 = vadd.xlane.f32.xlu2 %v3986_v31 }
 0x1cb   : > { %v4003_v7 = vpop.xlane.xlu1 %1388 }
 0x1cc   : > { %v4005_v14 = vpop.xlane.xlu0 %1390  ;;  %v4007_v27 = vpop.xlane.xlu2 %1392 }
 0x1d0   : > { %1606 = vadd.xlane.f32.xlu1 %v4011_v34 }
 0x1d1   : > { %1608 = vadd.xlane.f32.xlu0 %v4013_v21  ;;  %1638 = vadd.xlane.f32.xlu2 %v4009_v19  ;;  %v1456_v19 = vsub.f32 %v4626_v16, %v3903_v53  ;;  %v4628_v53 = vld [vmem:[#allocation9_spill] sm:$0xff]  ;;  %v1425_v21 = vsub.f32 %v4632_v35, %v3882_v37  ;;  %v600_v37 = vld [vmem:[%s3832_s13 + $0x128] sm:$0xff] }
 0x1d2   : > { %v1426_v16 = vsub.f32 %v4628_v53, %v3978_v63  ;;  %v4065_v63 = vpop.eup %2927  ;;  %2244 = vmatpush.msrb.mxu2 %v600_v37  ;;  %v597_v37 = vld [vmem:[%s3832_s13 + $0x110] sm:$0xff] }
 0x1d3   : > { %v4028_v54 = vpop.xlane.xlu1 %1296  ;;  %v1576_v59 = vmul.f32 1.442695, %v1456_v19  ;;  %4629 = vst [vmem:[#allocation5_spill] sm:$0xff] %v4065_v63  ;;  %v4067_v61 = vpop.eup %2929  ;;  %v614_v19 = vld [vmem:[%s3832_s13 + $0x198] sm:$0xff] }
 0x1d4   : > { %v4030_v36 = vpop.xlane.xlu0 %1298  ;;  %v4032_v30 = vpop.xlane.xlu2 %1300  ;;  %v1516_v33 = vmul.f32 1.442695, %v1426_v16  ;;  %4630 = vst [vmem:[#allocation8_spill] sm:$0xff] %v4067_v61  ;;  %v4633_v16 = vld [vmem:[#allocation10_spill] sm:$0xff]  ;;  %2311 = vmatpush.msrb.mxu3 %v614_v19  ;;  %v569_v19 = vld [vmem:[%s3832_s13 + $0x30] sm:$0xff] }
 0x1d5   : > { %v4071_v53 = vpop.eup %2931  ;;  %2933 = vpow2.f32 %v1576_v59  ;;  %v1442_v56 = vsub.f32 %v4633_v16, %v3955_v26  ;;  %v4634_v59 = vld [vmem:[#allocation12_spill] sm:$0xff]  ;;  %v612_v26 = vld [vmem:[%s3832_s13 + $0x188] sm:$0xff]  ;;  %v599_v16 = vld [vmem:[%s3832_s13 + $0x120] sm:$0xff] }
 0x1d6   : > { %4631 = vst [vmem:[#allocation9_spill] sm:$0xff] %v4071_v53  ;;  %2935 = vpow2.f32 %v1578_v4  ;;  %v1458_v35 = vsub.f32 %v4634_v59, %v4003_v7  ;;  %v580_v4 = vld [vmem:[%s3832_s13 + $0x88] sm:$0xff]  ;;  %2312 = vmatpush.msrb.mxu3 %v613_v32  ;;  %v579_v7 = vld [vmem:[%s3832_s13 + $0x80] sm:$0xff]  ;;  %2245 = vmatpush.msrb.mxu2 %v599_v16  ;;  %v598_v59 = vld [vmem:[%s3832_s13 + $0x118] sm:$0xff] }
 0x1d7   : > { %2937 = vpow2.f32 %v1516_v33  ;;  %v1548_v33 = vmul.f32 1.442695, %v1442_v56  ;;  %v568_v32 = vld [vmem:[%s3832_s13 + $0x28] sm:$0xff]  ;;  %v4637_v56 = vld [vmem:[#allocation7_spill] sm:$0xff]  ;;  %v567_v16 = vld [vmem:[%s3832_s13 + $0x20] sm:$0xff] }
 0x1d8   : > { %1670 = vadd.xlane.f32.xlu1 %v4036_v38  ;;  %2313 = vmatpush.msrb.mxu3 %v612_v26 }
 0x1d9   : > { %1672 = vadd.xlane.f32.xlu0 %v4042_v55  ;;  %1702 = vadd.xlane.f32.xlu2 %v4038_v45  ;;  %v582_v55 = vld [vmem:[%s3832_s13 + $0x98] sm:$0xff] }
 0x1da   : > { %2181 = vmatpush.msrb.mxu1 %v582_v55  ;;  %v570_v55 = vld [vmem:[%s3832_s13 + $0x38] sm:$0xff]  ;;  %2246 = vmatpush.msrb.mxu2 %v598_v59  ;;  %v595_v59 = vld [vmem:[%s3832_s13 + $0x100] sm:$0xff] }
 0x1db   : > { %v4056_v38 = vpop.xlane.xlu1 %1360  ;;  %2112 = vmatpush.msrb.mxu0 %v570_v55  ;;  %v611_v55 = vld [vmem:[%s3832_s13 + $0x180] sm:$0xff]  ;;  %v4099_v34 = vpop.eup %2933 }
 0x1dc   : > { %v4060_v13 = vpop.xlane.xlu0 %1362  ;;  %v4062_v45 = vpop.xlane.xlu2 %1364  ;;  %2182 = vmatpush.msrb.mxu1 %v581_v25  ;;  %v1580_v25 = vmul.f32 1.442695, %v1458_v35  ;;  %2314 = vmatpush.msrb.mxu3 %v611_v55  ;;  %v4638_v35 = vld [vmem:[#allocation11_spill] sm:$0xff]  ;;  %v566_v55 = vld [vmem:[%s3832_s13 + $0x18] sm:$0xff] }
 0x1dd   : > { %2113 = vmatpush.msrb.mxu0 %v569_v19  ;;  %v1411_v26 = vsub.f32 %v4638_v35, %v3932_v6  ;;  %2247 = vmatpush.msrb.mxu2 %v597_v37 }
 0x1de   : > { %2183 = vmatpush.msrb.mxu1 %v580_v4  ;;  %v1410_v4 = vsub.f32 %v4637_v56, %v3930_v24 }
 0x1df   : > { %2114 = vmatpush.msrb.mxu0 %v568_v32  ;;  %v1486_v35 = vmul.f32 1.442695, %v1411_v26  ;;  %v564_v32 = vld [vmem:[%s3832_s13 + $0x8] sm:$0xff]  ;;  %v4643_v26 = vld [vmem:[#allocation16_spill] sm:$0xff] }
 0x1e0   : > { %1640 = vadd.xlane.f32.xlu1 %v4065_v63  ;;  %2184 = vmatpush.msrb.mxu1 %v579_v7  ;;  %v596_v7 = vld [vmem:[%s3832_s13 + $0x108] sm:$0xff]  ;;  %v1484_v6 = vmul.f32 1.442695, %v1410_v4 }
 0x1e1   : > { %1610 = vadd.xlane.f32.xlu0 %v4067_v61  ;;  %1674 = vadd.xlane.f32.xlu2 %v4071_v53  ;;  %v1514_v53 = vmul.f32 1.442695, %v1425_v21  ;;  %v4101_v21 = vpop.eup %2935  ;;  %v4642_v4 = vld [vmem:[#allocation14_spill] sm:$0xff] }
 0x1e2   : > { %4635 = vst [vmem:[#allocation6_spill] sm:$0xff] %v4101_v21  ;;  %v4105_v31 = vpop.eup %2937  ;;  %2115 = vmatpush.msrb.mxu0 %v567_v16  ;;  %2248 = vmatpush.msrb.mxu2 %v596_v7  ;;  %v1459_v16 = vsub.f32 %v4643_v26, %v4005_v14  ;;  %v563_v7 = vld [vmem:[%s3832_s13] sm:$0xff] }
 0x1e3   : > { %v4087_v46 = vpop.xlane.xlu1 %1330  ;;  %4636 = vst [vmem:[#allocation10_spill] sm:$0xff] %v4105_v31  ;;  %2939 = vpow2.f32 %v1514_v53  ;;  %v4639_v53 = vld [vmem:[#allocation13_spill] sm:$0xff] }
 0x1e4   : > { %v4091_v61 = vpop.xlane.xlu0 %1332  ;;  %v4093_v63 = vpop.xlane.xlu2 %1334  ;;  %2941 = vpow2.f32 %v1548_v33  ;;  %v1427_v19 = vsub.f32 %v4639_v53, %v3980_v28  ;;  %2116 = vmatpush.msrb.mxu0 %v566_v55  ;;  %2249 = vmatpush.msrb.mxu2 %v595_v59  ;;  %v1443_v53 = vsub.f32 %v4642_v4, %v3957_v9 }
 0x1e5   : > { %2943 = vpow2.f32 %v1580_v25 }
 0x1e6   : > { %v1518_v28 = vmul.f32 1.442695, %v1427_v19  ;;  %2945 = vpow2.f32 %v1484_v6  ;;  %v4644_v19 = vld [vmem:[#allocation20_spill] sm:$0xff]  ;;  %v1550_v9 = vmul.f32 1.442695, %v1443_v53  ;;  %v4649_v53 = vld [vmem:[#allocation15_spill] sm:$0xff] }
 0x1e7   : > { %2947 = vpow2.f32 %v1486_v35  ;;  %v1460_v55 = vsub.f32 %v4644_v19, %v4007_v27  ;;  %v4648_v27 = vld [vmem:[#allocation17_spill] sm:$0xff] }
 0x1e8   : > { %1704 = vadd.xlane.f32.xlu1 %v4099_v34  ;;  %2949 = vpow2.f32 %v1518_v28 }
 0x1e9   : > { %1706 = vadd.xlane.f32.xlu0 %v4101_v21  ;;  %1644 = vadd.xlane.f32.xlu2 %v4105_v31  ;;  %v565_v31 = vld [vmem:[%s3832_s13 + $0x10] sm:$0xff]  ;;  %v4127_v21 = vpop.eup %2939  ;;  %v1584_v14 = vmul.f32 1.442695, %v1460_v55 }
 0x1ea   : > { %v4129_v25 = vpop.eup %2941  ;;  %2117 = vmatpush.msrb.mxu0 %v565_v31  ;;  %v1582_v31 = vmul.f32 1.442695, %v1459_v16  ;;  %v1412_v16 = vsub.f32 %v4649_v53, %v4028_v54 }
 0x1eb   : > { %v4118_v24 = vpop.xlane.xlu1 %1394  ;;  %4640 = vst [vmem:[#allocation12_spill] sm:$0xff] %v4129_v25  ;;  %v4132_v37 = vpop.eup %2943 }
 0x1ec   : > { %v4122_v33 = vpop.xlane.xlu0 %1396  ;;  %v4124_v56 = vpop.xlane.xlu2 %1398  ;;  %4641 = vst [vmem:[#allocation7_spill] sm:$0xff] %v4132_v37  ;;  %2118 = vmatpush.msrb.mxu0 %v564_v32  ;;  %v1428_v32 = vsub.f32 %v4648_v27, %v3982_v39 }
 0x1ed   : > { %v4146_v35 = vpop.eup %2945 }
 0x1ee   : > { %2119 = vmatpush.msrb.mxu0 %v563_v7  ;;  %4645 = vst [vmem:[#allocation11_spill] sm:$0xff] %v4146_v35  ;;  %v4148_v26 = vpop.eup %2947  ;;  %v1429_v7 = vsub.f32 %v3707_v58, %v4087_v46 }
 0x1ef   : > { %4646 = vst [vmem:[#allocation13_spill] sm:$0xff] %v4148_v26  ;;  %v4150_v28 = vpop.eup %2949 }
 0x1f0   : > { %1642 = vadd.xlane.f32.xlu1 %v4127_v21  ;;  %4647 = vst [vmem:[#allocation14_spill] sm:$0xff] %v4150_v28 }
 0x1f1   : > { %1708 = vadd.xlane.f32.xlu0 %v4132_v37  ;;  %1676 = vadd.xlane.f32.xlu2 %v4129_v25  ;;  %v1488_v25 = vmul.f32 1.442695, %v1412_v16 }
 0x1f3   : > { %v4144_v59 = vpop.xlane.xlu1 %1302 }
 0x1f4   : > { %v1689_v6 = vpop.xlane.xlu0 %1688  ;;  %v1625_v4 = vpop.xlane.xlu2 %1624 }
 0x1f5   : > { %2951 = vrcp.f32 %v1689_v6 }
 0x1f6   : > { %2953 = vrcp.f32 %v1625_v4 }
 0x1f7   : > { %2955 = vpow2.f32 %v1550_v9  ;;  %v1520_v9 = vmul.f32 1.442695, %v1428_v32 }
 0x1f8   : > { %1612 = vadd.xlane.f32.xlu1 %v4146_v35  ;;  %2957 = vpow2.f32 %v1582_v31 }
 0x1f9   : > { %1646 = vadd.xlane.f32.xlu0 %v4150_v28  ;;  %1614 = vadd.xlane.f32.xlu2 %v4148_v26  ;;  %2959 = vpow2.f32 %v1584_v14  ;;  %v1522_v26 = vmul.f32 1.442695, %v1429_v7 }
 0x1fb   : > { %v2952_v19 = vpop.eup %2951  ;;  %v4161_v55 = vpop.xlane.xlu1 %1366 }
 0x1fc   : > { %v2954_v39 = vpop.eup %2953  ;;  %v1832_v27 = vmul.f32 %v2952_v19, %v1689_v6  ;;  %v1627_v31 = vpop.xlane.xlu0 %1626  ;;  %v4650_v6 = vld [vmem:[#allocation18_spill] sm:$0xff] }
 0x1fd   : > { %v1657_v35 = vpop.xlane.xlu2 %1656  ;;  %v1800_v54 = vmul.f32 %v2954_v39, %v1625_v4  ;;  %2961 = vrcp.f32 %v1627_v31  ;;  %v4164_v53 = vpop.eup %2955  ;;  %v1444_v32 = vsub.f32 %v4650_v6, %v4056_v38  ;;  %v4651_v4 = vld [vmem:[#allocation21_spill] sm:$0xff] }
 0x1fe   : > { %v1896_v14 = vsub.f32 2.0, %v1832_v27  ;;  %2963 = vrcp.f32 %v1657_v35  ;;  %v4168_v58 = vpop.eup %2957  ;;  %v1445_v16 = vsub.f32 %v4651_v4, %v4060_v13  ;;  %v1461_v27 = vsub.f32 %v3720_v51, %v4118_v24 }
 0x1ff   : > { %v1864_v46 = vsub.f32 2.0, %v1800_v54  ;;  %v4170_v28 = vpop.eup %2959  ;;  %2965 = vpow2.f32 %v1520_v9 }
 0x200   : > { %v1960_v37 = vmul.f32 %v2952_v19, %v1896_v14  ;;  %1710 = vadd.xlane.f32.xlu1 %v4168_v58  ;;  %2967 = vpow2.f32 %v1488_v25  ;;  %v1552_v25 = vmul.f32 1.442695, %v1444_v32  ;;  %v4654_v32 = vld [vmem:[#allocation19_spill] sm:$0xff] }
 0x201   : > { %v1928_v7 = vmul.f32 %v2954_v39, %v1864_v46  ;;  %1678 = vadd.xlane.f32.xlu0 %v4164_v53  ;;  %1712 = vadd.xlane.f32.xlu2 %v4170_v28  ;;  %2969 = vpow2.f32 %v1522_v26  ;;  %v1554_v39 = vmul.f32 1.442695, %v1445_v16  ;;  %v1413_v4 = vsub.f32 %v4654_v32, %v4030_v36  ;;  %v4655_v16 = vld [vmem:[#allocation22_spill] sm:$0xff] }
 0x202   : > { %v2024_v9 = vmul.f32 %v3771_v2, %v1960_v37 }
 0x203   : > { %v2962_v54 = vpop.eup %2961  ;;  %v1593_v38 = vpop.xlane.xlu1 %1592  ;;  %v1992_v19 = vmul.f32 %v3769_v41, %v1928_v7  ;;  %v1586_v41 = vmul.f32 1.442695, %v1461_v27  ;;  %v1414_v7 = vsub.f32 %v4655_v16, %v4032_v30 }
 0x204   : > { %v2964_v14 = vpop.eup %2963  ;;  %v1801_v6 = vmul.f32 %v2962_v54, %v1627_v31  ;;  %2971 = vrcp.f32 %v1593_v38  ;;  %2088 = vst [vmem:[%s4183_s22 + $0x180] sm:$0xff] %v2024_v9  ;;  %2315 = vmatmul.f32.vlgmr.msrb.gmra.mxu3 %v2024_v9  ;;  %v1659_v13 = vpop.xlane.xlu0 %1658 }
 0x205   : > { %v1595_v26 = vpop.xlane.xlu2 %1594  ;;  %v1816_v51 = vmul.f32 %v2964_v14, %v1657_v35  ;;  %2973 = vrcp.f32 %v1659_v13  ;;  %2056 = vst [vmem:[%s4183_s22 + $0x80] sm:$0xff] %v1992_v19  ;;  %2185 = vmatmul.f32.vlgmr.msrb.gmra.mxu1 %v1992_v19  ;;  %v4187_v2 = vpop.eup %2965  ;;  %v4656_v19 = vld [vmem:[#allocation24_spill] sm:$0xff]  ;;  %v1492_v16 = vmul.f32 1.442695, %v1414_v7 }
 0x206   : > { %v1865_v24 = vsub.f32 2.0, %v1801_v6  ;;  %2975 = vrcp.f32 %v1595_v26  ;;  %v4189_v37 = vpop.eup %2967  ;;  %v1446_v6 = vsub.f32 %v4656_v19, %v4062_v45  ;;  %v4658_v19 = vld [vmem:[#allocation26_spill] sm:$0xff] }
 0x207   : > { %4652 = vst [vmem:[#allocation16_spill] sm:$0xff] %v4189_v37  ;;  %v1880_v31 = vsub.f32 2.0, %v1816_v51  ;;  %v4191_v46 = vpop.eup %2969  ;;  %2977 = vpow2.f32 %v1552_v25 }
 0x208   : > { %4653 = vst [vmem:[#allocation20_spill] sm:$0xff] %v4191_v46  ;;  %1648 = vadd.xlane.f32.xlu1 %v4187_v2  ;;  %v1929_v35 = vmul.f32 %v2962_v54, %v1865_v24  ;;  %2979 = vpow2.f32 %v1554_v39  ;;  %v1556_v45 = vmul.f32 1.442695, %v1446_v6 }
 0x209   : > { %v1944_v9 = vmul.f32 %v2964_v14, %v1880_v31  ;;  %1616 = vadd.xlane.f32.xlu0 %v4189_v37  ;;  %1650 = vadd.xlane.f32.xlu2 %v4191_v46  ;;  %2981 = vpow2.f32 %v1586_v41  ;;  %v1490_v14 = vmul.f32 1.442695, %v1413_v4 }
 0x20a   : > { %v2972_v27 = vpop.eup %2971  ;;  %v1993_v36 = vmul.f32 %v3788_v44, %v1929_v35  ;;  %v4657_v35 = vld [vmem:[#allocation23_spill] sm:$0xff] }
 0x20b   : > { %v2974_v25 = vpop.eup %2973  ;;  %v1784_v54 = vmul.f32 %v2972_v27, %v1593_v38  ;;  %v1691_v51 = vpop.xlane.xlu1 %1690  ;;  %v2008_v30 = vmul.f32 %v3790_v1, %v1944_v9  ;;  %v1462_v9 = vsub.f32 %v3735_v5, %v4122_v33 }
 0x20c   : > { %v2976_v39 = vpop.eup %2975  ;;  %v1817_v24 = vmul.f32 %v2974_v25, %v1659_v13  ;;  %2983 = vrcp.f32 %v1691_v51  ;;  %v1597_v31 = vpop.xlane.xlu0 %1596  ;;  %2057 = vst [vmem:[%s4183_s22 + $0x88] sm:$0xff] %v1993_v36 }
 0x20d   : > { %v1693_v32 = vpop.xlane.xlu2 %1692  ;;  %v1848_v46 = vsub.f32 2.0, %v1784_v54  ;;  %v1785_v37 = vmul.f32 %v2976_v39, %v1595_v26  ;;  %2985 = vrcp.f32 %v1597_v31  ;;  %2188 = vmatmul.f32.gmra.mxu1 %v1993_v36  ;;  %2072 = vst [vmem:[%s4183_s22 + $0x100] sm:$0xff] %v2008_v30  ;;  %2250 = vmatmul.f32.vlgmr.msrb.gmra.mxu2 %v2008_v30  ;;  %v4206_v44 = vpop.eup %2977  ;;  %v1430_v26 = vsub.f32 %v4657_v35, %v4091_v61 }
 0x20e   : > { %v1881_v38 = vsub.f32 2.0, %v1817_v24  ;;  %2987 = vrcp.f32 %v1693_v32  ;;  %v4208_v1 = vpop.eup %2979  ;;  %v1463_v61 = vsub.f32 %v4658_v19, %v4124_v56  ;;  %v1588_v24 = vmul.f32 1.442695, %v1462_v9  ;;  %v4659_v9 = vld [vmem:[#allocation27_spill] sm:$0xff] }
 0x20f   : > { %v1912_v41 = vmul.f32 %v2972_v27, %v1848_v46  ;;  %v1849_v13 = vsub.f32 2.0, %v1785_v37  ;;  %v4210_v4 = vpop.eup %2981  ;;  %2989 = vpow2.f32 %v1490_v14  ;;  %v1524_v30 = vmul.f32 1.442695, %v1430_v26 }
 0x210   : > { %1680 = vadd.xlane.f32.xlu1 %v4206_v44  ;;  %v1945_v7 = vmul.f32 %v2974_v25, %v1881_v38  ;;  %2991 = vpow2.f32 %v1492_v16 }
 0x211   : > { %1714 = vadd.xlane.f32.xlu0 %v4210_v4  ;;  %1682 = vadd.xlane.f32.xlu2 %v4208_v1  ;;  %v1976_v37 = vmul.f32 %v3807_v40, %v1912_v41  ;;  %v1913_v46 = vmul.f32 %v2976_v39, %v1849_v13  ;;  %2993 = vpow2.f32 %v1556_v45 }
 0x212   : > { %v2984_v27 = vpop.eup %2983  ;;  %v2009_v6 = vmul.f32 %v3811_v57, %v1945_v7 }
 0x213   : > { %v2986_v36 = vpop.eup %2985  ;;  %v1833_v25 = vmul.f32 %v2984_v27, %v1691_v51  ;;  %2040 = vst [vmem:[%s4183_s22] sm:$0xff] %v1976_v37  ;;  %2120 = vmatmul.f32.vlgmr.msrb.gmra.mxu0 %v1976_v37  ;;  %v1629_v5 = vpop.xlane.xlu1 %1628  ;;  %v1977_v33 = vmul.f32 %v3809_v8, %v1913_v46  ;;  %v1590_v51 = vmul.f32 1.442695, %v1463_v61  ;;  %v1415_v37 = vsub.f32 %v4659_v9, %v4144_v59 }
 0x214   : > { %v2988_v54 = vpop.eup %2987  ;;  %v1786_v40 = vmul.f32 %v2986_v36, %v1597_v31  ;;  %2995 = vrcp.f32 %v1629_v5  ;;  %v1631_v39 = vpop.xlane.xlu0 %1630  ;;  %2073 = vst [vmem:[%s4183_s22 + $0x108] sm:$0xff] %v2009_v6 }
 0x215   : > { %v1599_v14 = vpop.xlane.xlu2 %1598  ;;  %v1897_v16 = vsub.f32 2.0, %v1833_v25  ;;  %v1834_v56 = vmul.f32 %v2988_v54, %v1693_v32  ;;  %2997 = vrcp.f32 %v1631_v39  ;;  %2253 = vmatmul.f32.gmra.mxu2 %v2009_v6  ;;  %2041 = vst [vmem:[%s4183_s22 + $0x8] sm:$0xff] %v1977_v33  ;;  %v4227_v57 = vpop.eup %2989  ;;  %v1447_v32 = vsub.f32 %v3786_v50, %v4161_v55 }
 0x216   : > { %v1850_v45 = vsub.f32 2.0, %v1786_v40  ;;  %2999 = vrcp.f32 %v1599_v14  ;;  %v4229_v38 = vpop.eup %2991 }
 0x217   : > { %v1898_v8 = vsub.f32 2.0, %v1834_v56  ;;  %v1961_v41 = vmul.f32 %v2984_v27, %v1897_v16  ;;  %v4231_v31 = vpop.eup %2993  ;;  %3001 = vpow2.f32 %v1524_v30  ;;  %v1558_v25 = vmul.f32 1.442695, %v1447_v32  ;;  %v4660_v16 = vld [vmem:[#allocation25_spill] sm:$0xff] }
 0x218   : > { %1618 = vadd.xlane.f32.xlu1 %v4227_v57  ;;  %v1914_v13 = vmul.f32 %v2986_v36, %v1850_v45  ;;  %3003 = vpow2.f32 %v1588_v24 }
 0x219   : > { %1620 = vadd.xlane.f32.xlu2 %v4229_v38  ;;  %1684 = vadd.xlane.f32.xlu0 %v4231_v31  ;;  %v2025_v35 = vmul.f32 %v3834_v12, %v1961_v41  ;;  %v1962_v26 = vmul.f32 %v2988_v54, %v1898_v8  ;;  %3005 = vpow2.f32 %v1590_v51 }
 0x21a   : > { %v2996_v7 = vpop.eup %2995  ;;  %v1978_v46 = vmul.f32 %v3836_v11, %v1914_v13 }
 0x21b   : > { %v2998_v27 = vpop.eup %2997  ;;  %v1802_v19 = vmul.f32 %v2996_v7, %v1629_v5  ;;  %2123 = vmatmul.f32.gmra.mxu0 %v1977_v33  ;;  %2089 = vst [vmem:[%s4183_s22 + $0x188] sm:$0xff] %v2025_v35  ;;  %2318 = vmatmul.f32.gmra.mxu3 %v2025_v35  ;;  %v1661_v50 = vpop.xlane.xlu1 %1660  ;;  %v2026_v55 = vmul.f32 %v3838_v0, %v1962_v26  ;;  %v1494_v5 = vmul.f32 1.442695, %v1415_v37 }
 0x21c   : > { %v3000_v61 = vpop.eup %2999  ;;  %v1803_v12 = vmul.f32 %v2998_v27, %v1631_v39  ;;  %3007 = vrcp.f32 %v1661_v50  ;;  %v1695_v6 = vpop.xlane.xlu0 %1694  ;;  %2042 = vst [vmem:[%s4183_s22 + $0x10] sm:$0xff] %v1978_v46 }
 0x21d   : > { %v1663_v36 = vpop.xlane.xlu2 %1662  ;;  %v1866_v54 = vsub.f32 2.0, %v1802_v19  ;;  %v1787_v59 = vmul.f32 %v3000_v61, %v1599_v14  ;;  %3009 = vrcp.f32 %v1695_v6  ;;  %2090 = vst [vmem:[%s4183_s22 + $0x190] sm:$0xff] %v2026_v55  ;;  %v4246_v11 = vpop.eup %3001  ;;  %v1431_v14 = vsub.f32 %v4660_v16, %v4093_v63 }
 0x21e   : > { %v1867_v33 = vsub.f32 2.0, %v1803_v12  ;;  %3011 = vrcp.f32 %v1663_v36  ;;  %v4248_v30 = vpop.eup %3003 }
 0x21f   : > { %v1851_v40 = vsub.f32 2.0, %v1787_v59  ;;  %v1930_v0 = vmul.f32 %v2996_v7, %v1866_v54  ;;  %v4250_v39 = vpop.eup %3005  ;;  %3013 = vpow2.f32 %v1558_v25  ;;  %v1526_v9 = vmul.f32 1.442695, %v1431_v14 }
 0x220   : > { %1716 = vadd.xlane.f32.xlu1 %v4248_v30  ;;  %v1931_v24 = vmul.f32 %v2998_v27, %v1867_v33  ;;  %3015 = vpow2.f32 %v1494_v5 }
 0x221   : > { %1652 = vadd.xlane.f32.xlu0 %v4246_v11  ;;  %1718 = vadd.xlane.f32.xlu2 %v4250_v39  ;;  %v1994_v56 = vmul.f32 %v3859_v3, %v1930_v0  ;;  %v1915_v51 = vmul.f32 %v3000_v61, %v1851_v40 }
 0x222   : > { %v3008_v45 = vpop.eup %3007  ;;  %v1995_v8 = vmul.f32 %v3861_v17, %v1931_v24 }
 0x223   : > { %v3010_v41 = vpop.eup %3009  ;;  %v1818_v13 = vmul.f32 %v3008_v45, %v1661_v50  ;;  %2126 = vmatmul.f32.gmra.mxu0 %v1978_v46  ;;  %2058 = vst [vmem:[%s4183_s22 + $0x90] sm:$0xff] %v1994_v56  ;;  %2191 = vmatmul.f32.gmra.mxu1 %v1994_v56  ;;  %v1601_v63 = vpop.xlane.xlu1 %1600  ;;  %v1979_v32 = vmul.f32 %v3863_v49, %v1915_v51 }
 0x224   : > { %v3012_v35 = vpop.eup %3011  ;;  %v1835_v26 = vmul.f32 %v3010_v41, %v1695_v6  ;;  %2321 = vmatmul.f32.gmra.mxu3 %v2026_v55  ;;  %3017 = vrcp.f32 %v1601_v63  ;;  %v1603_v3 = vpop.xlane.xlu0 %1602  ;;  %2059 = vst [vmem:[%s4183_s22 + $0x98] sm:$0xff] %v1995_v8 }
 0x225   : > { %v1633_v7 = vpop.xlane.xlu2 %1632  ;;  %v1882_v37 = vsub.f32 2.0, %v1818_v13  ;;  %v1819_v27 = vmul.f32 %v3012_v35, %v1663_v36  ;;  %3019 = vrcp.f32 %v1603_v3  ;;  %2043 = vst [vmem:[%s4183_s22 + $0x18] sm:$0xff] %v1979_v32  ;;  %v4263_v46 = vpop.eup %3013 }
 0x226   : > { %v1899_v17 = vsub.f32 2.0, %v1835_v26  ;;  %3021 = vrcp.f32 %v1633_v7  ;;  %v4265_v49 = vpop.eup %3015 }
 0x227   : > { %v1883_v19 = vsub.f32 2.0, %v1819_v27  ;;  %v1946_v50 = vmul.f32 %v3008_v45, %v1882_v37  ;;  %3023 = vpow2.f32 %v1526_v9 }
 0x228   : > { %1686 = vadd.xlane.f32.xlu1 %v4263_v46  ;;  %v1963_v55 = vmul.f32 %v3010_v41, %v1899_v17 }
 0x229   : > { %1622 = vadd.xlane.f32.xlu0 %v4265_v49  ;;  %v2010_v61 = vmul.f32 %v3884_v48, %v1946_v50  ;;  %v1947_v12 = vmul.f32 %v3012_v35, %v1883_v19 }
 0x22a   : > { %v3018_v6 = vpop.eup %3017  ;;  %v2027_v36 = vmul.f32 %v3888_v42, %v1963_v55 }
 0x22b   : > { %v3020_v25 = vpop.eup %3019  ;;  %v1788_v54 = vmul.f32 %v3018_v6, %v1601_v63  ;;  %2129 = vmatmul.f32.gmra.mxu0 %v1979_v32  ;;  %2194 = vmatmul.f32.gmra.mxu1 %v1995_v8  ;;  %2074 = vst [vmem:[%s4183_s22 + $0x110] sm:$0xff] %v2010_v61  ;;  %v1665_v59 = vpop.xlane.xlu1 %1664  ;;  %v2011_v5 = vmul.f32 %v3886_v20, %v1947_v12 }
 0x22c   : > { %v3022_v33 = vpop.eup %3021  ;;  %v1789_v40 = vmul.f32 %v3020_v25, %v1603_v3  ;;  %2256 = vmatmul.f32.gmra.mxu2 %v2010_v61  ;;  %3025 = vrcp.f32 %v1665_v59  ;;  %v1667_v0 = vpop.xlane.xlu0 %1666  ;;  %2091 = vst [vmem:[%s4183_s22 + $0x198] sm:$0xff] %v2027_v36  ;;  %2324 = vmatmul.f32.gmra.mxu3 %v2027_v36 }
 0x22d   : > { %v1697_v48 = vpop.xlane.xlu2 %1696  ;;  %v1852_v24 = vsub.f32 2.0, %v1788_v54  ;;  %v1804_v16 = vmul.f32 %v3022_v33, %v1633_v7  ;;  %3027 = vrcp.f32 %v1667_v0  ;;  %2075 = vst [vmem:[%s4183_s22 + $0x118] sm:$0xff] %v2011_v5  ;;  %v4275_v14 = vpop.eup %3023 }
 0x22e   : > { %v1853_v42 = vsub.f32 2.0, %v1789_v40  ;;  %3029 = vrcp.f32 %v1697_v48 }
 0x22f   : > { %v1868_v56 = vsub.f32 2.0, %v1804_v16  ;;  %v1916_v51 = vmul.f32 %v3018_v6, %v1852_v24 }
 0x230   : > { %1654 = vadd.xlane.f32.xlu1 %v4275_v14  ;;  %v1917_v20 = vmul.f32 %v3020_v25, %v1853_v42 }
 0x231   : > { %v1980_v45 = vmul.f32 %v3909_v60, %v1916_v51  ;;  %v1932_v8 = vmul.f32 %v3022_v33, %v1868_v56 }
 0x232   : > { %v3026_v41 = vpop.eup %3025  ;;  %v1981_v13 = vmul.f32 %v3913_v62, %v1917_v20 }
 0x233   : > { %v3028_v63 = vpop.eup %3027  ;;  %v1820_v32 = vmul.f32 %v3026_v41, %v1665_v59  ;;  %2044 = vst [vmem:[%s4183_s22 + $0x20] sm:$0xff] %v1980_v45  ;;  %2132 = vmatmul.f32.gmra.mxu0 %v1980_v45  ;;  %v1635_v35 = vpop.xlane.xlu1 %1634  ;;  %v1996_v26 = vmul.f32 %v3911_v22, %v1932_v8 }
 0x234   : > { %v3030_v3 = vpop.eup %3029  ;;  %v1821_v7 = vmul.f32 %v3028_v63, %v1667_v0  ;;  %2259 = vmatmul.f32.gmra.mxu2 %v2011_v5  ;;  %3031 = vrcp.f32 %v1635_v35  ;;  %v1637_v9 = vpop.xlane.xlu0 %1636  ;;  %2045 = vst [vmem:[%s4183_s22 + $0x28] sm:$0xff] %v1981_v13 }
 0x235   : > { %v1605_v37 = vpop.xlane.xlu2 %1604  ;;  %v1884_v60 = vsub.f32 2.0, %v1820_v32  ;;  %v1836_v27 = vmul.f32 %v3030_v3, %v1697_v48  ;;  %3033 = vrcp.f32 %v1637_v9  ;;  %2060 = vst [vmem:[%s4183_s22 + $0xa0] sm:$0xff] %v1996_v26  ;;  %2197 = vmatmul.f32.gmra.mxu1 %v1996_v26 }
 0x236   : > { %v1885_v62 = vsub.f32 2.0, %v1821_v7  ;;  %3035 = vrcp.f32 %v1605_v37 }
 0x237   : > { %v1900_v17 = vsub.f32 2.0, %v1836_v27  ;;  %v1948_v19 = vmul.f32 %v3026_v41, %v1884_v60 }
 0x238   : > { %v1949_v50 = vmul.f32 %v3028_v63, %v1885_v62 }
 0x239   : > { %v2012_v22 = vmul.f32 %v3934_v10, %v1948_v19  ;;  %v1964_v55 = vmul.f32 %v3030_v3, %v1900_v17 }
 0x23a   : > { %v3032_v61 = vpop.eup %3031  ;;  %v2013_v12 = vmul.f32 %v3938_v43, %v1949_v50  ;;  %v4661_v50 = vld [vmem:[#allocation28_spill] sm:$0xff] }
 0x23b   : > { %v3034_v6 = vpop.eup %3033  ;;  %v1805_v36 = vmul.f32 %v3032_v61, %v1635_v35  ;;  %2135 = vmatmul.f32.gmra.mxu0 %v1981_v13  ;;  %2076 = vst [vmem:[%s4183_s22 + $0x120] sm:$0xff] %v2012_v22  ;;  %v1699_v25 = vpop.xlane.xlu1 %1698  ;;  %v2028_v54 = vmul.f32 %v3936_v23, %v1964_v55 }
 0x23c   : > { %v3036_v59 = vpop.eup %3035  ;;  %v1806_v5 = vmul.f32 %v3034_v6, %v1637_v9  ;;  %2262 = vmatmul.f32.gmra.mxu2 %v2012_v22  ;;  %3037 = vrcp.f32 %v1699_v25  ;;  %v1701_v33 = vpop.xlane.xlu0 %1700  ;;  %2077 = vst [vmem:[%s4183_s22 + $0x128] sm:$0xff] %v2013_v12 }
 0x23d   : > { %v1669_v40 = vpop.xlane.xlu2 %1668  ;;  %v1869_v10 = vsub.f32 2.0, %v1805_v36  ;;  %v1790_v0 = vmul.f32 %v3036_v59, %v1605_v37  ;;  %3039 = vrcp.f32 %v1701_v33  ;;  %2092 = vst [vmem:[%s4183_s22 + $0x1a0] sm:$0xff] %v2028_v54  ;;  %2327 = vmatmul.f32.gmra.mxu3 %v2028_v54 }
 0x23e   : > { %v1870_v43 = vsub.f32 2.0, %v1806_v5  ;;  %3041 = vrcp.f32 %v1669_v40  ;;  %v4662_v5 = vld [vmem:[#allocation30_spill] sm:$0xff] }
 0x23f   : > { %v1854_v48 = vsub.f32 2.0, %v1790_v0  ;;  %v1933_v24 = vmul.f32 %v3032_v61, %v1869_v10  ;;  %v4663_v0 = vld [vmem:[#allocation31_spill] sm:$0xff] }
 0x240   : > { %v1934_v16 = vmul.f32 %v3034_v6, %v1870_v43 }
 0x241   : > { %v1997_v23 = vmul.f32 %v3959_v15, %v1933_v24  ;;  %v1918_v42 = vmul.f32 %v3036_v59, %v1854_v48 }
 0x242   : > { %v3038_v56 = vpop.eup %3037  ;;  %v1998_v51 = vmul.f32 %v3963_v47, %v1934_v16 }
 0x243   : > { %v3040_v20 = vpop.eup %3039  ;;  %v1837_v45 = vmul.f32 %v3038_v56, %v1699_v25  ;;  %2061 = vst [vmem:[%s4183_s22 + $0xa8] sm:$0xff] %v1997_v23  ;;  %2200 = vmatmul.f32.gmra.mxu1 %v1997_v23  ;;  %v1607_v8 = vpop.xlane.xlu1 %1606  ;;  %v1982_v41 = vmul.f32 %v3961_v29, %v1918_v42  ;;  %v4664_v23 = vld [vmem:[#allocation29_spill] sm:$0xff] }
 0x244   : > { %v3042_v13 = vpop.eup %3041  ;;  %v1838_v63 = vmul.f32 %v3040_v20, %v1701_v33  ;;  %2265 = vmatmul.f32.gmra.mxu2 %v2013_v12  ;;  %3043 = vrcp.f32 %v1607_v8  ;;  %v1609_v32 = vpop.xlane.xlu0 %1608  ;;  %2062 = vst [vmem:[%s4183_s22 + $0xb0] sm:$0xff] %v1998_v51 }
 0x245   : > { %v1639_v35 = vpop.xlane.xlu2 %1638  ;;  %v1901_v15 = vsub.f32 2.0, %v1837_v45  ;;  %v1822_v26 = vmul.f32 %v3042_v13, %v1669_v40  ;;  %3045 = vrcp.f32 %v1609_v32  ;;  %2046 = vst [vmem:[%s4183_s22 + $0x30] sm:$0xff] %v1982_v41  ;;  %2138 = vmatmul.f32.gmra.mxu0 %v1982_v41 }
 0x246   : > { %v1902_v47 = vsub.f32 2.0, %v1838_v63  ;;  %3047 = vrcp.f32 %v1639_v35 }
 0x247   : > { %v1886_v3 = vsub.f32 2.0, %v1822_v26  ;;  %v1965_v7 = vmul.f32 %v3038_v56, %v1901_v15  ;;  %v4665_v15 = vld [vmem:[#allocation32_spill] sm:$0xff] }
 0x248   : > { %v1966_v9 = vmul.f32 %v3040_v20, %v1902_v47 }
 0x249   : > { %v2029_v29 = vmul.f32 %v3984_v18, %v1965_v7  ;;  %v1950_v37 = vmul.f32 %v3042_v13, %v1886_v3  ;;  %v4666_v7 = vld [vmem:[#allocation34_spill] sm:$0xff] }
 0x24a   : > { %v3044_v60 = vpop.eup %3043  ;;  %v2030_v27 = vmul.f32 %v3988_v52, %v1966_v9 }
 0x24b   : > { %v3046_v62 = vpop.eup %3045  ;;  %v1791_v17 = vmul.f32 %v3044_v60, %v1607_v8  ;;  %2203 = vmatmul.f32.gmra.mxu1 %v1998_v51  ;;  %2093 = vst [vmem:[%s4183_s22 + $0x1a8] sm:$0xff] %v2029_v29  ;;  %2330 = vmatmul.f32.gmra.mxu3 %v2029_v29  ;;  %v1671_v19 = vpop.xlane.xlu1 %1670  ;;  %v2014_v22 = vmul.f32 %v4661_v50, %v1950_v37 }
 0x24c   : > { %v3048_v55 = vpop.eup %3047  ;;  %v1792_v61 = vmul.f32 %v3046_v62, %v1609_v32  ;;  %3049 = vrcp.f32 %v1671_v19  ;;  %v1673_v12 = vpop.xlane.xlu0 %1672  ;;  %2094 = vst [vmem:[%s4183_s22 + $0x1b0] sm:$0xff] %v2030_v27 }
 0x24d   : > { %v1703_v6 = vpop.xlane.xlu2 %1702  ;;  %v1855_v18 = vsub.f32 2.0, %v1791_v17  ;;  %v1807_v36 = vmul.f32 %v3048_v55, %v1639_v35  ;;  %3051 = vrcp.f32 %v1673_v12  ;;  %2078 = vst [vmem:[%s4183_s22 + $0x130] sm:$0xff] %v2014_v22  ;;  %2268 = vmatmul.f32.gmra.mxu2 %v2014_v22 }
 0x24e   : > { %v1856_v52 = vsub.f32 2.0, %v1792_v61  ;;  %3053 = vrcp.f32 %v1703_v6 }
 0x24f   : > { %v1871_v25 = vsub.f32 2.0, %v1807_v36  ;;  %v1919_v54 = vmul.f32 %v3044_v60, %v1855_v18 }
 0x250   : > { %v1920_v59 = vmul.f32 %v3046_v62, %v1856_v52 }
 0x251   : > { %v1983_v33 = vmul.f32 %v4662_v5, %v1919_v54  ;;  %v1935_v40 = vmul.f32 %v3048_v55, %v1871_v25  ;;  %v4668_v25 = vld [vmem:[#allocation5_spill] sm:$0xff]  ;;  %v4669_v5 = vld [vmem:[#allocation8_spill] sm:$0xff] }
 0x252   : > { %v3050_v10 = vpop.eup %3049  ;;  %v1984_v43 = vmul.f32 %v4663_v0, %v1920_v59 }
 0x253   : > { %v3052_v48 = vpop.eup %3051  ;;  %v1823_v24 = vmul.f32 %v3050_v10, %v1671_v19  ;;  %2047 = vst [vmem:[%s4183_s22 + $0x38] sm:$0xff] %v1983_v33  ;;  %2141 = vmatmul.f32.gmra.mxu0 %v1983_v33  ;;  %2333 = vmatmul.f32.gmra.mxu3 %v2030_v27  ;;  %v1641_v16 = vpop.xlane.xlu1 %1640  ;;  %v1999_v42 = vmul.f32 %v4664_v23, %v1935_v40  ;;  %v4667_v27 = vld [vmem:[#allocation33_spill] sm:$0xff] }
 0x254   : > { %v3054_v56 = vpop.eup %3053  ;;  %v1824_v51 = vmul.f32 %v3052_v48, %v1673_v12  ;;  %3055 = vrcp.f32 %v1641_v16  ;;  %v1611_v20 = vpop.xlane.xlu0 %1610  ;;  %2048 = vst [vmem:[%s4183_s22 + $0x40] sm:$0xff] %v1984_v43 }
 0x255   : > { %v1675_v45 = vpop.xlane.xlu2 %1674  ;;  %v1887_v8 = vsub.f32 2.0, %v1823_v24  ;;  %v1839_v41 = vmul.f32 %v3054_v56, %v1703_v6  ;;  %3057 = vrcp.f32 %v1611_v20  ;;  %2063 = vst [vmem:[%s4183_s22 + $0xb8] sm:$0xff] %v1999_v42  ;;  %2206 = vmatmul.f32.gmra.mxu1 %v1999_v42 }
 0x256   : > { %v1888_v13 = vsub.f32 2.0, %v1824_v51  ;;  %3059 = vrcp.f32 %v1675_v45 }
 0x257   : > { %v1903_v63 = vsub.f32 2.0, %v1839_v41  ;;  %v1951_v32 = vmul.f32 %v3050_v10, %v1887_v8 }
 0x258   : > { %v1952_v35 = vmul.f32 %v3052_v48, %v1888_v13 }
 0x259   : > { %v2015_v26 = vmul.f32 %v4665_v15, %v1951_v32  ;;  %v1967_v47 = vmul.f32 %v3054_v56, %v1903_v63 }
 0x25a   : > { %v3056_v3 = vpop.eup %3055  ;;  %v2016_v9 = vmul.f32 %v4666_v7, %v1952_v35  ;;  %v4671_v35 = vld [vmem:[#allocation6_spill] sm:$0xff] }
 0x25b   : > { %v3058_v29 = vpop.eup %3057  ;;  %v1808_v37 = vmul.f32 %v3056_v3, %v1641_v16  ;;  %2144 = vmatmul.f32.gmra.mxu0 %v1984_v43  ;;  %2079 = vst [vmem:[%s4183_s22 + $0x138] sm:$0xff] %v2015_v26  ;;  %2271 = vmatmul.f32.gmra.mxu2 %v2015_v26  ;;  %v1705_v60 = vpop.xlane.xlu1 %1704  ;;  %v2031_v62 = vmul.f32 %v4667_v27, %v1967_v47  ;;  %v4670_v43 = vld [vmem:[#allocation9_spill] sm:$0xff]  ;;  %v4672_v7 = vld [vmem:[#allocation10_spill] sm:$0xff] }
 0x25c   : > { %v3060_v17 = vpop.eup %3059  ;;  %v1793_v19 = vmul.f32 %v3058_v29, %v1611_v20  ;;  %3061 = vrcp.f32 %v1705_v60  ;;  %v1707_v50 = vpop.xlane.xlu0 %1706  ;;  %2080 = vst [vmem:[%s4183_s22 + $0x140] sm:$0xff] %v2016_v9 }
 0x25d   : > { %v1645_v22 = vpop.xlane.xlu2 %1644  ;;  %v1872_v55 = vsub.f32 2.0, %v1808_v37  ;;  %v1825_v61 = vmul.f32 %v3060_v17, %v1675_v45  ;;  %3063 = vrcp.f32 %v1707_v50  ;;  %2095 = vst [vmem:[%s4183_s22 + $0x1b8] sm:$0xff] %v2031_v62  ;;  %2336 = vmatmul.f32.gmra.mxu3 %v2031_v62 }
 0x25e   : > { %v1857_v12 = vsub.f32 2.0, %v1793_v19  ;;  %3065 = vrcp.f32 %v1645_v22 }
 0x25f   : > { %v1936_v6 = vmul.f32 %v3056_v3, %v1872_v55  ;;  %v1889_v18 = vsub.f32 2.0, %v1825_v61 }
 0x260   : > { %v1921_v36 = vmul.f32 %v3058_v29, %v1857_v12 }
 0x261   : > { %v1953_v52 = vmul.f32 %v3060_v17, %v1889_v18  ;;  %v2000_v54 = vmul.f32 %v4668_v25, %v1936_v6  ;;  %v4673_v6 = vld [vmem:[#allocation7_spill] sm:$0xff] }
 0x262   : > { %v3062_v59 = vpop.eup %3061  ;;  %v1985_v33 = vmul.f32 %v4669_v5, %v1921_v36 }
 0x263   : > { %v3064_v40 = vpop.eup %3063  ;;  %v1840_v10 = vmul.f32 %v3062_v59, %v1705_v60  ;;  %2064 = vst [vmem:[%s4183_s22 + $0xc0] sm:$0xff] %v2000_v54  ;;  %2209 = vmatmul.f32.gmra.mxu1 %v2000_v54  ;;  %2274 = vmatmul.f32.gmra.mxu2 %v2016_v9  ;;  %v1643_v0 = vpop.xlane.xlu1 %1642  ;;  %v2017_v48 = vmul.f32 %v4670_v43, %v1953_v52  ;;  %v4674_v54 = vld [vmem:[#allocation12_spill] sm:$0xff] }
 0x264   : > { %v3066_v24 = vpop.eup %3065  ;;  %v1841_v16 = vmul.f32 %v3064_v40, %v1707_v50  ;;  %3067 = vrcp.f32 %v1643_v0  ;;  %v1709_v23 = vpop.xlane.xlu0 %1708  ;;  %2049 = vst [vmem:[%s4183_s22 + $0x48] sm:$0xff] %v1985_v33  ;;  %2147 = vmatmul.f32.gmra.mxu0 %v1985_v33 }
 0x265   : > { %v1677_v42 = vpop.xlane.xlu2 %1676  ;;  %v1904_v56 = vsub.f32 2.0, %v1840_v10  ;;  %v1810_v51 = vmul.f32 %v3066_v24, %v1645_v22  ;;  %3069 = vrcp.f32 %v1709_v23  ;;  %2081 = vst [vmem:[%s4183_s22 + $0x148] sm:$0xff] %v2017_v48 }
 0x266   : > { %v1905_v20 = vsub.f32 2.0, %v1841_v16  ;;  %3071 = vrcp.f32 %v1677_v42 }
 0x267   : > { %v1968_v45 = vmul.f32 %v3062_v59, %v1904_v56  ;;  %v1874_v8 = vsub.f32 2.0, %v1810_v51 }
 0x268   : > { %v1969_v41 = vmul.f32 %v3064_v40, %v1905_v20  ;;  %v4676_v20 = vld [vmem:[#allocation14_spill] sm:$0xff] }
 0x269   : > { %v1938_v13 = vmul.f32 %v3066_v24, %v1874_v8  ;;  %v2032_v63 = vmul.f32 %v4099_v34, %v1968_v45 }
 0x26a   : > { %v3068_v32 = vpop.eup %3067  ;;  %v2033_v15 = vmul.f32 %v4671_v35, %v1969_v41 }
 0x26b   : > { %v3070_v26 = vpop.eup %3069  ;;  %v1809_v47 = vmul.f32 %v3068_v32, %v1643_v0  ;;  %2277 = vmatmul.f32.gmra.mxu2 %v2017_v48  ;;  %2096 = vst [vmem:[%s4183_s22 + $0x1c0] sm:$0xff] %v2032_v63  ;;  %2339 = vmatmul.f32.gmra.mxu3 %v2032_v63  ;;  %v1613_v3 = vpop.xlane.xlu1 %1612  ;;  %v2002_v9 = vmul.f32 %v4672_v7, %v1938_v13  ;;  %v4677_v63 = vld [vmem:[#allocation13_spill] sm:$0xff] }
 0x26c   : > { %v3072_v29 = vpop.eup %3071  ;;  %v1842_v37 = vmul.f32 %v3070_v26, %v1709_v23  ;;  %3073 = vrcp.f32 %v1613_v3  ;;  %v1647_v60 = vpop.xlane.xlu0 %1646  ;;  %2097 = vst [vmem:[%s4183_s22 + $0x1c8] sm:$0xff] %v2033_v15 }
 0x26d   : > { %v1615_v27 = vpop.xlane.xlu2 %1614  ;;  %v1873_v34 = vsub.f32 2.0, %v1809_v47  ;;  %v1826_v62 = vmul.f32 %v3072_v29, %v1677_v42  ;;  %3075 = vrcp.f32 %v1647_v60  ;;  %2066 = vst [vmem:[%s4183_s22 + $0xd0] sm:$0xff] %v2002_v9  ;;  %v4675_v42 = vld [vmem:[#allocation11_spill] sm:$0xff] }
 0x26e   : > { %v1906_v17 = vsub.f32 2.0, %v1842_v37  ;;  %3077 = vrcp.f32 %v1615_v27 }
 0x26f   : > { %v1937_v19 = vmul.f32 %v3068_v32, %v1873_v34  ;;  %v1890_v50 = vsub.f32 2.0, %v1826_v62 }
 0x270   : > { %v1970_v22 = vmul.f32 %v3070_v26, %v1906_v17 }
 0x271   : > { %v1954_v55 = vmul.f32 %v3072_v29, %v1890_v50  ;;  %v2001_v61 = vmul.f32 %v4127_v21, %v1937_v19 }
 0x272   : > { %v3074_v12 = vpop.eup %3073  ;;  %v2034_v18 = vmul.f32 %v4673_v6, %v1970_v22 }
 0x273   : > { %v3076_v36 = vpop.eup %3075  ;;  %v1794_v52 = vmul.f32 %v3074_v12, %v1613_v3  ;;  %2065 = vst [vmem:[%s4183_s22 + $0xc8] sm:$0xff] %v2001_v61  ;;  %2212 = vmatmul.f32.gmra.mxu1 %v2001_v61  ;;  %2342 = vmatmul.f32.gmra.mxu3 %v2033_v15  ;;  %v1711_v25 = vpop.xlane.xlu1 %1710  ;;  %v2018_v59 = vmul.f32 %v4674_v54, %v1954_v55 }
 0x274   : > { %v3078_v5 = vpop.eup %3077  ;;  %v1811_v33 = vmul.f32 %v3076_v36, %v1647_v60  ;;  %3079 = vrcp.f32 %v1711_v25  ;;  %v1679_v40 = vpop.xlane.xlu0 %1678  ;;  %2098 = vst [vmem:[%s4183_s22 + $0x1d0] sm:$0xff] %v2034_v18 }
 0x275   : > { %v1713_v10 = vpop.xlane.xlu2 %1712  ;;  %v1858_v0 = vsub.f32 2.0, %v1794_v52  ;;  %v1795_v21 = vmul.f32 %v3078_v5, %v1615_v27  ;;  %3081 = vrcp.f32 %v1679_v40  ;;  %2082 = vst [vmem:[%s4183_s22 + $0x150] sm:$0xff] %v2018_v59  ;;  %2280 = vmatmul.f32.gmra.mxu2 %v2018_v59 }
 0x276   : > { %v1875_v43 = vsub.f32 2.0, %v1811_v33  ;;  %3083 = vrcp.f32 %v1713_v10 }
 0x277   : > { %v1922_v48 = vmul.f32 %v3074_v12, %v1858_v0  ;;  %v1859_v24 = vsub.f32 2.0, %v1795_v21  ;;  %v4678_v0 = vld [vmem:[#allocation16_spill] sm:$0xff] }
 0x278   : > { %v1939_v16 = vmul.f32 %v3076_v36, %v1875_v43 }
 0x279   : > { %v1923_v23 = vmul.f32 %v3078_v5, %v1859_v24  ;;  %v1986_v56 = vmul.f32 %v4675_v42, %v1922_v48 }
 0x27a   : > { %v3080_v51 = vpop.eup %3079  ;;  %v2003_v45 = vmul.f32 %v4676_v20, %v1939_v16  ;;  %v4679_v16 = vld [vmem:[#allocation20_spill] sm:$0xff] }
 0x27b   : > { %v3082_v8 = vpop.eup %3081  ;;  %v1843_v41 = vmul.f32 %v3080_v51, %v1711_v25  ;;  %2050 = vst [vmem:[%s4183_s22 + $0x50] sm:$0xff] %v1986_v56  ;;  %2150 = vmatmul.f32.gmra.mxu0 %v1986_v56  ;;  %2215 = vmatmul.f32.gmra.mxu1 %v2002_v9  ;;  %v1649_v13 = vpop.xlane.xlu1 %1648  ;;  %v1987_v32 = vmul.f32 %v4677_v63, %v1923_v23 }
 0x27c   : > { %v3084_v35 = vpop.eup %3083  ;;  %v1827_v15 = vmul.f32 %v3082_v8, %v1679_v40  ;;  %2345 = vmatmul.f32.gmra.mxu3 %v2034_v18  ;;  %3085 = vrcp.f32 %v1649_v13  ;;  %v1617_v26 = vpop.xlane.xlu0 %1616  ;;  %2067 = vst [vmem:[%s4183_s22 + $0xd8] sm:$0xff] %v2003_v45 }
 0x27d   : > { %v1651_v47 = vpop.xlane.xlu2 %1650  ;;  %v1907_v3 = vsub.f32 2.0, %v1843_v41  ;;  %v1844_v7 = vmul.f32 %v3084_v35, %v1713_v10  ;;  %3087 = vrcp.f32 %v1617_v26  ;;  %2051 = vst [vmem:[%s4183_s22 + $0x58] sm:$0xff] %v1987_v32 }
 0x27e   : > { %v1891_v29 = vsub.f32 2.0, %v1827_v15  ;;  %3089 = vrcp.f32 %v1651_v47 }
 0x27f   : > { %v1971_v37 = vmul.f32 %v3080_v51, %v1907_v3  ;;  %v1908_v60 = vsub.f32 2.0, %v1844_v7 }
 0x280   : > { %v1955_v9 = vmul.f32 %v3082_v8, %v1891_v29 }
 0x281   : > { %v1972_v27 = vmul.f32 %v3084_v35, %v1908_v60  ;;  %v2035_v34 = vmul.f32 %v4168_v58, %v1971_v37 }
 0x282   : > { %v3086_v62 = vpop.eup %3085  ;;  %v2186_v17 = vpop.f32.mrf.mxu1  ;;  %v2019_v19 = vmul.f32 %v4164_v53, %v1955_v9 }
 0x283   : > { %v3088_v50 = vpop.eup %3087  ;;  %v1812_v22 = vmul.f32 %v3086_v62, %v1649_v13  ;;  %2380 = vst.msk [vmem:[%s4342_s29 + $0x80] sm:$0xff] %vm627_vm0, %v2186_v17  ;;  %2153 = vmatmul.f32.gmra.mxu0 %v1987_v32  ;;  %2218 = vmatmul.f32.gmra.mxu1 %v2003_v45  ;;  %v1681_v55 = vpop.xlane.xlu1 %1680  ;;  %v2036_v61 = vmul.f32 %v4170_v28, %v1972_v27 }
 0x284   : > { %v3090_v12 = vpop.eup %3089  ;;  %v1796_v6 = vmul.f32 %v3088_v50, %v1617_v26  ;;  %2099 = vst [vmem:[%s4183_s22 + $0x1d8] sm:$0xff] %v2035_v34  ;;  %2348 = vmatmul.f32.gmra.mxu3 %v2035_v34  ;;  %3091 = vrcp.f32 %v1681_v55  ;;  %v1715_v58 = vpop.xlane.xlu0 %1714  ;;  %2283 = vmatmul.f32.gmra.mxu2 %v2019_v19 }
 0x285   : > { %v1683_v18 = vpop.xlane.xlu2 %1682  ;;  %v1876_v53 = vsub.f32 2.0, %v1812_v22  ;;  %v1813_v36 = vmul.f32 %v3090_v12, %v1651_v47  ;;  %3093 = vrcp.f32 %v1715_v58  ;;  %2083 = vst [vmem:[%s4183_s22 + $0x158] sm:$0xff] %v2019_v19 }
 0x286   : > { %v1860_v52 = vsub.f32 2.0, %v1796_v6  ;;  %3095 = vrcp.f32 %v1683_v18  ;;  %2100 = vst [vmem:[%s4183_s22 + $0x1e0] sm:$0xff] %v2036_v61 }
 0x287   : > { %v1940_v25 = vmul.f32 %v3086_v62, %v1876_v53  ;;  %v1877_v54 = vsub.f32 2.0, %v1813_v36  ;;  %v2316_v28 = vpop.f32.mrf.mxu3 }
 0x288   : > { %v1924_v59 = vmul.f32 %v3088_v50, %v1860_v52  ;;  %2412 = vst.msk [vmem:[%s4342_s29 + $0x180] sm:$0xff] %vm627_vm0, %v2316_v28 }
 0x289   : > { %v1941_v5 = vmul.f32 %v3090_v12, %v1877_v54  ;;  %v2004_v33 = vmul.f32 %v4187_v2, %v1940_v25 }
 0x28a   : > { %v3092_v40 = vpop.eup %3091  ;;  %v2189_v10 = vpop.f32.mrf.mxu1  ;;  %v1988_v21 = vmul.f32 %v4678_v0, %v1924_v59 }
 0x28b   : > { %v3094_v43 = vpop.eup %3093  ;;  %v1828_v48 = vmul.f32 %v3092_v40, %v1681_v55  ;;  %2381 = vst.msk [vmem:[%s4342_s29 + $0x88] sm:$0xff] %vm627_vm0, %v2189_v10  ;;  %2221 = vmatmul.f32.gmra.mxu1 %v2004_v33  ;;  %v1619_v24 = vpop.xlane.xlu1 %1618  ;;  %v2005_v23 = vmul.f32 %v4679_v16, %v1941_v5 }
 0x28c   : > { %v3096_v42 = vpop.eup %3095  ;;  %v1845_v56 = vmul.f32 %v3094_v43, %v1715_v58  ;;  %2068 = vst [vmem:[%s4183_s22 + $0xe0] sm:$0xff] %v2004_v33  ;;  %2351 = vmatmul.f32.gmra.mxu3 %v2036_v61  ;;  %3097 = vrcp.f32 %v1619_v24  ;;  %v1685_v2 = vpop.xlane.xlu0 %1684  ;;  %2156 = vmatmul.f32.gmra.mxu0 %v1988_v21 }
 0x28d   : > { %v1621_v51 = vpop.xlane.xlu2 %1620  ;;  %v1892_v20 = vsub.f32 2.0, %v1828_v48  ;;  %v1829_v45 = vmul.f32 %v3096_v42, %v1683_v18  ;;  %3099 = vrcp.f32 %v1685_v2  ;;  %2052 = vst [vmem:[%s4183_s22 + $0x60] sm:$0xff] %v1988_v21 }
 0x28e   : > { %v1909_v8 = vsub.f32 2.0, %v1845_v56  ;;  %3101 = vrcp.f32 %v1621_v51  ;;  %2069 = vst [vmem:[%s4183_s22 + $0xe8] sm:$0xff] %v2005_v23 }
 0x28f   : > { %v1956_v41 = vmul.f32 %v3092_v40, %v1892_v20  ;;  %v1893_v13 = vsub.f32 2.0, %v1829_v45 }
 0x290   : > { %v1973_v63 = vmul.f32 %v3094_v43, %v1909_v8  ;;  %v2121_v32 = vpop.f32.mrf.mxu0  ;;  %v2251_v35 = vpop.f32.mrf.mxu2 }
 0x291   : > { %v1957_v15 = vmul.f32 %v3096_v42, %v1893_v13  ;;  %2364 = vst.msk [vmem:[%s4342_s29] sm:$0xff] %vm627_vm0, %v2121_v32  ;;  %v2020_v26 = vmul.f32 %v4206_v44, %v1956_v41 }
 0x292   : > { %v3098_v47 = vpop.eup %3097  ;;  %2396 = vst.msk [vmem:[%s4342_s29 + $0x100] sm:$0xff] %vm627_vm0, %v2251_v35  ;;  %v2037_v3 = vmul.f32 %v4210_v4, %v1973_v63 }
 0x293   : > { %v3100_v7 = vpop.eup %3099  ;;  %v1797_v29 = vmul.f32 %v3098_v47, %v1619_v24  ;;  %2224 = vmatmul.f32.gmra.mxu1 %v2005_v23  ;;  %2084 = vst [vmem:[%s4183_s22 + $0x160] sm:$0xff] %v2020_v26  ;;  %2286 = vmatmul.f32.gmra.mxu2 %v2020_v26  ;;  %v1717_v37 = vpop.xlane.xlu1 %1716  ;;  %v2021_v60 = vmul.f32 %v4208_v1, %v1957_v15 }
 0x294   : > { %v3102_v9 = vpop.eup %3101  ;;  %v1830_v27 = vmul.f32 %v3100_v7, %v1685_v2  ;;  %3103 = vrcp.f32 %v1717_v37  ;;  %v1653_v34 = vpop.xlane.xlu0 %1652  ;;  %2101 = vst [vmem:[%s4183_s22 + $0x1e8] sm:$0xff] %v2037_v3  ;;  %2354 = vmatmul.f32.gmra.mxu3 %v2037_v3 }
 0x295   : > { %v1719_v44 = vpop.xlane.xlu2 %1718  ;;  %v1861_v62 = vsub.f32 2.0, %v1797_v29  ;;  %v1798_v4 = vmul.f32 %v3102_v9, %v1621_v51  ;;  %3105 = vrcp.f32 %v1653_v34  ;;  %2085 = vst [vmem:[%s4183_s22 + $0x168] sm:$0xff] %v2021_v60 }
 0x296   : > { %v1894_v17 = vsub.f32 2.0, %v1830_v27  ;;  %3107 = vrcp.f32 %v1719_v44 }
 0x297   : > { %v1925_v19 = vmul.f32 %v3098_v47, %v1861_v62  ;;  %v1862_v50 = vsub.f32 2.0, %v1798_v4 }
 0x298   : > { %v1958_v22 = vmul.f32 %v3100_v7, %v1894_v17  ;;  %v2124_v1 = vpop.f32.mrf.mxu0  ;;  %v2254_v55 = vpop.f32.mrf.mxu2 }
 0x299   : > { %v1926_v61 = vmul.f32 %v3102_v9, %v1862_v50  ;;  %2365 = vst.msk [vmem:[%s4342_s29 + $0x8] sm:$0xff] %vm627_vm0, %v2124_v1  ;;  %v1989_v12 = vmul.f32 %v4227_v57, %v1925_v19 }
 0x29a   : > { %v3104_v6 = vpop.eup %3103  ;;  %2397 = vst.msk [vmem:[%s4342_s29 + $0x108] sm:$0xff] %vm627_vm0, %v2254_v55  ;;  %v2022_v58 = vmul.f32 %v4231_v31, %v1958_v22 }
 0x29b   : > { %v3106_v18 = vpop.eup %3105  ;;  %v1846_v53 = vmul.f32 %v3104_v6, %v1717_v37  ;;  %2053 = vst [vmem:[%s4183_s22 + $0x68] sm:$0xff] %v1989_v12  ;;  %2159 = vmatmul.f32.gmra.mxu0 %v1989_v12  ;;  %2289 = vmatmul.f32.gmra.mxu2 %v2021_v60  ;;  %v1687_v36 = vpop.xlane.xlu1 %1686  ;;  %v1990_v52 = vmul.f32 %v4229_v38, %v1926_v61 }
 0x29c   : > { %v3108_v25 = vpop.eup %3107  ;;  %v1814_v54 = vmul.f32 %v3106_v18, %v1653_v34  ;;  %3109 = vrcp.f32 %v1687_v36  ;;  %v1623_v57 = vpop.xlane.xlu0 %1622  ;;  %2086 = vst [vmem:[%s4183_s22 + $0x170] sm:$0xff] %v2022_v58 }
 0x29d   : > { %v1910_v28 = vsub.f32 2.0, %v1846_v53  ;;  %v1847_v59 = vmul.f32 %v3108_v25, %v1719_v44  ;;  %3111 = vrcp.f32 %v1623_v57  ;;  %2054 = vst [vmem:[%s4183_s22 + $0x70] sm:$0xff] %v1990_v52 }
 0x29e   : > { %v1878_v31 = vsub.f32 2.0, %v1814_v54  ;;  %v2319_v5 = vpop.f32.mrf.mxu3 }
 0x29f   : > { %v1974_v33 = vmul.f32 %v3104_v6, %v1910_v28  ;;  %v1911_v40 = vsub.f32 2.0, %v1847_v59  ;;  %2413 = vst.msk [vmem:[%s4342_s29 + $0x188] sm:$0xff] %vm627_vm0, %v2319_v5 }
 0x2a0   : > { %v1942_v10 = vmul.f32 %v3106_v18, %v1878_v31  ;;  %v2127_v38 = vpop.f32.mrf.mxu0  ;;  %v2192_v0 = vpop.f32.mrf.mxu1 }
 0x2a1   : > { %v1975_v21 = vmul.f32 %v3108_v25, %v1911_v40  ;;  %2366 = vst.msk [vmem:[%s4342_s29 + $0x10] sm:$0xff] %vm627_vm0, %v2127_v38  ;;  %v2038_v43 = vmul.f32 %v4248_v30, %v1974_v33 }
 0x2a2   : > { %v3110_v48 = vpop.eup %3109  ;;  %2382 = vst.msk [vmem:[%s4342_s29 + $0x90] sm:$0xff] %vm627_vm0, %v2192_v0  ;;  %v2006_v24 = vmul.f32 %v4246_v11, %v1942_v10 }
 0x2a3   : > { %v3112_v16 = vpop.eup %3111  ;;  %v1831_v23 = vmul.f32 %v3110_v48, %v1687_v36  ;;  %2162 = vmatmul.f32.gmra.mxu0 %v1990_v52  ;;  %2292 = vmatmul.f32.gmra.mxu2 %v2022_v58  ;;  %2102 = vst [vmem:[%s4183_s22 + $0x1f0] sm:$0xff] %v2038_v43  ;;  %v1655_v42 = vpop.xlane.xlu1 %1654  ;;  %v2039_v56 = vmul.f32 %v4250_v39, %v1975_v21 }
 0x2a4   : > { %v1799_v2 = vmul.f32 %v3112_v16, %v1623_v57  ;;  %2357 = vmatmul.f32.gmra.mxu3 %v2038_v43  ;;  %3113 = vrcp.f32 %v1655_v42  ;;  %2070 = vst [vmem:[%s4183_s22 + $0xf0] sm:$0xff] %v2006_v24  ;;  %2227 = vmatmul.f32.gmra.mxu1 %v2006_v24 }
 0x2a5   : > { %v1895_v30 = vsub.f32 2.0, %v1831_v23  ;;  %2103 = vst [vmem:[%s4183_s22 + $0x1f8] sm:$0xff] %v2039_v56 }
 0x2a6   : > { %v1863_v11 = vsub.f32 2.0, %v1799_v2 }
 0x2a7   : > { %v1959_v51 = vmul.f32 %v3110_v48, %v1895_v30  ;;  %v2322_v20 = vpop.f32.mrf.mxu3 }
 0x2a8   : > { %v1927_v45 = vmul.f32 %v3112_v16, %v1863_v11  ;;  %2414 = vst.msk [vmem:[%s4342_s29 + $0x190] sm:$0xff] %vm627_vm0, %v2322_v20  ;;  %v2130_v8 = vpop.f32.mrf.mxu0  ;;  %v2195_v41 = vpop.f32.mrf.mxu1 }
 0x2a9   : > { %2367 = vst.msk [vmem:[%s4342_s29 + $0x18] sm:$0xff] %vm627_vm0, %v2130_v8  ;;  %v2023_v39 = vmul.f32 %v4263_v46, %v1959_v51 }
 0x2aa   : > { %v3114_v13 = vpop.eup %3113  ;;  %2383 = vst.msk [vmem:[%s4342_s29 + $0x98] sm:$0xff] %vm627_vm0, %v2195_v41  ;;  %v1991_v63 = vmul.f32 %v4265_v49, %v1927_v45 }
 0x2ab   : > { %v1815_v32 = vmul.f32 %v3114_v13, %v1655_v42  ;;  %2087 = vst [vmem:[%s4183_s22 + $0x178] sm:$0xff] %v2023_v39  ;;  %2295 = vmatmul.f32.gmra.mxu2 %v2023_v39 }
 0x2ac   : > { %2360 = vmatmul.f32.gmra.mxu3 %v2039_v56  ;;  %2055 = vst [vmem:[%s4183_s22 + $0x78] sm:$0xff] %v1991_v63  ;;  %2165 = vmatmul.f32.gmra.mxu0 %v1991_v63 }
 0x2ad   : > { %v1879_v35 = vsub.f32 2.0, %v1815_v32 }
 0x2af   : > { %v1943_v15 = vmul.f32 %v3114_v13, %v1879_v35  ;;  %v2257_v26 = vpop.f32.mrf.mxu2  ;;  %v2325_v46 = vpop.f32.mrf.mxu3 }
 0x2b0   : > { %2398 = vst.msk [vmem:[%s4342_s29 + $0x110] sm:$0xff] %vm627_vm0, %v2257_v26  ;;  %v2133_v47 = vpop.f32.mrf.mxu0 }
 0x2b1   : > { %2368 = vst.msk [vmem:[%s4342_s29 + $0x20] sm:$0xff] %vm627_vm0, %v2133_v47  ;;  %v2007_v49 = vmul.f32 %v4275_v14, %v1943_v15 }
 0x2b2   : > { %2415 = vst.msk [vmem:[%s4342_s29 + $0x198] sm:$0xff] %vm627_vm0, %v2325_v46  ;;  %v2198_v3 = vpop.f32.mrf.mxu1 }
 0x2b3   : > { %2384 = vst.msk [vmem:[%s4342_s29 + $0xa0] sm:$0xff] %vm627_vm0, %v2198_v3  ;;  %2230 = vmatmul.f32.gmra.mxu1 %v2007_v49 }
 0x2b4   : > { %2071 = vst [vmem:[%s4183_s22 + $0xf8] sm:$0xff] %v2007_v49 }
 0x2b5   : > { %3142 = shalt.err (!%p3139_p5)
}
 0x2b6   : > { %s3195_s14 = smov 128   ;;  %s3196_s22 = smov 8  }
 0x2b7   : > { %2802 = dma.vmem_to_hbm [thread:$0]  (%p3262_p4), %s2466_s8, 8192, %s2468_s9, %s2443_s18, %s3195_s14, %s3195_s14, %s3196_s22   ;;  %v2260_v14 = vpop.f32.mrf.mxu2 }
 0x2b8   : > { %2399 = vst.msk [vmem:[%s4342_s29 + $0x118] sm:$0xff] %vm627_vm0, %v2260_v14  ;;  %v2136_v7 = vpop.f32.mrf.mxu0 }
 0x2b9   : > { %2369 = vst.msk [vmem:[%s4342_s29 + $0x28] sm:$0xff] %vm627_vm0, %v2136_v7 }
 0x2bf   : > { %v2263_v29 = vpop.f32.mrf.mxu2 }
 0x2c0   : > { %2400 = vst.msk [vmem:[%s4342_s29 + $0x120] sm:$0xff] %vm627_vm0, %v2263_v29  ;;  %v2201_v37 = vpop.f32.mrf.mxu1  ;;  %v2328_v60 = vpop.f32.mrf.mxu3 }
 0x2c1   : > { %2385 = vst.msk [vmem:[%s4342_s29 + $0xa8] sm:$0xff] %vm627_vm0, %v2201_v37 }
 0x2c2   : > { %2416 = vst.msk [vmem:[%s4342_s29 + $0x1a0] sm:$0xff] %vm627_vm0, %v2328_v60  ;;  %v2139_v9 = vpop.f32.mrf.mxu0 }
 0x2c3   : > { %2370 = vst.msk [vmem:[%s4342_s29 + $0x30] sm:$0xff] %vm627_vm0, %v2139_v9 }
 0x2c7   : > { %v2266_v27 = vpop.f32.mrf.mxu2 }
 0x2c8   : > { %2401 = vst.msk [vmem:[%s4342_s29 + $0x128] sm:$0xff] %vm627_vm0, %v2266_v27  ;;  %v2204_v34 = vpop.f32.mrf.mxu1 }
 0x2c9   : > { %2386 = vst.msk [vmem:[%s4342_s29 + $0xb0] sm:$0xff] %vm627_vm0, %v2204_v34 }
 0x2ce   : > { %v2331_v44 = vpop.f32.mrf.mxu3 }
 0x2cf   : > { %2417 = vst.msk [vmem:[%s4342_s29 + $0x1a8] sm:$0xff] %vm627_vm0, %v2331_v44 }
 0x2d0   : > { %v2142_v62 = vpop.f32.mrf.mxu0  ;;  %v2269_v4 = vpop.f32.mrf.mxu2 }
 0x2d1   : > { %2371 = vst.msk [vmem:[%s4342_s29 + $0x38] sm:$0xff] %vm627_vm0, %v2142_v62 }
 0x2d2   : > { %2402 = vst.msk [vmem:[%s4342_s29 + $0x130] sm:$0xff] %vm627_vm0, %v2269_v4  ;;  %v2207_v17 = vpop.f32.mrf.mxu1 }
 0x2d3   : > { %2387 = vst.msk [vmem:[%s4342_s29 + $0xb8] sm:$0xff] %vm627_vm0, %v2207_v17 }
 0x2d6   : > { %v2334_v19 = vpop.f32.mrf.mxu3 }
 0x2d7   : > { %2418 = vst.msk [vmem:[%s4342_s29 + $0x1b0] sm:$0xff] %vm627_vm0, %v2334_v19 }
 0x2d8   : > { %v2145_v50 = vpop.f32.mrf.mxu0 }
 0x2d9   : > { %2372 = vst.msk [vmem:[%s4342_s29 + $0x40] sm:$0xff] %vm627_vm0, %v2145_v50 }
 0x2de   : > { %v2272_v22 = vpop.f32.mrf.mxu2 }
 0x2df   : > { %2403 = vst.msk [vmem:[%s4342_s29 + $0x138] sm:$0xff] %vm627_vm0, %v2272_v22 }
 0x2e0   : > { %v2210_v1 = vpop.f32.mrf.mxu1  ;;  %v2337_v55 = vpop.f32.mrf.mxu3 }
 0x2e1   : > { %2388 = vst.msk [vmem:[%s4342_s29 + $0xc0] sm:$0xff] %vm627_vm0, %v2210_v1  ;;  %v2148_v61 = vpop.f32.mrf.mxu0 }
 0x2e2   : > { %2419 = vst.msk [vmem:[%s4342_s29 + $0x1b8] sm:$0xff] %vm627_vm0, %v2337_v55 }
 0x2e3   : > { %2373 = vst.msk [vmem:[%s4342_s29 + $0x48] sm:$0xff] %vm627_vm0, %v2148_v61 }
 0x2e6   : > { %v2275_v12 = vpop.f32.mrf.mxu2 }
 0x2e7   : > { %2404 = vst.msk [vmem:[%s4342_s29 + $0x140] sm:$0xff] %vm627_vm0, %v2275_v12 }
 0x2ee   : > { %v2278_v6 = vpop.f32.mrf.mxu2  ;;  %v2340_v58 = vpop.f32.mrf.mxu3 }
 0x2ef   : > { %2405 = vst.msk [vmem:[%s4342_s29 + $0x148] sm:$0xff] %vm627_vm0, %v2278_v6 }
 0x2f0   : > { %2420 = vst.msk [vmem:[%s4342_s29 + $0x1c0] sm:$0xff] %vm627_vm0, %v2340_v58  ;;  %v2213_v18 = vpop.f32.mrf.mxu1 }
 0x2f1   : > { %2389 = vst.msk [vmem:[%s4342_s29 + $0xc8] sm:$0xff] %vm627_vm0, %v2213_v18 }
 0x2f6   : > { %v2343_v53 = vpop.f32.mrf.mxu3 }
 0x2f7   : > { %2421 = vst.msk [vmem:[%s4342_s29 + $0x1c8] sm:$0xff] %vm627_vm0, %v2343_v53 }
 0x2f8   : > { %v2151_v36 = vpop.f32.mrf.mxu0  ;;  %v2216_v52 = vpop.f32.mrf.mxu1 }
 0x2f9   : > { %2374 = vst.msk [vmem:[%s4342_s29 + $0x50] sm:$0xff] %vm627_vm0, %v2151_v36  ;;  %v2281_v25 = vpop.f32.mrf.mxu2 }
 0x2fa   : > { %2390 = vst.msk [vmem:[%s4342_s29 + $0xd0] sm:$0xff] %vm627_vm0, %v2216_v52 }
 0x2fb   : > { %2406 = vst.msk [vmem:[%s4342_s29 + $0x150] sm:$0xff] %vm627_vm0, %v2281_v25 }
 0x2ff   : > { %v2346_v54 = vpop.f32.mrf.mxu3 }
 0x300   : > { %2422 = vst.msk [vmem:[%s4342_s29 + $0x1d0] sm:$0xff] %vm627_vm0, %v2346_v54  ;;  %v2154_v57 = vpop.f32.mrf.mxu0  ;;  %v2219_v28 = vpop.f32.mrf.mxu1 }
 0x301   : > { %2375 = vst.msk [vmem:[%s4342_s29 + $0x58] sm:$0xff] %vm627_vm0, %v2154_v57 }
 0x302   : > { %2391 = vst.msk [vmem:[%s4342_s29 + $0xd8] sm:$0xff] %vm627_vm0, %v2219_v28 }
 0x307   : > { %v2349_v59 = vpop.f32.mrf.mxu3  ;;  %v2284_v31 = vpop.f32.mrf.mxu2 }
 0x308   : > { %2423 = vst.msk [vmem:[%s4342_s29 + $0x1d8] sm:$0xff] %vm627_vm0, %v2349_v59  ;;  %v2222_v5 = vpop.f32.mrf.mxu1 }
 0x309   : > { %2392 = vst.msk [vmem:[%s4342_s29 + $0xe0] sm:$0xff] %vm627_vm0, %v2222_v5  ;;  %v2157_v33 = vpop.f32.mrf.mxu0 }
 0x30a   : > { %2407 = vst.msk [vmem:[%s4342_s29 + $0x158] sm:$0xff] %vm627_vm0, %v2284_v31 }
 0x30b   : > { %2376 = vst.msk [vmem:[%s4342_s29 + $0x60] sm:$0xff] %vm627_vm0, %v2157_v33 }
 0x30f   : > { %v2352_v40 = vpop.f32.mrf.mxu3 }
 0x310   : > { %2424 = vst.msk [vmem:[%s4342_s29 + $0x1e0] sm:$0xff] %vm627_vm0, %v2352_v40  ;;  %v2225_v10 = vpop.f32.mrf.mxu1 }
 0x311   : > { %2393 = vst.msk [vmem:[%s4342_s29 + $0xe8] sm:$0xff] %vm627_vm0, %v2225_v10 }
 0x316   : > { %v2287_v38 = vpop.f32.mrf.mxu2 }
 0x317   : > { %2408 = vst.msk [vmem:[%s4342_s29 + $0x160] sm:$0xff] %vm627_vm0, %v2287_v38  ;;  %v2355_v0 = vpop.f32.mrf.mxu3 }
 0x318   : > { %v2160_v21 = vpop.f32.mrf.mxu0  ;;  %2425 = vst.msk [vmem:[%s4342_s29 + $0x1e8] sm:$0xff] %vm627_vm0, %v2355_v0 }
 0x319   : > { %2377 = vst.msk [vmem:[%s4342_s29 + $0x68] sm:$0xff] %vm627_vm0, %v2160_v21 }
 0x31e   : > { %v2290_v43 = vpop.f32.mrf.mxu2 }
 0x31f   : > { %2409 = vst.msk [vmem:[%s4342_s29 + $0x168] sm:$0xff] %vm627_vm0, %v2290_v43 }
 0x320   : > { %v2163_v48 = vpop.f32.mrf.mxu0 }
 0x321   : > { %2378 = vst.msk [vmem:[%s4342_s29 + $0x70] sm:$0xff] %vm627_vm0, %v2163_v48  ;;  %v2228_v24 = vpop.f32.mrf.mxu1 }
 0x322   : > { %2394 = vst.msk [vmem:[%s4342_s29 + $0xf0] sm:$0xff] %vm627_vm0, %v2228_v24 }
 0x326   : > { %v2293_v16 = vpop.f32.mrf.mxu2 }
 0x327   : > { %2410 = vst.msk [vmem:[%s4342_s29 + $0x170] sm:$0xff] %vm627_vm0, %v2293_v16  ;;  %v2358_v23 = vpop.f32.mrf.mxu3 }
 0x328   : > { %2426 = vst.msk [vmem:[%s4342_s29 + $0x1f0] sm:$0xff] %vm627_vm0, %v2358_v23 }
 0x329   : > { %v2166_v42 = vpop.f32.mrf.mxu0 }
 0x32a   : > { %2379 = vst.msk [vmem:[%s4342_s29 + $0x78] sm:$0xff] %vm627_vm0, %v2166_v42 }
 0x32e   : > { %v2296_v56 = vpop.f32.mrf.mxu2 }
 0x32f   : > { %2411 = vst.msk [vmem:[%s4342_s29 + $0x178] sm:$0xff] %vm627_vm0, %v2296_v56  ;;  %v2361_v2 = vpop.f32.mrf.mxu3 }
 0x330   : > { %2427 = vst.msk [vmem:[%s4342_s29 + $0x1f8] sm:$0xff] %vm627_vm0, %v2361_v2  ;;  %v2231_v30 = vpop.f32.mrf.mxu1 }
 0x331   : > { %2395 = vst.msk [vmem:[%s4342_s29 + $0xf8] sm:$0xff] %vm627_vm0, %v2231_v30 }
 0x332 PF: > { %p2808_p4 = scmp.ge.s32.totalorder %s3193_s20, 2  ;;  %s2499_s25 = sand.u32 1, %s3173_s15  }
 0x333   : > { %s2500_s30 = scalar_lea.sflag [#allocation3], %s2499_s25 }
 0x334   : > { %p2805_p6 = pnand %p2808_p4, %p3269_p8 }
 0x336   : > { %p2806_p7 = pneg %p2805_p6 }
 0x338   : > { %3168 = dma.done.wait (%p2806_p7), %s2500_s30, 8192  }
 0x339   : > { %3170 = vsyncadd (%p2806_p7), %s2500_s30, 4294959104  ;;  %s18_s20 = sadd.s32 1, %s3193_s20   ;;  %s4680_s15 = smov %s3177_s16 }
 0x33a   : > { %p15_p9 = scmp.ge.s32.totalorder %s18_s20, 4   ;;  %s4681_s16 = smov %s3181_s17 }
 0x33b   : > { %s4682_s17 = smov %s3275_s28  ;;  %s4683_s18 = smov %s3189_s19 }
 0x33c   : > { %s4684_s19 = smov %s4686_s23  ;;  %17 = sbr.rel (!%p15_p9) target bundleno = 4 (0x4), region = 85 }
 0x341   :  { %2506 = vsyncpa [#allocation3], 1 }
 0x342   :  { %2508 = vsyncpa [#allocation3 + $0x1], 1 }

</bundles_post_ra>
